<compile_context>
chip_gen: v7x
topology: tpu7x:2x2x1
jax: 0.10.0
libtpu: 0.0.40
codegen_flags: <defaults>
</compile_context>

<pallas_src>
import functools

import jax
import jax.numpy as jnp
from jax.experimental import pallas as pl
from jax.experimental.pallas import tpu as pltpu

_VMEM = pl.BlockSpec(memory_space=pltpu.MemorySpace.VMEM)


# --------------------------- tiled matmul + bias --------------------------- #

def _matmul_bias_kernel(a_ref, b_ref, bias_ref, o_ref, acc_ref):
    @pl.when(pl.program_id(2) == 0)
    def _():
        acc_ref[...] = jnp.zeros_like(acc_ref)

    acc_ref[...] += jnp.dot(a_ref[...], b_ref[...],
                            preferred_element_type=jnp.float32)

    @pl.when(pl.program_id(2) == pl.num_programs(2) - 1)
    def _():
        o_ref[...] = (acc_ref[...] + bias_ref[...].astype(jnp.float32)).astype(o_ref.dtype)


def _pick_tile(dim, pref, align):
    # Largest tile <= pref that is a multiple of `align` and divides `dim`;
    # falls back to the full dim when dim itself is not aligned (small dims).
    # (Fallback tiles can be lane-sparse; only matters for the tiny style matmuls.)
    if dim % align != 0:
        return dim
    t = min(pref, dim)
    while dim % t != 0:
        t -= align
    return t


def matmul_bias(a, b, bias, *, bias_rows=True, out_dtype=jnp.float32):
    """(M, K) @ (K, Ncols) + bias -> (M, Ncols). bf16 operands welcome; f32 accumulation.

    bias_rows=True : bias has shape (M,)   and is added per row.
    bias_rows=False: bias has shape (Ncols,) and is added per column.
    """
    m, k = a.shape
    k2, ncols = b.shape
    assert k == k2
    tm = _pick_tile(m, 256, 8)
    tn = _pick_tile(ncols, 1024, 128)
    tk = _pick_tile(k, 512, 128)
    grid = (m // tm, ncols // tn, k // tk)

    bias_f32 = bias.astype(jnp.float32)
    if bias_rows:
        bias2 = bias_f32.reshape(m, 1)
        bias_spec = pl.BlockSpec((tm, 1), lambda i, j, kk: (i, 0))
    else:
        bias2 = bias_f32.reshape(1, ncols)
        bias_spec = pl.BlockSpec((1, tn), lambda i, j, kk: (0, j))

    flops = 2 * m * k * ncols
    bytes_acc = (a.size * a.dtype.itemsize + b.size * b.dtype.itemsize
                 + m * ncols * jnp.dtype(out_dtype).itemsize)

    return pl.pallas_call(
        _matmul_bias_kernel,
        out_shape=jax.ShapeDtypeStruct((m, ncols), out_dtype),
        grid=grid,
        in_specs=[
            pl.BlockSpec((tm, tk), lambda i, j, kk: (i, kk)),
            pl.BlockSpec((tk, tn), lambda i, j, kk: (kk, j)),
            bias_spec,
        ],
        out_specs=pl.BlockSpec((tm, tn), lambda i, j, kk: (i, j)),
        scratch_shapes=[pltpu.VMEM((tm, tn), jnp.float32)],
        compiler_params=pltpu.CompilerParams(
            dimension_semantics=("parallel", "parallel", "arbitrary")),
        cost_estimate=pl.CostEstimate(flops=flops, transcendentals=0,
                                      bytes_accessed=bytes_acc),
    )(a, b, bias2)


# ------------------------ convs (lane-dense matmul lowering) ------------------------ #

def conv3x3(x, weight, bias):
    # x: (Cin, N, H, W); weight: (Cout, Cin, 3, 3)  -- PyTorch Conv2d(k=3, pad=1, stride=1)
    # TODO(synk): im2col (pad + 9 shifted slices) is still built by XLA (in bf16 to halve the
    #             traffic); a halo'd in-kernel im2col would cut conv-input HBM bytes further.
    cin, n, h, w = x.shape
    cout = weight.shape[0]
    xb = x.astype(jnp.bfloat16)
    xp = jnp.pad(xb, ((0, 0), (0, 0), (1, 1), (1, 1)))
    cols = [xp[:, :, dh:dh + h, dw:dw + w] for dh in range(3) for dw in range(3)]
    col = jnp.stack(cols, axis=1).reshape(cin * 9, n * h * w)       # (Cin*9, N*H*W) bf16
    wmat = weight.reshape(cout, cin * 9).astype(jnp.bfloat16)       # (Cout, Cin*9)  bf16
    y = matmul_bias(wmat, col, bias, bias_rows=True, out_dtype=jnp.bfloat16)
    return y.reshape(cout, n, h, w)


def conv1x1(x, weight, bias, out_dtype=jnp.float32):
    # ConvLay(kernel_size=1, stride=1, padding=0).  TODO(synk): ConvLay assumed plain Conv2d.
    cin, n, h, w = x.shape
    cout = weight.shape[0]
    y = matmul_bias(weight.reshape(cout, cin).astype(jnp.bfloat16),
                    x.reshape(cin, n * h * w).astype(jnp.bfloat16),
                    bias, bias_rows=True, out_dtype=out_dtype)
    return y.reshape(cout, n, h, w)


# ------------------- fused mapping network (PixelNorm + 8x Linear+ReLU) ------------------- #

def _mapping_kernel(z_ref, *refs):
    # TODO(synk): Mapping_network internals assumed: PixelNorm + 8 x (Linear + ReLU).
    o_ref = refs[-1]
    n_layers = (len(refs) - 1) // 2
    x = z_ref[...].astype(jnp.float32)
    ms = jnp.mean(x * x, axis=-1, keepdims=True)
    x = x * jax.lax.rsqrt(ms + 1e-8)                                # PixelNorm (f32)
    for i in range(n_layers):
        wgt = refs[2 * i][...]                                      # bf16 weights
        b = refs[2 * i + 1][...]                                    # f32 bias
        x = jnp.dot(x.astype(jnp.bfloat16), wgt,
                    preferred_element_type=jnp.float32) + b
        x = jnp.maximum(x, 0.0)
    o_ref[...] = x.astype(o_ref.dtype)


def mapping_network(z, layers):
    n = z.shape[0]
    wdim = layers[-1][0].shape[1]
    flat = []
    for (wgt, b) in layers:
        flat.append(wgt.astype(jnp.bfloat16))
        flat.append(b.astype(jnp.float32).reshape(1, -1))
    return pl.pallas_call(
        _mapping_kernel,
        out_shape=jax.ShapeDtypeStruct((n, wdim), jnp.float32),
        in_specs=[_VMEM] * (1 + len(flat)),
        out_specs=_VMEM,
    )(z, *flat)


# ---------- fused epilogue: noise-inject (+LeakyReLU) + InstanceNorm + AdaIN ---------- #

def _noise_adain_kernel(x_ref, nz_ref, side_ref, o_ref, *, leaky):
    # Per grid step: a (TC, N, HW) tile of channels.  Math in f32, I/O in bf16.
    x = x_ref[...].astype(jnp.float32)                              # (tc, n, hw)
    nz = nz_ref[...].astype(jnp.float32)                            # (1, n, hw) resident
    side = side_ref[...].astype(jnp.float32)                        # (3, tc, n, 1)
    nw, sc, bs = side[0], side[1], side[2]                          # (tc, n, 1) each
    y = x + nw * nz
    if leaky:
        y = jnp.where(y >= 0.0, y, 0.2 * y)                         # LeakyReLU(0.2) fused in
    mean = jnp.mean(y, axis=-1, keepdims=True)
    yc = y - mean
    var = jnp.mean(yc * yc, axis=-1, keepdims=True)
    norm = yc * jax.lax.rsqrt(var + 1e-5)                           # InstanceNorm2d(eps=1e-5)
    o_ref[...] = (sc * norm + bs).astype(o_ref.dtype)


def _pick_channel_tile(c, n, hw, budget_bytes=2 * 1024 * 1024):
    per_ch = max(1, n * hw * 4)
    tc = max(1, min(c, budget_bytes // per_ch))
    while c % tc:
        tc -= 1
    if c // tc < 2 and c >= 2:
        # ensure >=2 grid steps so both v7x TensorCores get work
        for cand in range(c // 2, 0, -1):
            if c % cand == 0:
                tc = cand
                break
    return tc


def noise_adain(x, noise_w, noise, scale, bias, leaky):
    # x: (C, N, H, W); noise_w: (C,); noise: (1, N, H*W) f32; scale/bias: (C, N) f32
    c, n, h, w = x.shape
    hw = h * w
    x3 = x.reshape(c, n, hw)
    side = jnp.stack([jnp.broadcast_to(noise_w.reshape(c, 1), (c, n)).astype(jnp.float32),
                      scale.astype(jnp.float32),
                      bias.astype(jnp.float32)], axis=0)[..., None]   # (3, C, N, 1)
    tc = _pick_channel_tile(c, n, hw)
    kern = functools.partial(_noise_adain_kernel, leaky=leaky)
    out = pl.pallas_call(
        kern,
        out_shape=jax.ShapeDtypeStruct((c, n, hw), jnp.bfloat16),
        grid=(c // tc,),
        in_specs=[
            pl.BlockSpec((tc, n, hw), lambda i: (i, 0, 0)),
            pl.BlockSpec((1, n, hw), lambda i: (0, 0, 0)),            # noise resident across C
            pl.BlockSpec((3, tc, n, 1), lambda i: (0, i, 0, 0)),      # packed nw/scale/bias
        ],
        out_specs=pl.BlockSpec((tc, n, hw), lambda i: (i, 0, 0)),
        compiler_params=pltpu.CompilerParams(dimension_semantics=("parallel",)),
    )(x3, noise, side)
    return out.reshape(c, n, h, w)


def adain_style(w, p):
    # Lane-dense orientation: (N, w_dim) @ (w_dim, 2C) + b -> (N, 2C); lane axis = 2C.
    s = matmul_bias(w.astype(jnp.bfloat16), p["style_w"].astype(jnp.bfloat16),
                    p["style_b"], bias_rows=False, out_dtype=jnp.float32)
    c = s.shape[1] // 2
    return s[:, :c].T, s[:, c:].T                                     # (C, N) each (tiny)


# -------------- fused tail: rgb[steps-1](upscaled), rgb[steps](x), fade_in -------------- #

def _rgb_fade_kernel(alpha_ref, up_ref, x_ref, w1_ref, b1_ref, w2_ref, b2_ref, o_ref):
    a = alpha_ref[...]                                                # (1, 1) broadcasts
    y_gen = jnp.dot(w1_ref[...], up_ref[...],
                    preferred_element_type=jnp.float32) + b1_ref[...]
    y_new = jnp.dot(w2_ref[...], x_ref[...],
                    preferred_element_type=jnp.float32) + b2_ref[...]
    # Matches reference: tanh(alpha * rgb[steps-1](upscaled) + (1-alpha) * rgb[steps](x)).
    o_ref[...] = jnp.tanh(a * y_gen + (1.0 - a) * y_new).astype(o_ref.dtype)


def rgb_fade(alpha, up_act, rgb_prev, new_act, rgb_new):
    c1, n, h, w = up_act.shape
    c2 = new_act.shape[0]
    nhw = n * h * w
    img = rgb_prev[0].shape[0]
    tn = _pick_tile(nhw, 2048, 128)
    a = jnp.asarray(alpha, jnp.float32).reshape(1, 1)
    w1 = rgb_prev[0].reshape(img, c1).astype(jnp.bfloat16)
    b1 = rgb_prev[1].astype(jnp.float32).reshape(img, 1)
    w2 = rgb_new[0].reshape(img, c2).astype(jnp.bfloat16)
    b2 = rgb_new[1].astype(jnp.float32).reshape(img, 1)
    out = pl.pallas_call(
        _rgb_fade_kernel,
        out_shape=jax.ShapeDtypeStruct((img, nhw), jnp.float32),
        grid=(nhw // tn,),
        in_specs=[
            pl.BlockSpec((1, 1), lambda j: (0, 0)),
            pl.BlockSpec((c1, tn), lambda j: (0, j)),
            pl.BlockSpec((c2, tn), lambda j: (0, j)),
            pl.BlockSpec((img, c1), lambda j: (0, 0)),
            pl.BlockSpec((img, 1), lambda j: (0, 0)),
            pl.BlockSpec((img, c2), lambda j: (0, 0)),
            pl.BlockSpec((img, 1), lambda j: (0, 0)),
        ],
        out_specs=pl.BlockSpec((img, tn), lambda j: (0, j)),
        compiler_params=pltpu.CompilerParams(dimension_semantics=("parallel",)),
    )(a, up_act.reshape(c1, nhw).astype(jnp.bfloat16),
      new_act.reshape(c2, nhw).astype(jnp.bfloat16), w1, b1, w2, b2)
    return out.reshape(img, n, h, w)


# ------------------------------ sub-networks ------------------------------ #

def gen_block(x, w, p, key):
    # TODO(synk): GenBlock assumed: 2 x (conv3x3 -> InjectNoise -> LeakyReLU(0.2) -> AdaIN).
    # TODO(synk): noise drawn with jax.random.normal; in-kernel pltpu PRNG is a further opt.
    _, n, h, wd = x.shape
    k1, k2 = jax.random.split(key)
    x = conv3x3(x, p["conv1_w"], p["conv1_b"])
    s1, b1 = adain_style(w, p["ada1"])
    x = noise_adain(x, p["noise1_w"],
                    jax.random.normal(k1, (1, n, h * wd), jnp.float32), s1, b1, leaky=True)
    x = conv3x3(x, p["conv2_w"], p["conv2_b"])
    s2, b2 = adain_style(w, p["ada2"])
    x = noise_adain(x, p["noise2_w"],
                    jax.random.normal(k2, (1, n, h * wd), jnp.float32), s2, b2, leaky=True)
    return x


# ------------------------------ parameter init ------------------------------ #

def _linear(key, fan_in, fan_out):
    kw, kb = jax.random.split(key)
    w = jax.random.normal(kw, (fan_in, fan_out), jnp.float32) / jnp.sqrt(float(fan_in))
    b = 0.01 * jax.random.normal(kb, (fan_out,), jnp.float32)
    return w, b


def _conv(key, cout, cin, k):
    kw, kb = jax.random.split(key)
    w = jax.random.normal(kw, (cout, cin, k, k), jnp.float32) / jnp.sqrt(float(cin * k * k))
    b = 0.01 * jax.random.normal(kb, (cout,), jnp.float32)
    return w, b


def _adain_params(key, w_dim, c):
    # Combined style scale/bias linears, stored (w_dim, 2C): cols [0:C] -> scale, [C:2C] -> bias.
    k1, k2 = jax.random.split(key)
    w = jax.random.normal(k1, (w_dim, 2 * c), jnp.float32) / jnp.sqrt(float(w_dim))
    b = 0.01 * jax.random.normal(k2, (2 * c,), jnp.float32)
    return {"style_w": w, "style_b": b}


def init_generator_params(key, option, img_size=3):
    z_dim = option["shapes"]["z_dim"]
    w_dim = option["shapes"]["w_dim"]
    cin = option["shapes"]["in_channels"]
    factors = option["factors"]
    keys = iter(jax.random.split(key, 128))

    params = {}
    dims = [z_dim] + [w_dim] * 8
    params["map"] = [_linear(next(keys), dims[i], dims[i + 1]) for i in range(8)]
    params["const"] = jnp.ones((1, cin, 4, 4), jnp.float32)
    params["noise0_w"] = 0.1 * jax.random.normal(next(keys), (cin,), jnp.float32)
    params["noise1_w"] = 0.1 * jax.random.normal(next(keys), (cin,), jnp.float32)
    params["ada0"] = _adain_params(next(keys), w_dim, cin)
    params["ada1"] = _adain_params(next(keys), w_dim, cin)
    params["init_conv"] = _conv(next(keys), cin, cin, 3)
    params["rgb"] = [_conv(next(keys), img_size, cin, 1)]
    params["blocks"] = []
    for i in range(len(factors) - 1):
        ins = int(cin * factors[i])
        outs = int(cin * factors[i + 1])
        blk = {}
        blk["conv1_w"], blk["conv1_b"] = _conv(next(keys), outs, ins, 3)
        blk["conv2_w"], blk["conv2_b"] = _conv(next(keys), outs, outs, 3)
        blk["noise1_w"] = 0.1 * jax.random.normal(next(keys), (outs,), jnp.float32)
        blk["noise2_w"] = 0.1 * jax.random.normal(next(keys), (outs,), jnp.float32)
        blk["ada1"] = _adain_params(next(keys), w_dim, outs)
        blk["ada2"] = _adain_params(next(keys), w_dim, outs)
        params["blocks"].append(blk)
        params["rgb"].append(_conv(next(keys), img_size, outs, 1))
    return params


# ------------------------------ Generator.forward ------------------------------ #

def generator_forward(params, noice, alpha, steps, rng):
    w = mapping_network(noice, params["map"])
    n = noice.shape[0]
    const = params["const"]                       # (1, C, 4, 4)
    c, h, wd = const.shape[1], const.shape[2], const.shape[3]
    k0, k1, kb = jax.random.split(rng, 3)

    # x = inital_conv(ada0(noisegen0(const), w)); batch expansion happens via AdaIN broadcast.
    x = jnp.broadcast_to(jnp.transpose(const, (1, 0, 2, 3)),
                         (c, n, h, wd)).astype(jnp.bfloat16)          # CNHW, bf16
    nz0 = jnp.broadcast_to(jax.random.normal(k0, (1, 1, h * wd), jnp.float32),
                           (1, n, h * wd))        # const has batch 1 -> shared noise
    s0, b0 = adain_style(w, params["ada0"])
    x = noise_adain(x, params["noise0_w"], nz0, s0, b0, leaky=False)
    x = conv3x3(x, *params["init_conv"])
    # x = ada1(relu(noisegen1(x)), w)   (LeakyReLU fused into the epilogue kernel)
    nz1 = jax.random.normal(k1, (1, n, h * wd), jnp.float32)
    s1, b1 = adain_style(w, params["ada1"])
    x = noise_adain(x, params["noise1_w"], nz1, s1, b1, leaky=True)

    if steps == 0:
        out = conv1x1(x, *params["rgb"][0])       # reference: no tanh on steps == 0
        return jnp.transpose(out, (1, 0, 2, 3))   # back to NCHW

    block_keys = jax.random.split(kb, steps)
    upscaled = x
    for step in range(steps):
        cb, nb, hb, wb = x.shape
        # TODO(synk): F.interpolate(scale_factor=2, mode='bilinear') left to jax.image.resize.
        upscaled = jax.image.resize(x, (cb, nb, 2 * hb, 2 * wb), method="bilinear")
        x = gen_block(upscaled, w, params["blocks"][step], block_keys[step])

    # Fused RGB convs + fade_in: tanh(alpha*rgb[steps-1](upscaled) + (1-alpha)*rgb[steps](x)),
    # exactly matching Generator.forward / Generator.fade_in argument order.
    out = rgb_fade(alpha, upscaled, params["rgb"][steps - 1], x, params["rgb"][steps])
    return jnp.transpose(out, (1, 0, 2, 3))       # back to NCHW


if __name__ == "__main__":
    option = {
        "shapes": {"z_dim": 32, "w_dim": 32, "in_channels": 8},
        "factors": [1, 1, 0.5],
    }
    key = jax.random.PRNGKey(0)
    kp, kz, kn = jax.random.split(key, 3)
    params = init_generator_params(kp, option, img_size=3)
    z = jax.random.normal(kz, (2, option["shapes"]["z_dim"]), jnp.float32)

    fwd = jax.jit(generator_forward, static_argnames=("steps",))
    out = fwd(params, z, alpha=0.5, steps=2, rng=kn)
    out = jax.block_until_ready(out)
    assert out.shape == (2, 3, 16, 16), out.shape
    assert bool(jnp.all(jnp.isfinite(out)))
    print("KERNEL_OK")
</pallas_src>

<mosaic_0001>
module attributes {stable_mosaic.version = 11 : i64} {
  func.func @_matmul_bias_kernel(%arg0: i32, %arg1: i32, %arg2: i32, %arg3: memref<2x32xbf16, #tpu.memory_space<vmem>>, %arg4: memref<32x16xbf16, #tpu.memory_space<vmem>>, %arg5: memref<1x16xf32, #tpu.memory_space<vmem>>, %arg6: memref<2x16xf32, #tpu.memory_space<vmem>>, %arg7: memref<2x16xf32, #tpu.memory_space<vmem>>) attributes {dimension_semantics = [#tpu.dimension_semantics<parallel>, #tpu.dimension_semantics<parallel>, #tpu.dimension_semantics<arbitrary>], iteration_bounds = array<i64: 1, 1, 1>, scalar_prefetch = 0 : i64, scratch_operands = 1 : i64, tpu.core_type = #tpu.core_type<tc>, window_params = [{transform_indices = @transform_0, window_bounds = array<i64: 2, 32>}, {transform_indices = @transform_1, window_bounds = array<i64: 32, 16>}, {transform_indices = @transform_2, window_bounds = array<i64: 1, 16>}, {transform_indices = @transform_3, window_bounds = array<i64: 2, 16>}]} {
    %c0_i32 = arith.constant 0 : i32
    %0 = arith.cmpi eq, %arg2, %c0_i32 : i32
    %1 = arith.extui %0 : i1 to i32
    %c0_i32_0 = arith.constant 0 : i32
    %2 = arith.cmpi ne, %1, %c0_i32_0 : i32
    scf.if %2 {
      %cst_10 = arith.constant 0.000000e+00 : f32
      %12 = vector.broadcast %cst_10 : f32 to vector<2x16xf32>
      %c0_11 = arith.constant 0 : index
      %c0_12 = arith.constant 0 : index
      %13 = vector.load %arg7[%c0_11, %c0_12] : memref<2x16xf32, #tpu.memory_space<vmem>>, vector<2x16xf32>
      tpu.vector_store %arg7[%c0_11, %c0_12], %12 {strides = array<i32>} : memref<2x16xf32, #tpu.memory_space<vmem>>, vector<2x16xf32>,
    } else {
    }
    %c0 = arith.constant 0 : index
    %c0_1 = arith.constant 0 : index
    %3 = vector.load %arg7[%c0, %c0_1] : memref<2x16xf32, #tpu.memory_space<vmem>>, vector<2x16xf32>
    %c0_2 = arith.constant 0 : index
    %c0_3 = arith.constant 0 : index
    %4 = vector.load %arg3[%c0_2, %c0_3] : memref<2x32xbf16, #tpu.memory_space<vmem>>, vector<2x32xbf16>
    %c0_4 = arith.constant 0 : index
    %c0_5 = arith.constant 0 : index
    %5 = vector.load %arg4[%c0_4, %c0_5] : memref<32x16xbf16, #tpu.memory_space<vmem>>, vector<32x16xbf16>
    %cst = arith.constant dense<0.000000e+00> : vector<2x16xf32>
    %6 = tpu.matmul %4, %5, %cst {dimension_numbers = #tpu.dot_dimension_numbers<[1], [0], [0], [1], [0, 0, 1, 1], [], []>} : vector<2x32xbf16>, vector<32x16xbf16>, vector<2x16xf32> -> vector<2x16xf32>
    %7 = arith.addf %3, %6 : vector<2x16xf32>
    %c0_6 = arith.constant 0 : index
    %c0_7 = arith.constant 0 : index
    %8 = vector.load %arg7[%c0_6, %c0_7] : memref<2x16xf32, #tpu.memory_space<vmem>>, vector<2x16xf32>
    tpu.vector_store %arg7[%c0_6, %c0_7], %7 {strides = array<i32>} : memref<2x16xf32, #tpu.memory_space<vmem>>, vector<2x16xf32>,
    %c0_i32_8 = arith.constant 0 : i32
    %9 = arith.cmpi eq, %arg2, %c0_i32_8 : i32
    %10 = arith.extui %9 : i1 to i32
    %c0_i32_9 = arith.constant 0 : i32
    %11 = arith.cmpi ne, %10, %c0_i32_9 : i32
    scf.if %11 {
      %c0_10 = arith.constant 0 : index
      %c0_11 = arith.constant 0 : index
      %12 = vector.load %arg7[%c0_10, %c0_11] : memref<2x16xf32, #tpu.memory_space<vmem>>, vector<2x16xf32>
      %c0_12 = arith.constant 0 : index
      %c0_13 = arith.constant 0 : index
      %13 = vector.load %arg5[%c0_12, %c0_13] : memref<1x16xf32, #tpu.memory_space<vmem>>, vector<1x16xf32>
      %14 = vector.broadcast %13 : vector<1x16xf32> to vector<2x16xf32>
      %15 = arith.addf %12, %14 : vector<2x16xf32>
      %c0_14 = arith.constant 0 : index
      %c0_15 = arith.constant 0 : index
      %16 = vector.load %arg6[%c0_14, %c0_15] : memref<2x16xf32, #tpu.memory_space<vmem>>, vector<2x16xf32>
      tpu.vector_store %arg6[%c0_14, %c0_15], %15 {strides = array<i32>} : memref<2x16xf32, #tpu.memory_space<vmem>>, vector<2x16xf32>,
    } else {
    }
    return
  }
  func.func @transform_0(%arg0: i32, %arg1: i32, %arg2: i32) -> (i32, i32) {
    %c0_i32 = arith.constant 0 : i32
    return %arg0, %arg2 : i32, i32
  }
  func.func @transform_1(%arg0: i32, %arg1: i32, %arg2: i32) -> (i32, i32) {
    %c0_i32 = arith.constant 0 : i32
    return %arg2, %arg1 : i32, i32
  }
  func.func @transform_2(%arg0: i32, %arg1: i32, %arg2: i32) -> (i32, i32) {
    %c0_i32 = arith.constant 0 : i32
    %c0_i32_0 = arith.constant 0 : i32
    return %c0_i32, %arg1 : i32, i32
  }
  func.func @transform_3(%arg0: i32, %arg1: i32, %arg2: i32) -> (i32, i32) {
    %c0_i32 = arith.constant 0 : i32
    return %arg0, %arg1 : i32, i32
  }
}

module attributes {stable_mosaic.version = 11 : i64} {
  func.func @_mapping_kernel(%arg0: memref<2x32xf32, #tpu.memory_space<vmem>>, %arg1: memref<32x32xbf16, #tpu.memory_space<vmem>>, %arg2: memref<1x32xf32, #tpu.memory_space<vmem>>, %arg3: memref<32x32xbf16, #tpu.memory_space<vmem>>, %arg4: memref<1x32xf32, #tpu.memory_space<vmem>>, %arg5: memref<32x32xbf16, #tpu.memory_space<vmem>>, %arg6: memref<1x32xf32, #tpu.memory_space<vmem>>, %arg7: memref<32x32xbf16, #tpu.memory_space<vmem>>, %arg8: memref<1x32xf32, #tpu.memory_space<vmem>>, %arg9: memref<32x32xbf16, #tpu.memory_space<vmem>>, %arg10: memref<1x32xf32, #tpu.memory_space<vmem>>, %arg11: memref<32x32xbf16, #tpu.memory_space<vmem>>, %arg12: memref<1x32xf32, #tpu.memory_space<vmem>>, %arg13: memref<32x32xbf16, #tpu.memory_space<vmem>>, %arg14: memref<1x32xf32, #tpu.memory_space<vmem>>, %arg15: memref<32x32xbf16, #tpu.memory_space<vmem>>, %arg16: memref<1x32xf32, #tpu.memory_space<vmem>>, %arg17: memref<2x32xf32, #tpu.memory_space<vmem>>) attributes {dimension_semantics = [], scalar_prefetch = 0 : i64, scratch_operands = 0 : i64, tpu.core_type = #tpu.core_type<tc>} {
    %c0 = arith.constant 0 : index
    %c0_0 = arith.constant 0 : index
    %0 = vector.load %arg0[%c0, %c0_0] : memref<2x32xf32, #tpu.memory_space<vmem>>, vector<2x32xf32>
    %1 = arith.mulf %0, %0 : vector<2x32xf32>
    %cst = arith.constant dense<0.000000e+00> : vector<2xf32>
    %2 = vector.multi_reduction <add>, %1, %cst [1] : vector<2x32xf32> to vector<2xf32>
    %3 = vector.shape_cast %2 : vector<2xf32> to vector<2x1xf32>
    %cst_1 = arith.constant 3.200000e+01 : f32
    %4 = vector.broadcast %cst_1 : f32 to vector<2x1xf32>
    %5 = arith.divf %3, %4 : vector<2x1xf32>
    %cst_2 = arith.constant 9.99999993E-9 : f32
    %6 = vector.broadcast %cst_2 : f32 to vector<2x1xf32>
    %7 = arith.addf %5, %6 : vector<2x1xf32>
    %8 = math.rsqrt %7 : vector<2x1xf32>
    %9 = vector.broadcast %8 : vector<2x1xf32> to vector<2x32xf32>
    %10 = arith.mulf %0, %9 : vector<2x32xf32>
    %c0_3 = arith.constant 0 : index
    %c0_4 = arith.constant 0 : index
    %11 = vector.load %arg1[%c0_3, %c0_4] : memref<32x32xbf16, #tpu.memory_space<vmem>>, vector<32x32xbf16>
    %c0_5 = arith.constant 0 : index
    %c0_6 = arith.constant 0 : index
    %12 = vector.load %arg2[%c0_5, %c0_6] : memref<1x32xf32, #tpu.memory_space<vmem>>, vector<1x32xf32>
    %13 = arith.truncf %10 : vector<2x32xf32> to vector<2x32xbf16>
    %cst_7 = arith.constant dense<0.000000e+00> : vector<2x32xf32>
    %14 = tpu.matmul %13, %11, %cst_7 {dimension_numbers = #tpu.dot_dimension_numbers<[1], [0], [0], [1], [0, 0, 1, 1], [], []>} : vector<2x32xbf16>, vector<32x32xbf16>, vector<2x32xf32> -> vector<2x32xf32>
    %15 = vector.broadcast %12 : vector<1x32xf32> to vector<2x32xf32>
    %16 = arith.addf %14, %15 : vector<2x32xf32>
    %cst_8 = arith.constant 0.000000e+00 : f32
    %17 = vector.broadcast %cst_8 : f32 to vector<2x32xf32>
    %18 = arith.maximumf %16, %17 : vector<2x32xf32>
    %c0_9 = arith.constant 0 : index
    %c0_10 = arith.constant 0 : index
    %19 = vector.load %arg3[%c0_9, %c0_10] : memref<32x32xbf16, #tpu.memory_space<vmem>>, vector<32x32xbf16>
    %c0_11 = arith.constant 0 : index
    %c0_12 = arith.constant 0 : index
    %20 = vector.load %arg4[%c0_11, %c0_12] : memref<1x32xf32, #tpu.memory_space<vmem>>, vector<1x32xf32>
    %21 = arith.truncf %18 : vector<2x32xf32> to vector<2x32xbf16>
    %cst_13 = arith.constant dense<0.000000e+00> : vector<2x32xf32>
    %22 = tpu.matmul %21, %19, %cst_13 {dimension_numbers = #tpu.dot_dimension_numbers<[1], [0], [0], [1], [0, 0, 1, 1], [], []>} : vector<2x32xbf16>, vector<32x32xbf16>, vector<2x32xf32> -> vector<2x32xf32>
    %23 = vector.broadcast %20 : vector<1x32xf32> to vector<2x32xf32>
    %24 = arith.addf %22, %23 : vector<2x32xf32>
    %cst_14 = arith.constant 0.000000e+00 : f32
    %25 = vector.broadcast %cst_14 : f32 to vector<2x32xf32>
    %26 = arith.maximumf %24, %25 : vector<2x32xf32>
    %c0_15 = arith.constant 0 : index
    %c0_16 = arith.constant 0 : index
    %27 = vector.load %arg5[%c0_15, %c0_16] : memref<32x32xbf16, #tpu.memory_space<vmem>>, vector<32x32xbf16>
    %c0_17 = arith.constant 0 : index
    %c0_18 = arith.constant 0 : index
    %28 = vector.load %arg6[%c0_17, %c0_18] : memref<1x32xf32, #tpu.memory_space<vmem>>, vector<1x32xf32>
    %29 = arith.truncf %26 : vector<2x32xf32> to vector<2x32xbf16>
    %cst_19 = arith.constant dense<0.000000e+00> : vector<2x32xf32>
    %30 = tpu.matmul %29, %27, %cst_19 {dimension_numbers = #tpu.dot_dimension_numbers<[1], [0], [0], [1], [0, 0, 1, 1], [], []>} : vector<2x32xbf16>, vector<32x32xbf16>, vector<2x32xf32> -> vector<2x32xf32>
    %31 = vector.broadcast %28 : vector<1x32xf32> to vector<2x32xf32>
    %32 = arith.addf %30, %31 : vector<2x32xf32>
    %cst_20 = arith.constant 0.000000e+00 : f32
    %33 = vector.broadcast %cst_20 : f32 to vector<2x32xf32>
    %34 = arith.maximumf %32, %33 : vector<2x32xf32>
    %c0_21 = arith.constant 0 : index
    %c0_22 = arith.constant 0 : index
    %35 = vector.load %arg7[%c0_21, %c0_22] : memref<32x32xbf16, #tpu.memory_space<vmem>>, vector<32x32xbf16>
    %c0_23 = arith.constant 0 : index
    %c0_24 = arith.constant 0 : index
    %36 = vector.load %arg8[%c0_23, %c0_24] : memref<1x32xf32, #tpu.memory_space<vmem>>, vector<1x32xf32>
    %37 = arith.truncf %34 : vector<2x32xf32> to vector<2x32xbf16>
    %cst_25 = arith.constant dense<0.000000e+00> : vector<2x32xf32>
    %38 = tpu.matmul %37, %35, %cst_25 {dimension_numbers = #tpu.dot_dimension_numbers<[1], [0], [0], [1], [0, 0, 1, 1], [], []>} : vector<2x32xbf16>, vector<32x32xbf16>, vector<2x32xf32> -> vector<2x32xf32>
    %39 = vector.broadcast %36 : vector<1x32xf32> to vector<2x32xf32>
    %40 = arith.addf %38, %39 : vector<2x32xf32>
    %cst_26 = arith.constant 0.000000e+00 : f32
    %41 = vector.broadcast %cst_26 : f32 to vector<2x32xf32>
    %42 = arith.maximumf %40, %41 : vector<2x32xf32>
    %c0_27 = arith.constant 0 : index
    %c0_28 = arith.constant 0 : index
    %43 = vector.load %arg9[%c0_27, %c0_28] : memref<32x32xbf16, #tpu.memory_space<vmem>>, vector<32x32xbf16>
    %c0_29 = arith.constant 0 : index
    %c0_30 = arith.constant 0 : index
    %44 = vector.load %arg10[%c0_29, %c0_30] : memref<1x32xf32, #tpu.memory_space<vmem>>, vector<1x32xf32>
    %45 = arith.truncf %42 : vector<2x32xf32> to vector<2x32xbf16>
    %cst_31 = arith.constant dense<0.000000e+00> : vector<2x32xf32>
    %46 = tpu.matmul %45, %43, %cst_31 {dimension_numbers = #tpu.dot_dimension_numbers<[1], [0], [0], [1], [0, 0, 1, 1], [], []>} : vector<2x32xbf16>, vector<32x32xbf16>, vector<2x32xf32> -> vector<2x32xf32>
    %47 = vector.broadcast %44 : vector<1x32xf32> to vector<2x32xf32>
    %48 = arith.addf %46, %47 : vector<2x32xf32>
    %cst_32 = arith.constant 0.000000e+00 : f32
    %49 = vector.broadcast %cst_32 : f32 to vector<2x32xf32>
    %50 = arith.maximumf %48, %49 : vector<2x32xf32>
    %c0_33 = arith.constant 0 : index
    %c0_34 = arith.constant 0 : index
    %51 = vector.load %arg11[%c0_33, %c0_34] : memref<32x32xbf16, #tpu.memory_space<vmem>>, vector<32x32xbf16>
    %c0_35 = arith.constant 0 : index
    %c0_36 = arith.constant 0 : index
    %52 = vector.load %arg12[%c0_35, %c0_36] : memref<1x32xf32, #tpu.memory_space<vmem>>, vector<1x32xf32>
    %53 = arith.truncf %50 : vector<2x32xf32> to vector<2x32xbf16>
    %cst_37 = arith.constant dense<0.000000e+00> : vector<2x32xf32>
    %54 = tpu.matmul %53, %51, %cst_37 {dimension_numbers = #tpu.dot_dimension_numbers<[1], [0], [0], [1], [0, 0, 1, 1], [], []>} : vector<2x32xbf16>, vector<32x32xbf16>, vector<2x32xf32> -> vector<2x32xf32>
    %55 = vector.broadcast %52 : vector<1x32xf32> to vector<2x32xf32>
    %56 = arith.addf %54, %55 : vector<2x32xf32>
    %cst_38 = arith.constant 0.000000e+00 : f32
    %57 = vector.broadcast %cst_38 : f32 to vector<2x32xf32>
    %58 = arith.maximumf %56, %57 : vector<2x32xf32>
    %c0_39 = arith.constant 0 : index
    %c0_40 = arith.constant 0 : index
    %59 = vector.load %arg13[%c0_39, %c0_40] : memref<32x32xbf16, #tpu.memory_space<vmem>>, vector<32x32xbf16>
    %c0_41 = arith.constant 0 : index
    %c0_42 = arith.constant 0 : index
    %60 = vector.load %arg14[%c0_41, %c0_42] : memref<1x32xf32, #tpu.memory_space<vmem>>, vector<1x32xf32>
    %61 = arith.truncf %58 : vector<2x32xf32> to vector<2x32xbf16>
    %cst_43 = arith.constant dense<0.000000e+00> : vector<2x32xf32>
    %62 = tpu.matmul %61, %59, %cst_43 {dimension_numbers = #tpu.dot_dimension_numbers<[1], [0], [0], [1], [0, 0, 1, 1], [], []>} : vector<2x32xbf16>, vector<32x32xbf16>, vector<2x32xf32> -> vector<2x32xf32>
    %63 = vector.broadcast %60 : vector<1x32xf32> to vector<2x32xf32>
    %64 = arith.addf %62, %63 : vector<2x32xf32>
    %cst_44 = arith.constant 0.000000e+00 : f32
    %65 = vector.broadcast %cst_44 : f32 to vector<2x32xf32>
    %66 = arith.maximumf %64, %65 : vector<2x32xf32>
    %c0_45 = arith.constant 0 : index
    %c0_46 = arith.constant 0 : index
    %67 = vector.load %arg15[%c0_45, %c0_46] : memref<32x32xbf16, #tpu.memory_space<vmem>>, vector<32x32xbf16>
    %c0_47 = arith.constant 0 : index
    %c0_48 = arith.constant 0 : index
    %68 = vector.load %arg16[%c0_47, %c0_48] : memref<1x32xf32, #tpu.memory_space<vmem>>, vector<1x32xf32>
    %69 = arith.truncf %66 : vector<2x32xf32> to vector<2x32xbf16>
    %cst_49 = arith.constant dense<0.000000e+00> : vector<2x32xf32>
    %70 = tpu.matmul %69, %67, %cst_49 {dimension_numbers = #tpu.dot_dimension_numbers<[1], [0], [0], [1], [0, 0, 1, 1], [], []>} : vector<2x32xbf16>, vector<32x32xbf16>, vector<2x32xf32> -> vector<2x32xf32>
    %71 = vector.broadcast %68 : vector<1x32xf32> to vector<2x32xf32>
    %72 = arith.addf %70, %71 : vector<2x32xf32>
    %cst_50 = arith.constant 0.000000e+00 : f32
    %73 = vector.broadcast %cst_50 : f32 to vector<2x32xf32>
    %74 = arith.maximumf %72, %73 : vector<2x32xf32>
    %c0_51 = arith.constant 0 : index
    %c0_52 = arith.constant 0 : index
    %75 = vector.load %arg17[%c0_51, %c0_52] : memref<2x32xf32, #tpu.memory_space<vmem>>, vector<2x32xf32>
    tpu.vector_store %arg17[%c0_51, %c0_52], %74 {strides = array<i32>} : memref<2x32xf32, #tpu.memory_space<vmem>>, vector<2x32xf32>,
    return
  }
}

module attributes {stable_mosaic.version = 11 : i64} {
  func.func @_noise_adain_kernel(%arg0: i32, %arg1: memref<4x2x16xbf16, #tpu.memory_space<vmem>>, %arg2: memref<1x2x16xf32, #tpu.memory_space<vmem>>, %arg3: memref<3x4x2x1xf32, #tpu.memory_space<vmem>>, %arg4: memref<4x2x16xbf16, #tpu.memory_space<vmem>>) attributes {dimension_semantics = [#tpu.dimension_semantics<parallel>], iteration_bounds = array<i64: 2>, scalar_prefetch = 0 : i64, scratch_operands = 0 : i64, tpu.core_type = #tpu.core_type<tc>, window_params = [{transform_indices = @transform_0, window_bounds = array<i64: 4, 2, 16>}, {pipeline_mode = #tpu.pipeline_mode<synchronous>, transform_indices = @transform_1, window_bounds = array<i64: 1, 2, 16>}, {transform_indices = @transform_2, window_bounds = array<i64: 3, 4, 2, 1>}, {transform_indices = @transform_3, window_bounds = array<i64: 4, 2, 16>}]} {
    %c0 = arith.constant 0 : index
    %c0_0 = arith.constant 0 : index
    %c0_1 = arith.constant 0 : index
    %0 = vector.load %arg1[%c0, %c0_0, %c0_1] : memref<4x2x16xbf16, #tpu.memory_space<vmem>>, vector<4x2x16xbf16>
    %1 = arith.extf %0 : vector<4x2x16xbf16> to vector<4x2x16xf32>
    %c0_2 = arith.constant 0 : index
    %c0_3 = arith.constant 0 : index
    %c0_4 = arith.constant 0 : index
    %2 = vector.load %arg2[%c0_2, %c0_3, %c0_4] : memref<1x2x16xf32, #tpu.memory_space<vmem>>, vector<1x2x16xf32>
    %c0_5 = arith.constant 0 : index
    %c0_6 = arith.constant 0 : index
    %c0_7 = arith.constant 0 : index
    %c0_8 = arith.constant 0 : index
    %3 = vector.load %arg3[%c0_5, %c0_6, %c0_7, %c0_8] : memref<3x4x2x1xf32, #tpu.memory_space<vmem>>, vector<3x4x2x1xf32>
    %4 = vector.extract_strided_slice %3 {offsets = [0, 0, 0, 0], sizes = [1, 4, 2, 1], strides = [1, 1, 1, 1]} : vector<3x4x2x1xf32> to vector<1x4x2x1xf32>
    %5 = vector.shape_cast %4 : vector<1x4x2x1xf32> to vector<4x2x1xf32>
    %6 = vector.extract_strided_slice %3 {offsets = [1, 0, 0, 0], sizes = [1, 4, 2, 1], strides = [1, 1, 1, 1]} : vector<3x4x2x1xf32> to vector<1x4x2x1xf32>
    %7 = vector.shape_cast %6 : vector<1x4x2x1xf32> to vector<4x2x1xf32>
    %8 = vector.extract_strided_slice %3 {offsets = [2, 0, 0, 0], sizes = [1, 4, 2, 1], strides = [1, 1, 1, 1]} : vector<3x4x2x1xf32> to vector<1x4x2x1xf32>
    %9 = vector.shape_cast %8 : vector<1x4x2x1xf32> to vector<4x2x1xf32>
    %10 = vector.broadcast %5 : vector<4x2x1xf32> to vector<4x2x16xf32>
    %11 = vector.broadcast %2 : vector<1x2x16xf32> to vector<4x2x16xf32>
    %12 = arith.mulf %10, %11 : vector<4x2x16xf32>
    %13 = arith.addf %1, %12 : vector<4x2x16xf32>
    %cst = arith.constant dense<0.000000e+00> : vector<4x2xf32>
    %14 = vector.multi_reduction <add>, %13, %cst [2] : vector<4x2x16xf32> to vector<4x2xf32>
    %15 = vector.shape_cast %14 : vector<4x2xf32> to vector<4x2x1xf32>
    %cst_9 = arith.constant 1.600000e+01 : f32
    %16 = vector.broadcast %cst_9 : f32 to vector<4x2x1xf32>
    %17 = arith.divf %15, %16 : vector<4x2x1xf32>
    %18 = vector.broadcast %17 : vector<4x2x1xf32> to vector<4x2x16xf32>
    %19 = arith.subf %13, %18 : vector<4x2x16xf32>
    %20 = arith.mulf %19, %19 : vector<4x2x16xf32>
    %cst_10 = arith.constant dense<0.000000e+00> : vector<4x2xf32>
    %21 = vector.multi_reduction <add>, %20, %cst_10 [2] : vector<4x2x16xf32> to vector<4x2xf32>
    %22 = vector.shape_cast %21 : vector<4x2xf32> to vector<4x2x1xf32>
    %cst_11 = arith.constant 1.600000e+01 : f32
    %23 = vector.broadcast %cst_11 : f32 to vector<4x2x1xf32>
    %24 = arith.divf %22, %23 : vector<4x2x1xf32>
    %cst_12 = arith.constant 9.99999974E-6 : f32
    %25 = vector.broadcast %cst_12 : f32 to vector<4x2x1xf32>
    %26 = arith.addf %24, %25 : vector<4x2x1xf32>
    %27 = math.rsqrt %26 : vector<4x2x1xf32>
    %28 = vector.broadcast %27 : vector<4x2x1xf32> to vector<4x2x16xf32>
    %29 = arith.mulf %19, %28 : vector<4x2x16xf32>
    %30 = vector.broadcast %7 : vector<4x2x1xf32> to vector<4x2x16xf32>
    %31 = arith.mulf %30, %29 : vector<4x2x16xf32>
    %32 = vector.broadcast %9 : vector<4x2x1xf32> to vector<4x2x16xf32>
    %33 = arith.addf %31, %32 : vector<4x2x16xf32>
    %34 = arith.truncf %33 : vector<4x2x16xf32> to vector<4x2x16xbf16>
    %c0_13 = arith.constant 0 : index
    %c0_14 = arith.constant 0 : index
    %c0_15 = arith.constant 0 : index
    %35 = vector.load %arg4[%c0_13, %c0_14, %c0_15] : memref<4x2x16xbf16, #tpu.memory_space<vmem>>, vector<4x2x16xbf16>
    tpu.vector_store %arg4[%c0_13, %c0_14, %c0_15], %34 {strides = array<i32>} : memref<4x2x16xbf16, #tpu.memory_space<vmem>>, vector<4x2x16xbf16>,
    return
  }
  func.func @transform_0(%arg0: i32) -> (i32, i32, i32) {
    %c0_i32 = arith.constant 0 : i32
    %c0_i32_0 = arith.constant 0 : i32
    %c0_i32_1 = arith.constant 0 : i32
    return %arg0, %c0_i32, %c0_i32_0 : i32, i32, i32
  }
  func.func @transform_1(%arg0: i32) -> (i32, i32, i32) {
    %c0_i32 = arith.constant 0 : i32
    %c0_i32_0 = arith.constant 0 : i32
    %c0_i32_1 = arith.constant 0 : i32
    %c0_i32_2 = arith.constant 0 : i32
    return %c0_i32, %c0_i32_0, %c0_i32_1 : i32, i32, i32
  }
  func.func @transform_2(%arg0: i32) -> (i32, i32, i32, i32) {
    %c0_i32 = arith.constant 0 : i32
    %c0_i32_0 = arith.constant 0 : i32
    %c0_i32_1 = arith.constant 0 : i32
    %c0_i32_2 = arith.constant 0 : i32
    return %c0_i32, %arg0, %c0_i32_0, %c0_i32_1 : i32, i32, i32, i32
  }
  func.func @transform_3(%arg0: i32) -> (i32, i32, i32) {
    %c0_i32 = arith.constant 0 : i32
    %c0_i32_0 = arith.constant 0 : i32
    %c0_i32_1 = arith.constant 0 : i32
    return %arg0, %c0_i32, %c0_i32_0 : i32, i32, i32
  }
}

module attributes {stable_mosaic.version = 11 : i64} {
  func.func @_matmul_bias_kernel(%arg0: i32, %arg1: i32, %arg2: i32, %arg3: memref<8x72xbf16, #tpu.memory_space<vmem>>, %arg4: memref<72x32xbf16, #tpu.memory_space<vmem>>, %arg5: memref<8x1xf32, #tpu.memory_space<vmem>>, %arg6: memref<8x32xbf16, #tpu.memory_space<vmem>>, %arg7: memref<8x32xf32, #tpu.memory_space<vmem>>) attributes {dimension_semantics = [#tpu.dimension_semantics<parallel>, #tpu.dimension_semantics<parallel>, #tpu.dimension_semantics<arbitrary>], iteration_bounds = array<i64: 1, 1, 1>, scalar_prefetch = 0 : i64, scratch_operands = 1 : i64, tpu.core_type = #tpu.core_type<tc>, window_params = [{transform_indices = @transform_0, window_bounds = array<i64: 8, 72>}, {transform_indices = @transform_1, window_bounds = array<i64: 72, 32>}, {transform_indices = @transform_2, window_bounds = array<i64: 8, 1>}, {transform_indices = @transform_3, window_bounds = array<i64: 8, 32>}]} {
    %c0_i32 = arith.constant 0 : i32
    %0 = arith.cmpi eq, %arg2, %c0_i32 : i32
    %1 = arith.extui %0 : i1 to i32
    %c0_i32_0 = arith.constant 0 : i32
    %2 = arith.cmpi ne, %1, %c0_i32_0 : i32
    scf.if %2 {
      %cst_10 = arith.constant 0.000000e+00 : f32
      %12 = vector.broadcast %cst_10 : f32 to vector<8x32xf32>
      %c0_11 = arith.constant 0 : index
      %c0_12 = arith.constant 0 : index
      %13 = vector.load %arg7[%c0_11, %c0_12] : memref<8x32xf32, #tpu.memory_space<vmem>>, vector<8x32xf32>
      tpu.vector_store %arg7[%c0_11, %c0_12], %12 {strides = array<i32>} : memref<8x32xf32, #tpu.memory_space<vmem>>, vector<8x32xf32>,
    } else {
    }
    %c0 = arith.constant 0 : index
    %c0_1 = arith.constant 0 : index
    %3 = vector.load %arg7[%c0, %c0_1] : memref<8x32xf32, #tpu.memory_space<vmem>>, vector<8x32xf32>
    %c0_2 = arith.constant 0 : index
    %c0_3 = arith.constant 0 : index
    %4 = vector.load %arg3[%c0_2, %c0_3] : memref<8x72xbf16, #tpu.memory_space<vmem>>, vector<8x72xbf16>
    %c0_4 = arith.constant 0 : index
    %c0_5 = arith.constant 0 : index
    %5 = vector.load %arg4[%c0_4, %c0_5] : memref<72x32xbf16, #tpu.memory_space<vmem>>, vector<72x32xbf16>
    %cst = arith.constant dense<0.000000e+00> : vector<8x32xf32>
    %6 = tpu.matmul %4, %5, %cst {dimension_numbers = #tpu.dot_dimension_numbers<[1], [0], [0], [1], [0, 0, 1, 1], [], []>} : vector<8x72xbf16>, vector<72x32xbf16>, vector<8x32xf32> -> vector<8x32xf32>
    %7 = arith.addf %3, %6 : vector<8x32xf32>
    %c0_6 = arith.constant 0 : index
    %c0_7 = arith.constant 0 : index
    %8 = vector.load %arg7[%c0_6, %c0_7] : memref<8x32xf32, #tpu.memory_space<vmem>>, vector<8x32xf32>
    tpu.vector_store %arg7[%c0_6, %c0_7], %7 {strides = array<i32>} : memref<8x32xf32, #tpu.memory_space<vmem>>, vector<8x32xf32>,
    %c0_i32_8 = arith.constant 0 : i32
    %9 = arith.cmpi eq, %arg2, %c0_i32_8 : i32
    %10 = arith.extui %9 : i1 to i32
    %c0_i32_9 = arith.constant 0 : i32
    %11 = arith.cmpi ne, %10, %c0_i32_9 : i32
    scf.if %11 {
      %c0_10 = arith.constant 0 : index
      %c0_11 = arith.constant 0 : index
      %12 = vector.load %arg7[%c0_10, %c0_11] : memref<8x32xf32, #tpu.memory_space<vmem>>, vector<8x32xf32>
      %c0_12 = arith.constant 0 : index
      %c0_13 = arith.constant 0 : index
      %13 = vector.load %arg5[%c0_12, %c0_13] : memref<8x1xf32, #tpu.memory_space<vmem>>, vector<8x1xf32>
      %14 = vector.broadcast %13 : vector<8x1xf32> to vector<8x32xf32>
      %15 = arith.addf %12, %14 : vector<8x32xf32>
      %16 = arith.truncf %15 : vector<8x32xf32> to vector<8x32xbf16>
      %c0_14 = arith.constant 0 : index
      %c0_15 = arith.constant 0 : index
      %17 = vector.load %arg6[%c0_14, %c0_15] : memref<8x32xbf16, #tpu.memory_space<vmem>>, vector<8x32xbf16>
      tpu.vector_store %arg6[%c0_14, %c0_15], %16 {strides = array<i32>} : memref<8x32xbf16, #tpu.memory_space<vmem>>, vector<8x32xbf16>,
    } else {
    }
    return
  }
  func.func @transform_0(%arg0: i32, %arg1: i32, %arg2: i32) -> (i32, i32) {
    %c0_i32 = arith.constant 0 : i32
    return %arg0, %arg2 : i32, i32
  }
  func.func @transform_1(%arg0: i32, %arg1: i32, %arg2: i32) -> (i32, i32) {
    %c0_i32 = arith.constant 0 : i32
    return %arg2, %arg1 : i32, i32
  }
  func.func @transform_2(%arg0: i32, %arg1: i32, %arg2: i32) -> (i32, i32) {
    %c0_i32 = arith.constant 0 : i32
    %c0_i32_0 = arith.constant 0 : i32
    return %arg0, %c0_i32 : i32, i32
  }
  func.func @transform_3(%arg0: i32, %arg1: i32, %arg2: i32) -> (i32, i32) {
    %c0_i32 = arith.constant 0 : i32
    return %arg0, %arg1 : i32, i32
  }
}

module attributes {stable_mosaic.version = 11 : i64} {
  func.func @_noise_adain_kernel(%arg0: i32, %arg1: memref<4x2x16xbf16, #tpu.memory_space<vmem>>, %arg2: memref<1x2x16xf32, #tpu.memory_space<vmem>>, %arg3: memref<3x4x2x1xf32, #tpu.memory_space<vmem>>, %arg4: memref<4x2x16xbf16, #tpu.memory_space<vmem>>) attributes {dimension_semantics = [#tpu.dimension_semantics<parallel>], iteration_bounds = array<i64: 2>, scalar_prefetch = 0 : i64, scratch_operands = 0 : i64, tpu.core_type = #tpu.core_type<tc>, window_params = [{transform_indices = @transform_0, window_bounds = array<i64: 4, 2, 16>}, {pipeline_mode = #tpu.pipeline_mode<synchronous>, transform_indices = @transform_1, window_bounds = array<i64: 1, 2, 16>}, {transform_indices = @transform_2, window_bounds = array<i64: 3, 4, 2, 1>}, {transform_indices = @transform_3, window_bounds = array<i64: 4, 2, 16>}]} {
    %c0 = arith.constant 0 : index
    %c0_0 = arith.constant 0 : index
    %c0_1 = arith.constant 0 : index
    %0 = vector.load %arg1[%c0, %c0_0, %c0_1] : memref<4x2x16xbf16, #tpu.memory_space<vmem>>, vector<4x2x16xbf16>
    %1 = arith.extf %0 : vector<4x2x16xbf16> to vector<4x2x16xf32>
    %c0_2 = arith.constant 0 : index
    %c0_3 = arith.constant 0 : index
    %c0_4 = arith.constant 0 : index
    %2 = vector.load %arg2[%c0_2, %c0_3, %c0_4] : memref<1x2x16xf32, #tpu.memory_space<vmem>>, vector<1x2x16xf32>
    %c0_5 = arith.constant 0 : index
    %c0_6 = arith.constant 0 : index
    %c0_7 = arith.constant 0 : index
    %c0_8 = arith.constant 0 : index
    %3 = vector.load %arg3[%c0_5, %c0_6, %c0_7, %c0_8] : memref<3x4x2x1xf32, #tpu.memory_space<vmem>>, vector<3x4x2x1xf32>
    %4 = vector.extract_strided_slice %3 {offsets = [0, 0, 0, 0], sizes = [1, 4, 2, 1], strides = [1, 1, 1, 1]} : vector<3x4x2x1xf32> to vector<1x4x2x1xf32>
    %5 = vector.shape_cast %4 : vector<1x4x2x1xf32> to vector<4x2x1xf32>
    %6 = vector.extract_strided_slice %3 {offsets = [1, 0, 0, 0], sizes = [1, 4, 2, 1], strides = [1, 1, 1, 1]} : vector<3x4x2x1xf32> to vector<1x4x2x1xf32>
    %7 = vector.shape_cast %6 : vector<1x4x2x1xf32> to vector<4x2x1xf32>
    %8 = vector.extract_strided_slice %3 {offsets = [2, 0, 0, 0], sizes = [1, 4, 2, 1], strides = [1, 1, 1, 1]} : vector<3x4x2x1xf32> to vector<1x4x2x1xf32>
    %9 = vector.shape_cast %8 : vector<1x4x2x1xf32> to vector<4x2x1xf32>
    %10 = vector.broadcast %5 : vector<4x2x1xf32> to vector<4x2x16xf32>
    %11 = vector.broadcast %2 : vector<1x2x16xf32> to vector<4x2x16xf32>
    %12 = arith.mulf %10, %11 : vector<4x2x16xf32>
    %13 = arith.addf %1, %12 : vector<4x2x16xf32>
    %cst = arith.constant 0.000000e+00 : f32
    %14 = vector.broadcast %cst : f32 to vector<4x2x16xf32>
    %15 = arith.cmpf oge, %13, %14 : vector<4x2x16xf32>
    %cst_9 = arith.constant 2.000000e-01 : f32
    %16 = vector.broadcast %cst_9 : f32 to vector<4x2x16xf32>
    %17 = arith.mulf %16, %13 : vector<4x2x16xf32>
    %18 = arith.select %15, %13, %17 : vector<4x2x16xi1>, vector<4x2x16xf32>
    %cst_10 = arith.constant dense<0.000000e+00> : vector<4x2xf32>
    %19 = vector.multi_reduction <add>, %18, %cst_10 [2] : vector<4x2x16xf32> to vector<4x2xf32>
    %20 = vector.shape_cast %19 : vector<4x2xf32> to vector<4x2x1xf32>
    %cst_11 = arith.constant 1.600000e+01 : f32
    %21 = vector.broadcast %cst_11 : f32 to vector<4x2x1xf32>
    %22 = arith.divf %20, %21 : vector<4x2x1xf32>
    %23 = vector.broadcast %22 : vector<4x2x1xf32> to vector<4x2x16xf32>
    %24 = arith.subf %18, %23 : vector<4x2x16xf32>
    %25 = arith.mulf %24, %24 : vector<4x2x16xf32>
    %cst_12 = arith.constant dense<0.000000e+00> : vector<4x2xf32>
    %26 = vector.multi_reduction <add>, %25, %cst_12 [2] : vector<4x2x16xf32> to vector<4x2xf32>
    %27 = vector.shape_cast %26 : vector<4x2xf32> to vector<4x2x1xf32>
    %cst_13 = arith.constant 1.600000e+01 : f32
    %28 = vector.broadcast %cst_13 : f32 to vector<4x2x1xf32>
    %29 = arith.divf %27, %28 : vector<4x2x1xf32>
    %cst_14 = arith.constant 9.99999974E-6 : f32
    %30 = vector.broadcast %cst_14 : f32 to vector<4x2x1xf32>
    %31 = arith.addf %29, %30 : vector<4x2x1xf32>
    %32 = math.rsqrt %31 : vector<4x2x1xf32>
    %33 = vector.broadcast %32 : vector<4x2x1xf32> to vector<4x2x16xf32>
    %34 = arith.mulf %24, %33 : vector<4x2x16xf32>
    %35 = vector.broadcast %7 : vector<4x2x1xf32> to vector<4x2x16xf32>
    %36 = arith.mulf %35, %34 : vector<4x2x16xf32>
    %37 = vector.broadcast %9 : vector<4x2x1xf32> to vector<4x2x16xf32>
    %38 = arith.addf %36, %37 : vector<4x2x16xf32>
    %39 = arith.truncf %38 : vector<4x2x16xf32> to vector<4x2x16xbf16>
    %c0_15 = arith.constant 0 : index
    %c0_16 = arith.constant 0 : index
    %c0_17 = arith.constant 0 : index
    %40 = vector.load %arg4[%c0_15, %c0_16, %c0_17] : memref<4x2x16xbf16, #tpu.memory_space<vmem>>, vector<4x2x16xbf16>
    tpu.vector_store %arg4[%c0_15, %c0_16, %c0_17], %39 {strides = array<i32>} : memref<4x2x16xbf16, #tpu.memory_space<vmem>>, vector<4x2x16xbf16>,
    return
  }
  func.func @transform_0(%arg0: i32) -> (i32, i32, i32) {
    %c0_i32 = arith.constant 0 : i32
    %c0_i32_0 = arith.constant 0 : i32
    %c0_i32_1 = arith.constant 0 : i32
    return %arg0, %c0_i32, %c0_i32_0 : i32, i32, i32
  }
  func.func @transform_1(%arg0: i32) -> (i32, i32, i32) {
    %c0_i32 = arith.constant 0 : i32
    %c0_i32_0 = arith.constant 0 : i32
    %c0_i32_1 = arith.constant 0 : i32
    %c0_i32_2 = arith.constant 0 : i32
    return %c0_i32, %c0_i32_0, %c0_i32_1 : i32, i32, i32
  }
  func.func @transform_2(%arg0: i32) -> (i32, i32, i32, i32) {
    %c0_i32 = arith.constant 0 : i32
    %c0_i32_0 = arith.constant 0 : i32
    %c0_i32_1 = arith.constant 0 : i32
    %c0_i32_2 = arith.constant 0 : i32
    return %c0_i32, %arg0, %c0_i32_0, %c0_i32_1 : i32, i32, i32, i32
  }
  func.func @transform_3(%arg0: i32) -> (i32, i32, i32) {
    %c0_i32 = arith.constant 0 : i32
    %c0_i32_0 = arith.constant 0 : i32
    %c0_i32_1 = arith.constant 0 : i32
    return %arg0, %c0_i32, %c0_i32_0 : i32, i32, i32
  }
}

module attributes {stable_mosaic.version = 11 : i64} {
  func.func @_matmul_bias_kernel(%arg0: i32, %arg1: i32, %arg2: i32, %arg3: memref<8x72xbf16, #tpu.memory_space<vmem>>, %arg4: memref<72x128xbf16, #tpu.memory_space<vmem>>, %arg5: memref<8x1xf32, #tpu.memory_space<vmem>>, %arg6: memref<8x128xbf16, #tpu.memory_space<vmem>>, %arg7: memref<8x128xf32, #tpu.memory_space<vmem>>) attributes {dimension_semantics = [#tpu.dimension_semantics<parallel>, #tpu.dimension_semantics<parallel>, #tpu.dimension_semantics<arbitrary>], iteration_bounds = array<i64: 1, 1, 1>, scalar_prefetch = 0 : i64, scratch_operands = 1 : i64, tpu.core_type = #tpu.core_type<tc>, window_params = [{transform_indices = @transform_0, window_bounds = array<i64: 8, 72>}, {transform_indices = @transform_1, window_bounds = array<i64: 72, 128>}, {transform_indices = @transform_2, window_bounds = array<i64: 8, 1>}, {transform_indices = @transform_3, window_bounds = array<i64: 8, 128>}]} {
    %c0_i32 = arith.constant 0 : i32
    %0 = arith.cmpi eq, %arg2, %c0_i32 : i32
    %1 = arith.extui %0 : i1 to i32
    %c0_i32_0 = arith.constant 0 : i32
    %2 = arith.cmpi ne, %1, %c0_i32_0 : i32
    scf.if %2 {
      %cst_10 = arith.constant 0.000000e+00 : f32
      %12 = vector.broadcast %cst_10 : f32 to vector<8x128xf32>
      %c0_11 = arith.constant 0 : index
      %c0_12 = arith.constant 0 : index
      %13 = vector.load %arg7[%c0_11, %c0_12] : memref<8x128xf32, #tpu.memory_space<vmem>>, vector<8x128xf32>
      tpu.vector_store %arg7[%c0_11, %c0_12], %12 {strides = array<i32>} : memref<8x128xf32, #tpu.memory_space<vmem>>, vector<8x128xf32>,
    } else {
    }
    %c0 = arith.constant 0 : index
    %c0_1 = arith.constant 0 : index
    %3 = vector.load %arg7[%c0, %c0_1] : memref<8x128xf32, #tpu.memory_space<vmem>>, vector<8x128xf32>
    %c0_2 = arith.constant 0 : index
    %c0_3 = arith.constant 0 : index
    %4 = vector.load %arg3[%c0_2, %c0_3] : memref<8x72xbf16, #tpu.memory_space<vmem>>, vector<8x72xbf16>
    %c0_4 = arith.constant 0 : index
    %c0_5 = arith.constant 0 : index
    %5 = vector.load %arg4[%c0_4, %c0_5] : memref<72x128xbf16, #tpu.memory_space<vmem>>, vector<72x128xbf16>
    %cst = arith.constant dense<0.000000e+00> : vector<8x128xf32>
    %6 = tpu.matmul %4, %5, %cst {dimension_numbers = #tpu.dot_dimension_numbers<[1], [0], [0], [1], [0, 0, 1, 1], [], []>} : vector<8x72xbf16>, vector<72x128xbf16>, vector<8x128xf32> -> vector<8x128xf32>
    %7 = arith.addf %3, %6 : vector<8x128xf32>
    %c0_6 = arith.constant 0 : index
    %c0_7 = arith.constant 0 : index
    %8 = vector.load %arg7[%c0_6, %c0_7] : memref<8x128xf32, #tpu.memory_space<vmem>>, vector<8x128xf32>
    tpu.vector_store %arg7[%c0_6, %c0_7], %7 {strides = array<i32>} : memref<8x128xf32, #tpu.memory_space<vmem>>, vector<8x128xf32>,
    %c0_i32_8 = arith.constant 0 : i32
    %9 = arith.cmpi eq, %arg2, %c0_i32_8 : i32
    %10 = arith.extui %9 : i1 to i32
    %c0_i32_9 = arith.constant 0 : i32
    %11 = arith.cmpi ne, %10, %c0_i32_9 : i32
    scf.if %11 {
      %c0_10 = arith.constant 0 : index
      %c0_11 = arith.constant 0 : index
      %12 = vector.load %arg7[%c0_10, %c0_11] : memref<8x128xf32, #tpu.memory_space<vmem>>, vector<8x128xf32>
      %c0_12 = arith.constant 0 : index
      %c0_13 = arith.constant 0 : index
      %13 = vector.load %arg5[%c0_12, %c0_13] : memref<8x1xf32, #tpu.memory_space<vmem>>, vector<8x1xf32>
      %14 = vector.broadcast %13 : vector<8x1xf32> to vector<8x128xf32>
      %15 = arith.addf %12, %14 : vector<8x128xf32>
      %16 = arith.truncf %15 : vector<8x128xf32> to vector<8x128xbf16>
      %c0_14 = arith.constant 0 : index
      %c0_15 = arith.constant 0 : index
      %17 = vector.load %arg6[%c0_14, %c0_15] : memref<8x128xbf16, #tpu.memory_space<vmem>>, vector<8x128xbf16>
      tpu.vector_store %arg6[%c0_14, %c0_15], %16 {strides = array<i32>} : memref<8x128xbf16, #tpu.memory_space<vmem>>, vector<8x128xbf16>,
    } else {
    }
    return
  }
  func.func @transform_0(%arg0: i32, %arg1: i32, %arg2: i32) -> (i32, i32) {
    %c0_i32 = arith.constant 0 : i32
    return %arg0, %arg2 : i32, i32
  }
  func.func @transform_1(%arg0: i32, %arg1: i32, %arg2: i32) -> (i32, i32) {
    %c0_i32 = arith.constant 0 : i32
    return %arg2, %arg1 : i32, i32
  }
  func.func @transform_2(%arg0: i32, %arg1: i32, %arg2: i32) -> (i32, i32) {
    %c0_i32 = arith.constant 0 : i32
    %c0_i32_0 = arith.constant 0 : i32
    return %arg0, %c0_i32 : i32, i32
  }
  func.func @transform_3(%arg0: i32, %arg1: i32, %arg2: i32) -> (i32, i32) {
    %c0_i32 = arith.constant 0 : i32
    return %arg0, %arg1 : i32, i32
  }
}

module attributes {stable_mosaic.version = 11 : i64} {
  func.func @_noise_adain_kernel(%arg0: i32, %arg1: memref<4x2x64xbf16, #tpu.memory_space<vmem>>, %arg2: memref<1x2x64xf32, #tpu.memory_space<vmem>>, %arg3: memref<3x4x2x1xf32, #tpu.memory_space<vmem>>, %arg4: memref<4x2x64xbf16, #tpu.memory_space<vmem>>) attributes {dimension_semantics = [#tpu.dimension_semantics<parallel>], iteration_bounds = array<i64: 2>, scalar_prefetch = 0 : i64, scratch_operands = 0 : i64, tpu.core_type = #tpu.core_type<tc>, window_params = [{transform_indices = @transform_0, window_bounds = array<i64: 4, 2, 64>}, {pipeline_mode = #tpu.pipeline_mode<synchronous>, transform_indices = @transform_1, window_bounds = array<i64: 1, 2, 64>}, {transform_indices = @transform_2, window_bounds = array<i64: 3, 4, 2, 1>}, {transform_indices = @transform_3, window_bounds = array<i64: 4, 2, 64>}]} {
    %c0 = arith.constant 0 : index
    %c0_0 = arith.constant 0 : index
    %c0_1 = arith.constant 0 : index
    %0 = vector.load %arg1[%c0, %c0_0, %c0_1] : memref<4x2x64xbf16, #tpu.memory_space<vmem>>, vector<4x2x64xbf16>
    %1 = arith.extf %0 : vector<4x2x64xbf16> to vector<4x2x64xf32>
    %c0_2 = arith.constant 0 : index
    %c0_3 = arith.constant 0 : index
    %c0_4 = arith.constant 0 : index
    %2 = vector.load %arg2[%c0_2, %c0_3, %c0_4] : memref<1x2x64xf32, #tpu.memory_space<vmem>>, vector<1x2x64xf32>
    %c0_5 = arith.constant 0 : index
    %c0_6 = arith.constant 0 : index
    %c0_7 = arith.constant 0 : index
    %c0_8 = arith.constant 0 : index
    %3 = vector.load %arg3[%c0_5, %c0_6, %c0_7, %c0_8] : memref<3x4x2x1xf32, #tpu.memory_space<vmem>>, vector<3x4x2x1xf32>
    %4 = vector.extract_strided_slice %3 {offsets = [0, 0, 0, 0], sizes = [1, 4, 2, 1], strides = [1, 1, 1, 1]} : vector<3x4x2x1xf32> to vector<1x4x2x1xf32>
    %5 = vector.shape_cast %4 : vector<1x4x2x1xf32> to vector<4x2x1xf32>
    %6 = vector.extract_strided_slice %3 {offsets = [1, 0, 0, 0], sizes = [1, 4, 2, 1], strides = [1, 1, 1, 1]} : vector<3x4x2x1xf32> to vector<1x4x2x1xf32>
    %7 = vector.shape_cast %6 : vector<1x4x2x1xf32> to vector<4x2x1xf32>
    %8 = vector.extract_strided_slice %3 {offsets = [2, 0, 0, 0], sizes = [1, 4, 2, 1], strides = [1, 1, 1, 1]} : vector<3x4x2x1xf32> to vector<1x4x2x1xf32>
    %9 = vector.shape_cast %8 : vector<1x4x2x1xf32> to vector<4x2x1xf32>
    %10 = vector.broadcast %5 : vector<4x2x1xf32> to vector<4x2x64xf32>
    %11 = vector.broadcast %2 : vector<1x2x64xf32> to vector<4x2x64xf32>
    %12 = arith.mulf %10, %11 : vector<4x2x64xf32>
    %13 = arith.addf %1, %12 : vector<4x2x64xf32>
    %cst = arith.constant 0.000000e+00 : f32
    %14 = vector.broadcast %cst : f32 to vector<4x2x64xf32>
    %15 = arith.cmpf oge, %13, %14 : vector<4x2x64xf32>
    %cst_9 = arith.constant 2.000000e-01 : f32
    %16 = vector.broadcast %cst_9 : f32 to vector<4x2x64xf32>
    %17 = arith.mulf %16, %13 : vector<4x2x64xf32>
    %18 = arith.select %15, %13, %17 : vector<4x2x64xi1>, vector<4x2x64xf32>
    %cst_10 = arith.constant dense<0.000000e+00> : vector<4x2xf32>
    %19 = vector.multi_reduction <add>, %18, %cst_10 [2] : vector<4x2x64xf32> to vector<4x2xf32>
    %20 = vector.shape_cast %19 : vector<4x2xf32> to vector<4x2x1xf32>
    %cst_11 = arith.constant 6.400000e+01 : f32
    %21 = vector.broadcast %cst_11 : f32 to vector<4x2x1xf32>
    %22 = arith.divf %20, %21 : vector<4x2x1xf32>
    %23 = vector.broadcast %22 : vector<4x2x1xf32> to vector<4x2x64xf32>
    %24 = arith.subf %18, %23 : vector<4x2x64xf32>
    %25 = arith.mulf %24, %24 : vector<4x2x64xf32>
    %cst_12 = arith.constant dense<0.000000e+00> : vector<4x2xf32>
    %26 = vector.multi_reduction <add>, %25, %cst_12 [2] : vector<4x2x64xf32> to vector<4x2xf32>
    %27 = vector.shape_cast %26 : vector<4x2xf32> to vector<4x2x1xf32>
    %cst_13 = arith.constant 6.400000e+01 : f32
    %28 = vector.broadcast %cst_13 : f32 to vector<4x2x1xf32>
    %29 = arith.divf %27, %28 : vector<4x2x1xf32>
    %cst_14 = arith.constant 9.99999974E-6 : f32
    %30 = vector.broadcast %cst_14 : f32 to vector<4x2x1xf32>
    %31 = arith.addf %29, %30 : vector<4x2x1xf32>
    %32 = math.rsqrt %31 : vector<4x2x1xf32>
    %33 = vector.broadcast %32 : vector<4x2x1xf32> to vector<4x2x64xf32>
    %34 = arith.mulf %24, %33 : vector<4x2x64xf32>
    %35 = vector.broadcast %7 : vector<4x2x1xf32> to vector<4x2x64xf32>
    %36 = arith.mulf %35, %34 : vector<4x2x64xf32>
    %37 = vector.broadcast %9 : vector<4x2x1xf32> to vector<4x2x64xf32>
    %38 = arith.addf %36, %37 : vector<4x2x64xf32>
    %39 = arith.truncf %38 : vector<4x2x64xf32> to vector<4x2x64xbf16>
    %c0_15 = arith.constant 0 : index
    %c0_16 = arith.constant 0 : index
    %c0_17 = arith.constant 0 : index
    %40 = vector.load %arg4[%c0_15, %c0_16, %c0_17] : memref<4x2x64xbf16, #tpu.memory_space<vmem>>, vector<4x2x64xbf16>
    tpu.vector_store %arg4[%c0_15, %c0_16, %c0_17], %39 {strides = array<i32>} : memref<4x2x64xbf16, #tpu.memory_space<vmem>>, vector<4x2x64xbf16>,
    return
  }
  func.func @transform_0(%arg0: i32) -> (i32, i32, i32) {
    %c0_i32 = arith.constant 0 : i32
    %c0_i32_0 = arith.constant 0 : i32
    %c0_i32_1 = arith.constant 0 : i32
    return %arg0, %c0_i32, %c0_i32_0 : i32, i32, i32
  }
  func.func @transform_1(%arg0: i32) -> (i32, i32, i32) {
    %c0_i32 = arith.constant 0 : i32
    %c0_i32_0 = arith.constant 0 : i32
    %c0_i32_1 = arith.constant 0 : i32
    %c0_i32_2 = arith.constant 0 : i32
    return %c0_i32, %c0_i32_0, %c0_i32_1 : i32, i32, i32
  }
  func.func @transform_2(%arg0: i32) -> (i32, i32, i32, i32) {
    %c0_i32 = arith.constant 0 : i32
    %c0_i32_0 = arith.constant 0 : i32
    %c0_i32_1 = arith.constant 0 : i32
    %c0_i32_2 = arith.constant 0 : i32
    return %c0_i32, %arg0, %c0_i32_0, %c0_i32_1 : i32, i32, i32, i32
  }
  func.func @transform_3(%arg0: i32) -> (i32, i32, i32) {
    %c0_i32 = arith.constant 0 : i32
    %c0_i32_0 = arith.constant 0 : i32
    %c0_i32_1 = arith.constant 0 : i32
    return %arg0, %c0_i32, %c0_i32_0 : i32, i32, i32
  }
}

module attributes {stable_mosaic.version = 11 : i64} {
  func.func @_matmul_bias_kernel(%arg0: i32, %arg1: i32, %arg2: i32, %arg3: memref<4x72xbf16, #tpu.memory_space<vmem>>, %arg4: memref<72x512xbf16, #tpu.memory_space<vmem>>, %arg5: memref<4x1xf32, #tpu.memory_space<vmem>>, %arg6: memref<4x512xbf16, #tpu.memory_space<vmem>>, %arg7: memref<4x512xf32, #tpu.memory_space<vmem>>) attributes {dimension_semantics = [#tpu.dimension_semantics<parallel>, #tpu.dimension_semantics<parallel>, #tpu.dimension_semantics<arbitrary>], iteration_bounds = array<i64: 1, 1, 1>, scalar_prefetch = 0 : i64, scratch_operands = 1 : i64, tpu.core_type = #tpu.core_type<tc>, window_params = [{transform_indices = @transform_0, window_bounds = array<i64: 4, 72>}, {transform_indices = @transform_1, window_bounds = array<i64: 72, 512>}, {transform_indices = @transform_2, window_bounds = array<i64: 4, 1>}, {transform_indices = @transform_3, window_bounds = array<i64: 4, 512>}]} {
    %c0_i32 = arith.constant 0 : i32
    %0 = arith.cmpi eq, %arg2, %c0_i32 : i32
    %1 = arith.extui %0 : i1 to i32
    %c0_i32_0 = arith.constant 0 : i32
    %2 = arith.cmpi ne, %1, %c0_i32_0 : i32
    scf.if %2 {
      %cst_10 = arith.constant 0.000000e+00 : f32
      %12 = vector.broadcast %cst_10 : f32 to vector<4x512xf32>
      %c0_11 = arith.constant 0 : index
      %c0_12 = arith.constant 0 : index
      %13 = vector.load %arg7[%c0_11, %c0_12] : memref<4x512xf32, #tpu.memory_space<vmem>>, vector<4x512xf32>
      tpu.vector_store %arg7[%c0_11, %c0_12], %12 {strides = array<i32>} : memref<4x512xf32, #tpu.memory_space<vmem>>, vector<4x512xf32>,
    } else {
    }
    %c0 = arith.constant 0 : index
    %c0_1 = arith.constant 0 : index
    %3 = vector.load %arg7[%c0, %c0_1] : memref<4x512xf32, #tpu.memory_space<vmem>>, vector<4x512xf32>
    %c0_2 = arith.constant 0 : index
    %c0_3 = arith.constant 0 : index
    %4 = vector.load %arg3[%c0_2, %c0_3] : memref<4x72xbf16, #tpu.memory_space<vmem>>, vector<4x72xbf16>
    %c0_4 = arith.constant 0 : index
    %c0_5 = arith.constant 0 : index
    %5 = vector.load %arg4[%c0_4, %c0_5] : memref<72x512xbf16, #tpu.memory_space<vmem>>, vector<72x512xbf16>
    %cst = arith.constant dense<0.000000e+00> : vector<4x512xf32>
    %6 = tpu.matmul %4, %5, %cst {dimension_numbers = #tpu.dot_dimension_numbers<[1], [0], [0], [1], [0, 0, 1, 1], [], []>} : vector<4x72xbf16>, vector<72x512xbf16>, vector<4x512xf32> -> vector<4x512xf32>
    %7 = arith.addf %3, %6 : vector<4x512xf32>
    %c0_6 = arith.constant 0 : index
    %c0_7 = arith.constant 0 : index
    %8 = vector.load %arg7[%c0_6, %c0_7] : memref<4x512xf32, #tpu.memory_space<vmem>>, vector<4x512xf32>
    tpu.vector_store %arg7[%c0_6, %c0_7], %7 {strides = array<i32>} : memref<4x512xf32, #tpu.memory_space<vmem>>, vector<4x512xf32>,
    %c0_i32_8 = arith.constant 0 : i32
    %9 = arith.cmpi eq, %arg2, %c0_i32_8 : i32
    %10 = arith.extui %9 : i1 to i32
    %c0_i32_9 = arith.constant 0 : i32
    %11 = arith.cmpi ne, %10, %c0_i32_9 : i32
    scf.if %11 {
      %c0_10 = arith.constant 0 : index
      %c0_11 = arith.constant 0 : index
      %12 = vector.load %arg7[%c0_10, %c0_11] : memref<4x512xf32, #tpu.memory_space<vmem>>, vector<4x512xf32>
      %c0_12 = arith.constant 0 : index
      %c0_13 = arith.constant 0 : index
      %13 = vector.load %arg5[%c0_12, %c0_13] : memref<4x1xf32, #tpu.memory_space<vmem>>, vector<4x1xf32>
      %14 = vector.broadcast %13 : vector<4x1xf32> to vector<4x512xf32>
      %15 = arith.addf %12, %14 : vector<4x512xf32>
      %16 = arith.truncf %15 : vector<4x512xf32> to vector<4x512xbf16>
      %c0_14 = arith.constant 0 : index
      %c0_15 = arith.constant 0 : index
      %17 = vector.load %arg6[%c0_14, %c0_15] : memref<4x512xbf16, #tpu.memory_space<vmem>>, vector<4x512xbf16>
      tpu.vector_store %arg6[%c0_14, %c0_15], %16 {strides = array<i32>} : memref<4x512xbf16, #tpu.memory_space<vmem>>, vector<4x512xbf16>,
    } else {
    }
    return
  }
  func.func @transform_0(%arg0: i32, %arg1: i32, %arg2: i32) -> (i32, i32) {
    %c0_i32 = arith.constant 0 : i32
    return %arg0, %arg2 : i32, i32
  }
  func.func @transform_1(%arg0: i32, %arg1: i32, %arg2: i32) -> (i32, i32) {
    %c0_i32 = arith.constant 0 : i32
    return %arg2, %arg1 : i32, i32
  }
  func.func @transform_2(%arg0: i32, %arg1: i32, %arg2: i32) -> (i32, i32) {
    %c0_i32 = arith.constant 0 : i32
    %c0_i32_0 = arith.constant 0 : i32
    return %arg0, %c0_i32 : i32, i32
  }
  func.func @transform_3(%arg0: i32, %arg1: i32, %arg2: i32) -> (i32, i32) {
    %c0_i32 = arith.constant 0 : i32
    return %arg0, %arg1 : i32, i32
  }
}

module attributes {stable_mosaic.version = 11 : i64} {
  func.func @_matmul_bias_kernel(%arg0: i32, %arg1: i32, %arg2: i32, %arg3: memref<2x32xbf16, #tpu.memory_space<vmem>>, %arg4: memref<32x8xbf16, #tpu.memory_space<vmem>>, %arg5: memref<1x8xf32, #tpu.memory_space<vmem>>, %arg6: memref<2x8xf32, #tpu.memory_space<vmem>>, %arg7: memref<2x8xf32, #tpu.memory_space<vmem>>) attributes {dimension_semantics = [#tpu.dimension_semantics<parallel>, #tpu.dimension_semantics<parallel>, #tpu.dimension_semantics<arbitrary>], iteration_bounds = array<i64: 1, 1, 1>, scalar_prefetch = 0 : i64, scratch_operands = 1 : i64, tpu.core_type = #tpu.core_type<tc>, window_params = [{transform_indices = @transform_0, window_bounds = array<i64: 2, 32>}, {transform_indices = @transform_1, window_bounds = array<i64: 32, 8>}, {transform_indices = @transform_2, window_bounds = array<i64: 1, 8>}, {transform_indices = @transform_3, window_bounds = array<i64: 2, 8>}]} {
    %c0_i32 = arith.constant 0 : i32
    %0 = arith.cmpi eq, %arg2, %c0_i32 : i32
    %1 = arith.extui %0 : i1 to i32
    %c0_i32_0 = arith.constant 0 : i32
    %2 = arith.cmpi ne, %1, %c0_i32_0 : i32
    scf.if %2 {
      %cst_10 = arith.constant 0.000000e+00 : f32
      %12 = vector.broadcast %cst_10 : f32 to vector<2x8xf32>
      %c0_11 = arith.constant 0 : index
      %c0_12 = arith.constant 0 : index
      %13 = vector.load %arg7[%c0_11, %c0_12] : memref<2x8xf32, #tpu.memory_space<vmem>>, vector<2x8xf32>
      tpu.vector_store %arg7[%c0_11, %c0_12], %12 {strides = array<i32>} : memref<2x8xf32, #tpu.memory_space<vmem>>, vector<2x8xf32>,
    } else {
    }
    %c0 = arith.constant 0 : index
    %c0_1 = arith.constant 0 : index
    %3 = vector.load %arg7[%c0, %c0_1] : memref<2x8xf32, #tpu.memory_space<vmem>>, vector<2x8xf32>
    %c0_2 = arith.constant 0 : index
    %c0_3 = arith.constant 0 : index
    %4 = vector.load %arg3[%c0_2, %c0_3] : memref<2x32xbf16, #tpu.memory_space<vmem>>, vector<2x32xbf16>
    %c0_4 = arith.constant 0 : index
    %c0_5 = arith.constant 0 : index
    %5 = vector.load %arg4[%c0_4, %c0_5] : memref<32x8xbf16, #tpu.memory_space<vmem>>, vector<32x8xbf16>
    %cst = arith.constant dense<0.000000e+00> : vector<2x8xf32>
    %6 = tpu.matmul %4, %5, %cst {dimension_numbers = #tpu.dot_dimension_numbers<[1], [0], [0], [1], [0, 0, 1, 1], [], []>} : vector<2x32xbf16>, vector<32x8xbf16>, vector<2x8xf32> -> vector<2x8xf32>
    %7 = arith.addf %3, %6 : vector<2x8xf32>
    %c0_6 = arith.constant 0 : index
    %c0_7 = arith.constant 0 : index
    %8 = vector.load %arg7[%c0_6, %c0_7] : memref<2x8xf32, #tpu.memory_space<vmem>>, vector<2x8xf32>
    tpu.vector_store %arg7[%c0_6, %c0_7], %7 {strides = array<i32>} : memref<2x8xf32, #tpu.memory_space<vmem>>, vector<2x8xf32>,
    %c0_i32_8 = arith.constant 0 : i32
    %9 = arith.cmpi eq, %arg2, %c0_i32_8 : i32
    %10 = arith.extui %9 : i1 to i32
    %c0_i32_9 = arith.constant 0 : i32
    %11 = arith.cmpi ne, %10, %c0_i32_9 : i32
    scf.if %11 {
      %c0_10 = arith.constant 0 : index
      %c0_11 = arith.constant 0 : index
      %12 = vector.load %arg7[%c0_10, %c0_11] : memref<2x8xf32, #tpu.memory_space<vmem>>, vector<2x8xf32>
      %c0_12 = arith.constant 0 : index
      %c0_13 = arith.constant 0 : index
      %13 = vector.load %arg5[%c0_12, %c0_13] : memref<1x8xf32, #tpu.memory_space<vmem>>, vector<1x8xf32>
      %14 = vector.broadcast %13 : vector<1x8xf32> to vector<2x8xf32>
      %15 = arith.addf %12, %14 : vector<2x8xf32>
      %c0_14 = arith.constant 0 : index
      %c0_15 = arith.constant 0 : index
      %16 = vector.load %arg6[%c0_14, %c0_15] : memref<2x8xf32, #tpu.memory_space<vmem>>, vector<2x8xf32>
      tpu.vector_store %arg6[%c0_14, %c0_15], %15 {strides = array<i32>} : memref<2x8xf32, #tpu.memory_space<vmem>>, vector<2x8xf32>,
    } else {
    }
    return
  }
  func.func @transform_0(%arg0: i32, %arg1: i32, %arg2: i32) -> (i32, i32) {
    %c0_i32 = arith.constant 0 : i32
    return %arg0, %arg2 : i32, i32
  }
  func.func @transform_1(%arg0: i32, %arg1: i32, %arg2: i32) -> (i32, i32) {
    %c0_i32 = arith.constant 0 : i32
    return %arg2, %arg1 : i32, i32
  }
  func.func @transform_2(%arg0: i32, %arg1: i32, %arg2: i32) -> (i32, i32) {
    %c0_i32 = arith.constant 0 : i32
    %c0_i32_0 = arith.constant 0 : i32
    return %c0_i32, %arg1 : i32, i32
  }
  func.func @transform_3(%arg0: i32, %arg1: i32, %arg2: i32) -> (i32, i32) {
    %c0_i32 = arith.constant 0 : i32
    return %arg0, %arg1 : i32, i32
  }
}

module attributes {stable_mosaic.version = 11 : i64} {
  func.func @_noise_adain_kernel(%arg0: i32, %arg1: memref<2x2x256xbf16, #tpu.memory_space<vmem>>, %arg2: memref<1x2x256xf32, #tpu.memory_space<vmem>>, %arg3: memref<3x2x2x1xf32, #tpu.memory_space<vmem>>, %arg4: memref<2x2x256xbf16, #tpu.memory_space<vmem>>) attributes {dimension_semantics = [#tpu.dimension_semantics<parallel>], iteration_bounds = array<i64: 2>, scalar_prefetch = 0 : i64, scratch_operands = 0 : i64, tpu.core_type = #tpu.core_type<tc>, window_params = [{transform_indices = @transform_0, window_bounds = array<i64: 2, 2, 256>}, {pipeline_mode = #tpu.pipeline_mode<synchronous>, transform_indices = @transform_1, window_bounds = array<i64: 1, 2, 256>}, {transform_indices = @transform_2, window_bounds = array<i64: 3, 2, 2, 1>}, {transform_indices = @transform_3, window_bounds = array<i64: 2, 2, 256>}]} {
    %c0 = arith.constant 0 : index
    %c0_0 = arith.constant 0 : index
    %c0_1 = arith.constant 0 : index
    %0 = vector.load %arg1[%c0, %c0_0, %c0_1] : memref<2x2x256xbf16, #tpu.memory_space<vmem>>, vector<2x2x256xbf16>
    %1 = arith.extf %0 : vector<2x2x256xbf16> to vector<2x2x256xf32>
    %c0_2 = arith.constant 0 : index
    %c0_3 = arith.constant 0 : index
    %c0_4 = arith.constant 0 : index
    %2 = vector.load %arg2[%c0_2, %c0_3, %c0_4] : memref<1x2x256xf32, #tpu.memory_space<vmem>>, vector<1x2x256xf32>
    %c0_5 = arith.constant 0 : index
    %c0_6 = arith.constant 0 : index
    %c0_7 = arith.constant 0 : index
    %c0_8 = arith.constant 0 : index
    %3 = vector.load %arg3[%c0_5, %c0_6, %c0_7, %c0_8] : memref<3x2x2x1xf32, #tpu.memory_space<vmem>>, vector<3x2x2x1xf32>
    %4 = vector.extract_strided_slice %3 {offsets = [0, 0, 0, 0], sizes = [1, 2, 2, 1], strides = [1, 1, 1, 1]} : vector<3x2x2x1xf32> to vector<1x2x2x1xf32>
    %5 = vector.shape_cast %4 : vector<1x2x2x1xf32> to vector<2x2x1xf32>
    %6 = vector.extract_strided_slice %3 {offsets = [1, 0, 0, 0], sizes = [1, 2, 2, 1], strides = [1, 1, 1, 1]} : vector<3x2x2x1xf32> to vector<1x2x2x1xf32>
    %7 = vector.shape_cast %6 : vector<1x2x2x1xf32> to vector<2x2x1xf32>
    %8 = vector.extract_strided_slice %3 {offsets = [2, 0, 0, 0], sizes = [1, 2, 2, 1], strides = [1, 1, 1, 1]} : vector<3x2x2x1xf32> to vector<1x2x2x1xf32>
    %9 = vector.shape_cast %8 : vector<1x2x2x1xf32> to vector<2x2x1xf32>
    %10 = vector.broadcast %5 : vector<2x2x1xf32> to vector<2x2x256xf32>
    %11 = vector.broadcast %2 : vector<1x2x256xf32> to vector<2x2x256xf32>
    %12 = arith.mulf %10, %11 : vector<2x2x256xf32>
    %13 = arith.addf %1, %12 : vector<2x2x256xf32>
    %cst = arith.constant 0.000000e+00 : f32
    %14 = vector.broadcast %cst : f32 to vector<2x2x256xf32>
    %15 = arith.cmpf oge, %13, %14 : vector<2x2x256xf32>
    %cst_9 = arith.constant 2.000000e-01 : f32
    %16 = vector.broadcast %cst_9 : f32 to vector<2x2x256xf32>
    %17 = arith.mulf %16, %13 : vector<2x2x256xf32>
    %18 = arith.select %15, %13, %17 : vector<2x2x256xi1>, vector<2x2x256xf32>
    %cst_10 = arith.constant dense<0.000000e+00> : vector<2x2xf32>
    %19 = vector.multi_reduction <add>, %18, %cst_10 [2] : vector<2x2x256xf32> to vector<2x2xf32>
    %20 = vector.shape_cast %19 : vector<2x2xf32> to vector<2x2x1xf32>
    %cst_11 = arith.constant 2.560000e+02 : f32
    %21 = vector.broadcast %cst_11 : f32 to vector<2x2x1xf32>
    %22 = arith.divf %20, %21 : vector<2x2x1xf32>
    %23 = vector.broadcast %22 : vector<2x2x1xf32> to vector<2x2x256xf32>
    %24 = arith.subf %18, %23 : vector<2x2x256xf32>
    %25 = arith.mulf %24, %24 : vector<2x2x256xf32>
    %cst_12 = arith.constant dense<0.000000e+00> : vector<2x2xf32>
    %26 = vector.multi_reduction <add>, %25, %cst_12 [2] : vector<2x2x256xf32> to vector<2x2xf32>
    %27 = vector.shape_cast %26 : vector<2x2xf32> to vector<2x2x1xf32>
    %cst_13 = arith.constant 2.560000e+02 : f32
    %28 = vector.broadcast %cst_13 : f32 to vector<2x2x1xf32>
    %29 = arith.divf %27, %28 : vector<2x2x1xf32>
    %cst_14 = arith.constant 9.99999974E-6 : f32
    %30 = vector.broadcast %cst_14 : f32 to vector<2x2x1xf32>
    %31 = arith.addf %29, %30 : vector<2x2x1xf32>
    %32 = math.rsqrt %31 : vector<2x2x1xf32>
    %33 = vector.broadcast %32 : vector<2x2x1xf32> to vector<2x2x256xf32>
    %34 = arith.mulf %24, %33 : vector<2x2x256xf32>
    %35 = vector.broadcast %7 : vector<2x2x1xf32> to vector<2x2x256xf32>
    %36 = arith.mulf %35, %34 : vector<2x2x256xf32>
    %37 = vector.broadcast %9 : vector<2x2x1xf32> to vector<2x2x256xf32>
    %38 = arith.addf %36, %37 : vector<2x2x256xf32>
    %39 = arith.truncf %38 : vector<2x2x256xf32> to vector<2x2x256xbf16>
    %c0_15 = arith.constant 0 : index
    %c0_16 = arith.constant 0 : index
    %c0_17 = arith.constant 0 : index
    %40 = vector.load %arg4[%c0_15, %c0_16, %c0_17] : memref<2x2x256xbf16, #tpu.memory_space<vmem>>, vector<2x2x256xbf16>
    tpu.vector_store %arg4[%c0_15, %c0_16, %c0_17], %39 {strides = array<i32>} : memref<2x2x256xbf16, #tpu.memory_space<vmem>>, vector<2x2x256xbf16>,
    return
  }
  func.func @transform_0(%arg0: i32) -> (i32, i32, i32) {
    %c0_i32 = arith.constant 0 : i32
    %c0_i32_0 = arith.constant 0 : i32
    %c0_i32_1 = arith.constant 0 : i32
    return %arg0, %c0_i32, %c0_i32_0 : i32, i32, i32
  }
  func.func @transform_1(%arg0: i32) -> (i32, i32, i32) {
    %c0_i32 = arith.constant 0 : i32
    %c0_i32_0 = arith.constant 0 : i32
    %c0_i32_1 = arith.constant 0 : i32
    %c0_i32_2 = arith.constant 0 : i32
    return %c0_i32, %c0_i32_0, %c0_i32_1 : i32, i32, i32
  }
  func.func @transform_2(%arg0: i32) -> (i32, i32, i32, i32) {
    %c0_i32 = arith.constant 0 : i32
    %c0_i32_0 = arith.constant 0 : i32
    %c0_i32_1 = arith.constant 0 : i32
    %c0_i32_2 = arith.constant 0 : i32
    return %c0_i32, %arg0, %c0_i32_0, %c0_i32_1 : i32, i32, i32, i32
  }
  func.func @transform_3(%arg0: i32) -> (i32, i32, i32) {
    %c0_i32 = arith.constant 0 : i32
    %c0_i32_0 = arith.constant 0 : i32
    %c0_i32_1 = arith.constant 0 : i32
    return %arg0, %c0_i32, %c0_i32_0 : i32, i32, i32
  }
}

module attributes {stable_mosaic.version = 11 : i64} {
  func.func @_matmul_bias_kernel(%arg0: i32, %arg1: i32, %arg2: i32, %arg3: memref<4x36xbf16, #tpu.memory_space<vmem>>, %arg4: memref<36x512xbf16, #tpu.memory_space<vmem>>, %arg5: memref<4x1xf32, #tpu.memory_space<vmem>>, %arg6: memref<4x512xbf16, #tpu.memory_space<vmem>>, %arg7: memref<4x512xf32, #tpu.memory_space<vmem>>) attributes {dimension_semantics = [#tpu.dimension_semantics<parallel>, #tpu.dimension_semantics<parallel>, #tpu.dimension_semantics<arbitrary>], iteration_bounds = array<i64: 1, 1, 1>, scalar_prefetch = 0 : i64, scratch_operands = 1 : i64, tpu.core_type = #tpu.core_type<tc>, window_params = [{transform_indices = @transform_0, window_bounds = array<i64: 4, 36>}, {transform_indices = @transform_1, window_bounds = array<i64: 36, 512>}, {transform_indices = @transform_2, window_bounds = array<i64: 4, 1>}, {transform_indices = @transform_3, window_bounds = array<i64: 4, 512>}]} {
    %c0_i32 = arith.constant 0 : i32
    %0 = arith.cmpi eq, %arg2, %c0_i32 : i32
    %1 = arith.extui %0 : i1 to i32
    %c0_i32_0 = arith.constant 0 : i32
    %2 = arith.cmpi ne, %1, %c0_i32_0 : i32
    scf.if %2 {
      %cst_10 = arith.constant 0.000000e+00 : f32
      %12 = vector.broadcast %cst_10 : f32 to vector<4x512xf32>
      %c0_11 = arith.constant 0 : index
      %c0_12 = arith.constant 0 : index
      %13 = vector.load %arg7[%c0_11, %c0_12] : memref<4x512xf32, #tpu.memory_space<vmem>>, vector<4x512xf32>
      tpu.vector_store %arg7[%c0_11, %c0_12], %12 {strides = array<i32>} : memref<4x512xf32, #tpu.memory_space<vmem>>, vector<4x512xf32>,
    } else {
    }
    %c0 = arith.constant 0 : index
    %c0_1 = arith.constant 0 : index
    %3 = vector.load %arg7[%c0, %c0_1] : memref<4x512xf32, #tpu.memory_space<vmem>>, vector<4x512xf32>
    %c0_2 = arith.constant 0 : index
    %c0_3 = arith.constant 0 : index
    %4 = vector.load %arg3[%c0_2, %c0_3] : memref<4x36xbf16, #tpu.memory_space<vmem>>, vector<4x36xbf16>
    %c0_4 = arith.constant 0 : index
    %c0_5 = arith.constant 0 : index
    %5 = vector.load %arg4[%c0_4, %c0_5] : memref<36x512xbf16, #tpu.memory_space<vmem>>, vector<36x512xbf16>
    %cst = arith.constant dense<0.000000e+00> : vector<4x512xf32>
    %6 = tpu.matmul %4, %5, %cst {dimension_numbers = #tpu.dot_dimension_numbers<[1], [0], [0], [1], [0, 0, 1, 1], [], []>} : vector<4x36xbf16>, vector<36x512xbf16>, vector<4x512xf32> -> vector<4x512xf32>
    %7 = arith.addf %3, %6 : vector<4x512xf32>
    %c0_6 = arith.constant 0 : index
    %c0_7 = arith.constant 0 : index
    %8 = vector.load %arg7[%c0_6, %c0_7] : memref<4x512xf32, #tpu.memory_space<vmem>>, vector<4x512xf32>
    tpu.vector_store %arg7[%c0_6, %c0_7], %7 {strides = array<i32>} : memref<4x512xf32, #tpu.memory_space<vmem>>, vector<4x512xf32>,
    %c0_i32_8 = arith.constant 0 : i32
    %9 = arith.cmpi eq, %arg2, %c0_i32_8 : i32
    %10 = arith.extui %9 : i1 to i32
    %c0_i32_9 = arith.constant 0 : i32
    %11 = arith.cmpi ne, %10, %c0_i32_9 : i32
    scf.if %11 {
      %c0_10 = arith.constant 0 : index
      %c0_11 = arith.constant 0 : index
      %12 = vector.load %arg7[%c0_10, %c0_11] : memref<4x512xf32, #tpu.memory_space<vmem>>, vector<4x512xf32>
      %c0_12 = arith.constant 0 : index
      %c0_13 = arith.constant 0 : index
      %13 = vector.load %arg5[%c0_12, %c0_13] : memref<4x1xf32, #tpu.memory_space<vmem>>, vector<4x1xf32>
      %14 = vector.broadcast %13 : vector<4x1xf32> to vector<4x512xf32>
      %15 = arith.addf %12, %14 : vector<4x512xf32>
      %16 = arith.truncf %15 : vector<4x512xf32> to vector<4x512xbf16>
      %c0_14 = arith.constant 0 : index
      %c0_15 = arith.constant 0 : index
      %17 = vector.load %arg6[%c0_14, %c0_15] : memref<4x512xbf16, #tpu.memory_space<vmem>>, vector<4x512xbf16>
      tpu.vector_store %arg6[%c0_14, %c0_15], %16 {strides = array<i32>} : memref<4x512xbf16, #tpu.memory_space<vmem>>, vector<4x512xbf16>,
    } else {
    }
    return
  }
  func.func @transform_0(%arg0: i32, %arg1: i32, %arg2: i32) -> (i32, i32) {
    %c0_i32 = arith.constant 0 : i32
    return %arg0, %arg2 : i32, i32
  }
  func.func @transform_1(%arg0: i32, %arg1: i32, %arg2: i32) -> (i32, i32) {
    %c0_i32 = arith.constant 0 : i32
    return %arg2, %arg1 : i32, i32
  }
  func.func @transform_2(%arg0: i32, %arg1: i32, %arg2: i32) -> (i32, i32) {
    %c0_i32 = arith.constant 0 : i32
    %c0_i32_0 = arith.constant 0 : i32
    return %arg0, %c0_i32 : i32, i32
  }
  func.func @transform_3(%arg0: i32, %arg1: i32, %arg2: i32) -> (i32, i32) {
    %c0_i32 = arith.constant 0 : i32
    return %arg0, %arg1 : i32, i32
  }
}

module attributes {stable_mosaic.version = 11 : i64} {
  func.func @_rgb_fade_kernel(%arg0: i32, %arg1: memref<1x1xf32, #tpu.memory_space<vmem>>, %arg2: memref<8x512xbf16, #tpu.memory_space<vmem>>, %arg3: memref<4x512xbf16, #tpu.memory_space<vmem>>, %arg4: memref<3x8xbf16, #tpu.memory_space<vmem>>, %arg5: memref<3x1xf32, #tpu.memory_space<vmem>>, %arg6: memref<3x4xbf16, #tpu.memory_space<vmem>>, %arg7: memref<3x1xf32, #tpu.memory_space<vmem>>, %arg8: memref<3x512xf32, #tpu.memory_space<vmem>>) attributes {dimension_semantics = [#tpu.dimension_semantics<parallel>], iteration_bounds = array<i64: 1>, scalar_prefetch = 0 : i64, scratch_operands = 0 : i64, tpu.core_type = #tpu.core_type<tc>, window_params = [{pipeline_mode = #tpu.pipeline_mode<synchronous>, transform_indices = @transform_0, window_bounds = array<i64: 1, 1>}, {transform_indices = @transform_1, window_bounds = array<i64: 8, 512>}, {transform_indices = @transform_2, window_bounds = array<i64: 4, 512>}, {pipeline_mode = #tpu.pipeline_mode<synchronous>, transform_indices = @transform_3, window_bounds = array<i64: 3, 8>}, {pipeline_mode = #tpu.pipeline_mode<synchronous>, transform_indices = @transform_4, window_bounds = array<i64: 3, 1>}, {pipeline_mode = #tpu.pipeline_mode<synchronous>, transform_indices = @transform_5, window_bounds = array<i64: 3, 4>}, {pipeline_mode = #tpu.pipeline_mode<synchronous>, transform_indices = @transform_6, window_bounds = array<i64: 3, 1>}, {transform_indices = @transform_7, window_bounds = array<i64: 3, 512>}]} {
    %c0 = arith.constant 0 : index
    %c0_0 = arith.constant 0 : index
    %0 = vector.load %arg1[%c0, %c0_0] : memref<1x1xf32, #tpu.memory_space<vmem>>, vector<1x1xf32>
    %c0_1 = arith.constant 0 : index
    %c0_2 = arith.constant 0 : index
    %1 = vector.load %arg4[%c0_1, %c0_2] : memref<3x8xbf16, #tpu.memory_space<vmem>>, vector<3x8xbf16>
    %c0_3 = arith.constant 0 : index
    %c0_4 = arith.constant 0 : index
    %2 = vector.load %arg2[%c0_3, %c0_4] : memref<8x512xbf16, #tpu.memory_space<vmem>>, vector<8x512xbf16>
    %cst = arith.constant dense<0.000000e+00> : vector<3x512xf32>
    %3 = tpu.matmul %1, %2, %cst {dimension_numbers = #tpu.dot_dimension_numbers<[1], [0], [0], [1], [0, 0, 1, 1], [], []>} : vector<3x8xbf16>, vector<8x512xbf16>, vector<3x512xf32> -> vector<3x512xf32>
    %c0_5 = arith.constant 0 : index
    %c0_6 = arith.constant 0 : index
    %4 = vector.load %arg5[%c0_5, %c0_6] : memref<3x1xf32, #tpu.memory_space<vmem>>, vector<3x1xf32>
    %5 = vector.broadcast %4 : vector<3x1xf32> to vector<3x512xf32>
    %6 = arith.addf %3, %5 : vector<3x512xf32>
    %c0_7 = arith.constant 0 : index
    %c0_8 = arith.constant 0 : index
    %7 = vector.load %arg6[%c0_7, %c0_8] : memref<3x4xbf16, #tpu.memory_space<vmem>>, vector<3x4xbf16>
    %c0_9 = arith.constant 0 : index
    %c0_10 = arith.constant 0 : index
    %8 = vector.load %arg3[%c0_9, %c0_10] : memref<4x512xbf16, #tpu.memory_space<vmem>>, vector<4x512xbf16>
    %cst_11 = arith.constant dense<0.000000e+00> : vector<3x512xf32>
    %9 = tpu.matmul %7, %8, %cst_11 {dimension_numbers = #tpu.dot_dimension_numbers<[1], [0], [0], [1], [0, 0, 1, 1], [], []>} : vector<3x4xbf16>, vector<4x512xbf16>, vector<3x512xf32> -> vector<3x512xf32>
    %c0_12 = arith.constant 0 : index
    %c0_13 = arith.constant 0 : index
    %10 = vector.load %arg7[%c0_12, %c0_13] : memref<3x1xf32, #tpu.memory_space<vmem>>, vector<3x1xf32>
    %11 = vector.broadcast %10 : vector<3x1xf32> to vector<3x512xf32>
    %12 = arith.addf %9, %11 : vector<3x512xf32>
    %13 = vector.broadcast %0 : vector<1x1xf32> to vector<3x512xf32>
    %14 = arith.mulf %13, %6 : vector<3x512xf32>
    %cst_14 = arith.constant 1.000000e+00 : f32
    %15 = vector.broadcast %cst_14 : f32 to vector<1x1xf32>
    %16 = arith.subf %15, %0 : vector<1x1xf32>
    %17 = vector.broadcast %16 : vector<1x1xf32> to vector<3x512xf32>
    %18 = arith.mulf %17, %12 : vector<3x512xf32>
    %19 = arith.addf %14, %18 : vector<3x512xf32>
    %20 = math.tanh %19 : vector<3x512xf32>
    %c0_15 = arith.constant 0 : index
    %c0_16 = arith.constant 0 : index
    %21 = vector.load %arg8[%c0_15, %c0_16] : memref<3x512xf32, #tpu.memory_space<vmem>>, vector<3x512xf32>
    tpu.vector_store %arg8[%c0_15, %c0_16], %20 {strides = array<i32>} : memref<3x512xf32, #tpu.memory_space<vmem>>, vector<3x512xf32>,
    return
  }
  func.func @transform_0(%arg0: i32) -> (i32, i32) {
    %c0_i32 = arith.constant 0 : i32
    %c0_i32_0 = arith.constant 0 : i32
    %c0_i32_1 = arith.constant 0 : i32
    return %c0_i32, %c0_i32_0 : i32, i32
  }
  func.func @transform_1(%arg0: i32) -> (i32, i32) {
    %c0_i32 = arith.constant 0 : i32
    %c0_i32_0 = arith.constant 0 : i32
    return %c0_i32, %arg0 : i32, i32
  }
  func.func @transform_2(%arg0: i32) -> (i32, i32) {
    %c0_i32 = arith.constant 0 : i32
    %c0_i32_0 = arith.constant 0 : i32
    return %c0_i32, %arg0 : i32, i32
  }
  func.func @transform_3(%arg0: i32) -> (i32, i32) {
    %c0_i32 = arith.constant 0 : i32
    %c0_i32_0 = arith.constant 0 : i32
    %c0_i32_1 = arith.constant 0 : i32
    return %c0_i32, %c0_i32_0 : i32, i32
  }
  func.func @transform_4(%arg0: i32) -> (i32, i32) {
    %c0_i32 = arith.constant 0 : i32
    %c0_i32_0 = arith.constant 0 : i32
    %c0_i32_1 = arith.constant 0 : i32
    return %c0_i32, %c0_i32_0 : i32, i32
  }
  func.func @transform_5(%arg0: i32) -> (i32, i32) {
    %c0_i32 = arith.constant 0 : i32
    %c0_i32_0 = arith.constant 0 : i32
    %c0_i32_1 = arith.constant 0 : i32
    return %c0_i32, %c0_i32_0 : i32, i32
  }
  func.func @transform_6(%arg0: i32) -> (i32, i32) {
    %c0_i32 = arith.constant 0 : i32
    %c0_i32_0 = arith.constant 0 : i32
    %c0_i32_1 = arith.constant 0 : i32
    return %c0_i32, %c0_i32_0 : i32, i32
  }
  func.func @transform_7(%arg0: i32) -> (i32, i32) {
    %c0_i32 = arith.constant 0 : i32
    %c0_i32_0 = arith.constant 0 : i32
    return %c0_i32, %arg0 : i32, i32
  }
}

</mosaic_0001>

<bundles_post_ra>
// kernel: generator_forward.22
= control target key start
LH: loop header
LB: loop body
LE: loop exit
PB: predicated region body
PF: predicated region fallthrough
CT: control target
= control target key end

     0   :  { %vm19_vm0 = vcmask 123904   ;;  %v122_v0 = vmov 0.0   ;;  %vm123_vm1 = vmmov 0   ;;  %vm39_vm2 = vcmask 261120   ;;  %s162_s1 = inlined_call_operand.vmem [shape: bf16[32,16], index: 1, kind: input, shape index: {}]   ;;  %s163_s0 = inlined_call_operand.vmem [shape: bf16[2,32], index: 0, kind: input, shape index: {}]   ;;  %s164_s2 = inlined_call_operand.vmem [shape: f32[1,16], index: 2, kind: input, shape index: {}]   ;;  %s165_s3 = inlined_call_operand.vmem [shape: f32[2,16], index: 3, kind: output, shape index: {}]  }
   0x1   :  { %20 = vst.msk [vmem:[#allocation2] sm:$0x3] %vm19_vm0, %v122_v0  ;;  %110 = vmatprep.subr.bf16.mxu0 %v122_v0  ;;  %v120_v1 = vld [vmem:[%s162_s1] sm:$0xff]   ;;  %114 = vmatprep.mubr.msk.bf16.mxu0 %vm123_vm1, %v122_v0  ;;  %v121_v2 = vld [vmem:[%s162_s1 + $0x8] sm:$0xff]  }
   0x2   :  { %111 = vmatpush3.bf16.msra.mxu0 %v120_v1  ;;  %v22_v3 = vld [vmem:[%s163_s0] sm:$0x1] }
   0x3   :  { %112 = vmatprep.subr.bf16.mxu0 %v122_v0  ;;  %v106_v10 = vld [vmem:[%s164_s2] ss:$0 sm:$0xff] }
   0x6   :  { %113 = vmatpush3.bf16.msra.mxu0 %v121_v2 }
   0x8   :  { %v21_v4 = vld [vmem:[#allocation2] sm:$0x3] }
   0x9   :  { %115 = vmatmul.mubr.msk.bf16.vlgmr.msra.gmra.mrb[0].mxu0 %vm39_vm2, %v22_v3 }
  0xdc   :  { %v77_v5 = vpop.f32.mrb[0].mxu0 }
  0xdd   :  { %v83_v6 = vadd.f32 %v77_v5, %v21_v4  ;;  %v116_v7 = vpop.f32.mrb[1].mxu0 }
  0xde   :  { %v80_v8 = vpop.f32.mrb[2].mxu0 }
  0xdf   :  { %85 = vst.msk [vmem:[#allocation2] sm:$0x3] %vm19_vm0, %v83_v6  ;;  %v117_v9 = vpop.f32.mrb[3].mxu0 }
  0xe6   :  { %v89_v11 = vld [vmem:[#allocation2] sm:$0x3] }
  0xe7   :  { %v97_v12 = vadd.f32 %v106_v10, %v89_v11 }
  0xe9   :  { %98 = vst.msk [vmem:[%s165_s3] sm:$0x3] %vm19_vm0, %v97_v12 }

// kernel: generator_forward.23
= control target key start
LH: loop header
LB: loop body
LE: loop exit
PB: predicated region body
PF: predicated region fallthrough
CT: control target
= control target key end

     0   :  { %s595_s12 = smov 0   ;;  %s597_s13 = smov 0   ;;  %s683_s0 = inlined_call_operand.vmem [shape: bf16[8,2,16], index: 0, kind: input, shape index: {}]   ;;  %s684_s1 = inlined_call_operand.vmem [shape: f32[1,2,16], index: 1, kind: input, shape index: {}]   ;;  %s685_s2 = inlined_call_operand.vmem [shape: f32[3,8,2,1], index: 2, kind: input, shape index: {}]   ;;  %s686_s3 = inlined_call_operand.vmem [shape: bf16[8,2,16], index: 3, kind: output, shape index: {}]  }
   0x1   :  { %s599_s14 = smov 0  }
   0x2 LB: > { %s501_s15 = sadd.s32 4294967295, %s572_s14   ;;  %s612_s16 = sadd.s32 1, %s572_s14   ;;  %s572_s14 = sphi %s599_s14, %s689_s14   ;;  %s568_s13 = sphi %s597_s13, %s688_s13   ;;  %s564_s12 = sphi %s595_s12, %s687_s12  }
   0x3   : > { %s64_s17 = ssub.s32 %s572_s14, %s612_s16  ;;  %s67_s18 = sadd.s32 1, %s568_s13 }
   0x4   : > { %p65_p0 = scmp.eq.s32.totalorder %s64_s17, 0  ;;  %p74_p1 = scmp.ne.s32.totalorder %s568_s13, %s564_s12 }
   0x5   : > { %p75_p2 = scmp.eq.s32.totalorder %s572_s14, 0  ;;  %p504_p4 = scmp.ge.s32.totalorder %s572_s14, 2 }
   0x6   : > { %s621_s19 = scalar_select %p65_p0, %s568_s13, %s67_s18  }
   0x7   : > { %p76_p3 = por %p75_p2, %p74_p1  ;;  %129 = sbr.rel (%p504_p4) target bundleno = 21 (0x15), region = 20 }
   0xe   : > { %140 = sbr.rel (!%p76_p3) target bundleno = 21 (0x15), region = 28  ;;  %s142_s20 = sand.u32 (%p76_p3), 1, %s568_s13  }
   0xf   : > { %s512_s21 = sshll.u32 (%p76_p3), %s572_s14, 3  ;;  %s513_s22 = smul.u32 (%p76_p3), 24, %s142_s20 }
  0x10   : > { %s147_s25 = scalar_lea.vmem (%p76_p3), %s685_s2, %s512_s21 }
  0x11   : > { %v163_v0 = vld [vmem:[%s147_s25] sm:$0xff] (%p76_p3)   ;;  %v171_v1 = vld [vmem:[%s147_s25 + $0x10] sm:$0xff] (%p76_p3)   ;;  %s144_s26 = scalar_lea.vmem (%p76_p3), [#allocation2], %s513_s22 }
  0x12   : > { %v179_v2 = vld [vmem:[%s147_s25 + $0x20] sm:$0xff] (%p76_p3)   ;;  %164 = vst [vmem:[%s144_s26] sm:$0xff] (%p76_p3), %v163_v0   ;;  %172 = vst [vmem:[%s144_s26 + $0x8] sm:$0xff] (%p76_p3), %v171_v1  }
  0x13   : > { %180 = vst [vmem:[%s144_s26 + $0x10] sm:$0xff] (%p76_p3), %v179_v2  }
  0x15 PF: > { %p507_p5 = scmp.ge.s32.totalorder %s572_s14, 1  ;;  %p232_p6 = scmp.lt.s32.totalorder %s572_s14, 3 }
  0x17   : > { %p233_p7 = pnand %p507_p5, %p232_p6 }
  0x18   : > { %s239_s27 = sand.u32 (!%p233_p7), 1, %s564_s12   ;;  %v574_v3 = vmov (!%p233_p7), 0   ;;  %s508_s30 = sshll.u32 (!%p233_p7), %s501_s15, 2  ;;  %v284_v10 = vld [vmem:[%s684_s1] sm:$0x3] (!%p233_p7)  ;;  %vm325_vm0 = vcmask (!%p233_p7), 123904  }
  0x19   : > { %236 = sbr.rel (%p233_p7) target bundleno = 486 (0x1e6), region = 69  ;;  %541 = vset.pattern.permute.xlu1 (!%p233_p7), %v574_v3  ;;  %540 = vset.pattern.permute.xlu0 (!%p233_p7), %v574_v3  ;;  %p266_p8 = scmp.lt.s32.totalorder (!%p233_p7), %s508_s30, 7  ;;  %vm431_vm1 = vcmask (!%p233_p7), 122880  }
  0x1a   : > { %s514_s28 = smul.u32 (!%p233_p7), 24, %s239_s27 }
  0x1c   : > { %s632_s29 = scalar_lea.vmem (!%p233_p7), [#allocation2], %s514_s28 }
  0x1d   : > { %v287_v4 = vld [vmem:[%s632_s29 + $0x4] sm:$0x3] (!%p233_p7)  ;;  %v285_v5 = vld [vmem:[%s632_s29] sm:$0x3] (!%p233_p7)  ;;  %v288_v6 = vld [vmem:[%s632_s29 + $0x6] sm:$0x3] (!%p233_p7) }
  0x1e   : > { %309 = vperm.xlu1 (!%p233_p7), %541, %v287_v4   ;;  %299 = vperm.xlu0 (!%p233_p7), %540, %v285_v5   ;;  %v286_v7 = vld [vmem:[%s632_s29 + $0x2] sm:$0x3] (!%p233_p7)  ;;  %v289_v33 = vld [vmem:[%s632_s29 + $0x8] sm:$0x3] (!%p233_p7)  ;;  %v291_v34 = vld [vmem:[%s632_s29 + $0xc] sm:$0x3] (!%p233_p7) }
  0x1f   : > { %v293_v35 = vld [vmem:[%s632_s29 + $0x10] sm:$0x3] (!%p233_p7)  ;;  %v290_v36 = vld [vmem:[%s632_s29 + $0xa] sm:$0x3] (!%p233_p7)  ;;  %v294_v37 = vld [vmem:[%s632_s29 + $0x12] sm:$0x3] (!%p233_p7) }
  0x20   : > { %s691_s30 = smov (!%p266_p8, %s508_s30), 7  ;;  %v292_v38 = vld [vmem:[%s632_s29 + $0xe] sm:$0x3]  ;;  %v296_v59 = vld [vmem:[%s632_s29 + $0x16] sm:$0x3] }
  0x21   : > { %s268_s6 = scalar_lea.vmem %s683_s0, %s691_s30  ;;  %v295_v60 = vld [vmem:[%s632_s29 + $0x14] sm:$0x3]  ;;  %s274_s11 = scalar_lea.vmem %s686_s3, %s691_s30 }
  0x22   : > { %314 = vperm.xlu1 %541, %v288_v6   ;;  %304 = vperm.xlu0 %540, %v286_v7   ;;  %v276_v8 = vld [vmem:[%s268_s6] sm:$0x1]  ;;  %v278_v9 = vld [vmem:[%s268_s6 + $0x2] sm:$0x1]  ;;  %v277_v15 = vld [vmem:[%s268_s6 + $0x1] sm:$0x1] }
  0x23   : > { %v280_v11 = vunpack.c.l.bf16 %v276_v8  ;;  %v282_v12 = vunpack.c.l.bf16 %v278_v9  ;;  %v279_v18 = vld [vmem:[%s268_s6 + $0x3] sm:$0x1]  ;;  %v281_v21 = vunpack.c.l.bf16 %v277_v15 }
  0x24   : > { %v283_v27 = vunpack.c.l.bf16 %v279_v18 }
  0x9d   : > { %v310_v13 = vpop.permute.xlu1 %309  ;;  %v300_v14 = vpop.permute.xlu0 %299 }
  0x9e   : > { %v319_v16 = vmul.f32 %v310_v13, %v284_v10  ;;  %v317_v17 = vmul.f32 %v300_v14, %v284_v10 }
  0xa0   : > { %v321_v19 = vadd.f32 %v317_v17, %v280_v11  ;;  %v323_v20 = vadd.f32 %v319_v16, %v282_v12 }
  0xa1   : > { %v315_v22 = vpop.permute.xlu1 %314  ;;  %v305_v23 = vpop.permute.xlu0 %304 }
  0xa2   : > { %v320_v24 = vmul.f32 %v315_v22, %v284_v10  ;;  %v318_v25 = vmul.f32 %v305_v23, %v284_v10  ;;  %v326_v26 = vsel %vm325_vm0, %v321_v19, 0.0  ;;  %v332_v28 = vsel %vm325_vm0, %v323_v20, 0.0 }
  0xa3   : > { %327 = vadd.xlane.f32.xlu0 %v326_v26 }
  0xa4   : > { %v322_v29 = vadd.f32 %v318_v25, %v281_v21  ;;  %v324_v31 = vadd.f32 %v320_v24, %v283_v27 }
  0xa6   : > { %v329_v30 = vsel %vm325_vm0, %v322_v29, 0.0  ;;  %v335_v32 = vsel %vm325_vm0, %v324_v31, 0.0 }
  0xa7   : > { %333 = vadd.xlane.f32.xlu0 %v332_v28  ;;  %330 = vadd.xlane.f32.xlu1 %v329_v30 }
  0xab   : > { %336 = vadd.xlane.f32.xlu0 %v335_v32 }
  0xb8   : > { %381 = vperm.xlu1 %541, %v289_v33  }
  0xbc   : > { %391 = vperm.xlu1 %541, %v291_v34  }
  0xc0   : > { %405 = vperm.xlu1 %541, %v293_v35  }
  0xc1   : > { %386 = vperm.xlu0 %540, %v290_v36  }
  0xc4   : > { %410 = vperm.xlu1 %541, %v294_v37  }
  0xc5   : > { %396 = vperm.xlu0 %540, %v292_v38  }
 0x130   : > { %v328_v39 = vpop.xlane.xlu0 %327 }
 0x131   : > { %v339_v40 = vmul.f32 0.0625, %v328_v39 }
 0x133   : > { %v343_v41 = vsub.f32 %v321_v19, %v339_v40 }
 0x134   : > { %v331_v42 = vpop.xlane.xlu1 %330  ;;  %v334_v43 = vpop.xlane.xlu0 %333 }
 0x135   : > { %v340_v44 = vmul.f32 0.0625, %v331_v42  ;;  %v341_v45 = vmul.f32 0.0625, %v334_v43  ;;  %v347_v46 = vmul.f32 %v343_v41, %v343_v41 }
 0x137   : > { %v344_v47 = vsub.f32 %v322_v29, %v340_v44  ;;  %v345_v48 = vsub.f32 %v323_v20, %v341_v45  ;;  %v351_v49 = vsel %vm325_vm0, %v347_v46, 0.0 }
 0x138   : > { %352 = vadd.xlane.f32.xlu1 %v351_v49  ;;  %v337_v50 = vpop.xlane.xlu0 %336  ;;  %v382_v61 = vpop.permute.xlu1 %381 }
 0x139   : > { %v342_v51 = vmul.f32 0.0625, %v337_v50  ;;  %v348_v52 = vmul.f32 %v344_v47, %v344_v47  ;;  %v349_v53 = vmul.f32 %v345_v48, %v345_v48 }
 0x13b   : > { %v346_v54 = vsub.f32 %v324_v31, %v342_v51  ;;  %v354_v55 = vsel %vm325_vm0, %v348_v52, 0.0  ;;  %v357_v56 = vsel %vm325_vm0, %v349_v53, 0.0 }
 0x13c   : > { %355 = vadd.xlane.f32.xlu0 %v354_v55  ;;  %358 = vadd.xlane.f32.xlu1 %v357_v56  ;;  %v392_v62 = vpop.permute.xlu1 %391 }
 0x13d   : > { %v350_v57 = vmul.f32 %v346_v54, %v346_v54 }
 0x13f   : > { %v360_v58 = vsel %vm325_vm0, %v350_v57, 0.0 }
 0x140   : > { %361 = vadd.xlane.f32.xlu0 %v360_v58  ;;  %v406_v63 = vpop.permute.xlu1 %405  ;;  %v387_v0 = vpop.permute.xlu0 %386 }
 0x144   : > { %v411_v1 = vpop.permute.xlu1 %410  ;;  %v397_v2 = vpop.permute.xlu0 %396 }
 0x14d   : > { %420 = vperm.xlu1 %541, %v296_v59  }
 0x156   : > { %415 = vperm.xlu0 %540, %v295_v60  }
 0x1c5   : > { %v353_v3 = vpop.xlane.xlu1 %352 }
 0x1c6   : > { %v363_v4 = vmul.f32 0.0625, %v353_v3 }
 0x1c8   : > { %v367_v5 = vadd.f32 1e-05, %v363_v4 }
 0x1c9   : > { %v359_v6 = vpop.xlane.xlu1 %358  ;;  %v356_v7 = vpop.xlane.xlu0 %355 }
 0x1ca   : > { %542 = vrsqrt.f32 %v367_v5  ;;  %v365_v8 = vmul.f32 0.0625, %v359_v6  ;;  %v364_v9 = vmul.f32 0.0625, %v356_v7 }
 0x1cc   : > { %v369_v10 = vadd.f32 1e-05, %v365_v8  ;;  %v368_v11 = vadd.f32 1e-05, %v364_v9 }
 0x1cd   : > { %v362_v12 = vpop.xlane.xlu0 %361  ;;  %v421_v34 = vpop.permute.xlu1 %420 }
 0x1ce   : > { %544 = vrsqrt.f32 %v369_v10  ;;  %v366_v13 = vmul.f32 0.0625, %v362_v12 }
 0x1cf   : > { %546 = vrsqrt.f32 %v368_v11 }
 0x1d0   : > { %v370_v14 = vadd.f32 1e-05, %v366_v13 }
 0x1d2   : > { %548 = vrsqrt.f32 %v370_v14 }
 0x1d4   : > { %v543_v15 = vpop.eup %542 }
 0x1d5   : > { %v375_v16 = vmul.f32 %v543_v15, %v343_v41  ;;  %v416_v27 = vpop.permute.xlu0 %415 }
 0x1d7   : > { %v399_v17 = vmul.f32 %v382_v61, %v375_v16 }
 0x1d8   : > { %v545_v18 = vpop.eup %544 }
 0x1d9   : > { %v547_v19 = vpop.eup %546  ;;  %v423_v20 = vadd.f32 %v406_v63, %v399_v17  ;;  %v377_v21 = vmul.f32 %v545_v18, %v345_v48 }
 0x1da   : > { %v376_v22 = vmul.f32 %v547_v19, %v344_v47 }
 0x1db   : > { %v427_v23 = vpack.c.bf16 %v423_v20, %v423_v20  ;;  %v401_v24 = vmul.f32 %v392_v62, %v377_v21 }
 0x1dc   : > { %v549_v25 = vpop.eup %548  ;;  %v400_v26 = vmul.f32 %v387_v0, %v376_v22 }
 0x1dd   : > { %v378_v28 = vmul.f32 %v549_v25, %v346_v54  ;;  %432 = vst.msk [vmem:[%s274_s11] sm:$0x1] %vm431_vm1, %v427_v23  ;;  %v425_v29 = vadd.f32 %v416_v27, %v401_v24 }
 0x1de   : > { %v424_v30 = vadd.f32 %v411_v1, %v400_v26 }
 0x1df   : > { %v402_v31 = vmul.f32 %v397_v2, %v378_v28  ;;  %v429_v32 = vpack.c.bf16 %v425_v29, %v425_v29 }
 0x1e0   : > { %v428_v33 = vpack.c.bf16 %v424_v30, %v424_v30 }
 0x1e1   : > { %v426_v35 = vadd.f32 %v421_v34, %v402_v31  ;;  %434 = vst.msk [vmem:[%s274_s11 + $0x2] sm:$0x1] %vm431_vm1, %v429_v32 }
 0x1e2   : > { %433 = vst.msk [vmem:[%s274_s11 + $0x1] sm:$0x1] %vm431_vm1, %v428_v33 }
 0x1e3   : > { %v430_v36 = vpack.c.bf16 %v426_v35, %v426_v35 }
 0x1e5   : > { %435 = vst.msk [vmem:[%s274_s11 + $0x3] sm:$0x1] %vm431_vm1, %v430_v36 }
 0x1e6 PF: > { %p10_p9 = scmp.ge.s32.totalorder %s612_s16, 4   ;;  %s687_s12 = smov %s568_s13 }
 0x1e7   : > { %s688_s13 = smov %s621_s19  ;;  %s689_s14 = smov %s612_s16 }
 0x1e8   :  { %12 = sbr.rel (!%p10_p9) target bundleno = 2 (0x2), region = 111 }

// kernel: generator_forward.21
= control target key start
LH: loop header
LB: loop body
LE: loop exit
PB: predicated region body
PF: predicated region fallthrough
CT: control target
= control target key end

     0   :  { %vm59_vm0 = vcmask 254976   ;;  %v758_v3 = vmov 0.0   ;;  %vm759_vm1 = vmmov 0   ;;  %vm92_vm2 = vcmask 261120   ;;  %s970_s0 = inlined_call_operand.vmem [shape: f32[2,32], index: 0, kind: input, shape index: {}]   ;;  %s971_s1 = inlined_call_operand.vmem [shape: bf16[32,32], index: 1, kind: input, shape index: {}]   ;;  %s972_s3 = inlined_call_operand.vmem [shape: bf16[32,32], index: 3, kind: input, shape index: {}]   ;;  %s973_s5 = inlined_call_operand.vmem [shape: bf16[32,32], index: 5, kind: input, shape index: {}]   ;;  %s974_s2 = inlined_call_operand.vmem [shape: f32[1,32], index: 2, kind: input, shape index: {}]   ;;  %s975_s7 = inlined_call_operand.vmem [shape: bf16[32,32], index: 7, kind: input, shape index: {}]   ;;  %s976_s4 = inlined_call_operand.vmem [shape: f32[1,32], index: 4, kind: input, shape index: {}]   ;;  %s977_s9 = inlined_call_operand.vmem [shape: bf16[32,32], index: 9, kind: input, shape index: {}]   ;;  %s978_s6 = inlined_call_operand.vmem [shape: f32[1,32], index: 6, kind: input, shape index: {}]   ;;  %s979_s11 = inlined_call_operand.vmem [shape: bf16[32,32], index: 11, kind: input, shape index: {}]   ;;  %s980_s8 = inlined_call_operand.vmem [shape: f32[1,32], index: 8, kind: input, shape index: {}]   ;;  %s981_s13 = inlined_call_operand.vmem [shape: bf16[32,32], index: 13, kind: input, shape index: {}]   ;;  %s982_s10 = inlined_call_operand.vmem [shape: f32[1,32], index: 10, kind: input, shape index: {}]   ;;  %s983_s15 = inlined_call_operand.vmem [shape: bf16[32,32], index: 15, kind: input, shape index: {}]   ;;  %s984_s12 = inlined_call_operand.vmem [shape: f32[1,32], index: 12, kind: input, shape index: {}]   ;;  %s985_s14 = inlined_call_operand.vmem [shape: f32[1,32], index: 14, kind: input, shape index: {}]   ;;  %s986_s16 = inlined_call_operand.vmem [shape: f32[1,32], index: 16, kind: input, shape index: {}]   ;;  %s987_s17 = inlined_call_operand.vmem [shape: f32[2,32], index: 17, kind: output, shape index: {}]  }
   0x1   :  { %989 = sst [smem:[#allocation2_spill]] %s970_s0  ;;  %674 = vmatprep.subr.bf16.mxu0 %v758_v3  ;;  %678 = vmatprep.mubr.msk.bf16.mxu0 %vm759_vm1, %v758_v3  ;;  %v742_v12 = vld [vmem:[%s972_s3] sm:$0xff]   ;;  %v743_v13 = vld [vmem:[%s972_s3 + $0x8] sm:$0xff]  }
   0x2   :  { %990 = sst [smem:[#allocation3_spill]] %s971_s1  ;;  %s991_s26 = sld [smem:[#allocation2_spill]]  ;;  %682 = vmatprep.subr.bf16.mxu1 %v758_v3  ;;  %686 = vmatprep.mubr.msk.bf16.mxu1 %vm759_vm1, %v758_v3  ;;  %v744_v14 = vld [vmem:[%s973_s5] sm:$0xff]   ;;  %v745_v23 = vld [vmem:[%s973_s5 + $0x8] sm:$0xff]  }
   0x3   :  { %s992_s29 = sld [smem:[#allocation3_spill]]  ;;  %683 = vmatpush3.bf16.msra.mxu1 %v742_v12  ;;  %v618_v15 = vld [vmem:[%s974_s2] ss:$0 sm:$0xff]  ;;  %v747_v33 = vld [vmem:[%s975_s7 + $0x8] sm:$0xff]  }
   0x4   :  { %684 = vmatprep.subr.bf16.mxu1 %v758_v3  ;;  %v746_v24 = vld [vmem:[%s975_s7] sm:$0xff]   ;;  %v749_v43 = vld [vmem:[%s977_s9 + $0x8] sm:$0xff]  }
   0x5   :  { %v622_v25 = vld [vmem:[%s976_s4] ss:$0 sm:$0xff]  ;;  %v751_v53 = vld [vmem:[%s979_s11 + $0x8] sm:$0xff]  }
   0x6   :  { %v748_v34 = vld [vmem:[%s977_s9] sm:$0xff]   ;;  %v753_v63 = vld [vmem:[%s981_s13 + $0x8] sm:$0xff]  }
   0x7   :  { %685 = vmatpush3.bf16.msra.mxu1 %v743_v13  ;;  %v626_v35 = vld [vmem:[%s978_s6] ss:$0 sm:$0xff] }
   0x8   :  { %v57_v0 = vld [vmem:[%s991_s26] sm:$0x3]  ;;  %698 = vmatprep.subr.bf16.mxu1 %v758_v3 }
   0x9   :  { %v58_v1 = vmul.f32 %v57_v0, %v57_v0  ;;  %v740_v4 = vld [vmem:[%s992_s29] sm:$0xff]   ;;  %v741_v5 = vld [vmem:[%s992_s29 + $0x8] sm:$0xff]  }
   0xa   :  { %675 = vmatpush3.bf16.msra.mxu0 %v740_v4  ;;  %v750_v44 = vld [vmem:[%s979_s11] sm:$0xff]  }
   0xb   :  { %v60_v2 = vsel %vm59_vm0, %v58_v1, 0.0  ;;  %676 = vmatprep.subr.bf16.mxu0 %v758_v3  ;;  %v630_v45 = vld [vmem:[%s980_s8] ss:$0 sm:$0xff] }
   0xc   :  { %61 = vadd.xlane.f32.xlu0 %v60_v2  ;;  %v752_v54 = vld [vmem:[%s981_s13] sm:$0xff]  }
   0xd   :  { %v634_v55 = vld [vmem:[%s982_s10] ss:$0 sm:$0xff] }
   0xe   :  { %677 = vmatpush3.bf16.msra.mxu0 %v741_v5  ;;  %v638_v1 = vld [vmem:[%s984_s12] ss:$0 sm:$0xff] }
   0xf   :  { %690 = vmatprep.subr.bf16.mxu0 %v758_v3 }
  0x99   :  { %v62_v6 = vpop.xlane.xlu0 %61 }
  0x9a   :  { %v64_v7 = vmul.f32 0.03125, %v62_v6 }
  0x9c   :  { %v65_v8 = vadd.f32 1e-08, %v64_v7 }
  0x9e   :  { %756 = vrsqrt.f32 %v65_v8 }
  0xa8   :  { %v757_v9 = vpop.eup %756 }
  0xa9   :  { %v67_v10 = vmul.f32 %v757_v9, %v57_v0  ;;  %v754_v0 = vld [vmem:[%s983_s15] sm:$0xff]  }
  0xab   :  { %v73_v11 = vpack.c.bf16 %v67_v10, %v67_v10  ;;  %v755_v10 = vld [vmem:[%s983_s15 + $0x8] sm:$0xff]  }
  0xad   :  { %679 = vmatmul.mubr.msk.bf16.vlgmr.msra.gmra.mrb[0].mxu0 %vm92_vm2, %v73_v11 }
  0xae   :  { %694 = vmatprep.mubr.msk.bf16.mxu0 %vm759_vm1, %v758_v3  ;;  %691 = vmatpush3.bf16.msra.mxu0 %v744_v14 }
  0xaf   :  { %692 = vmatprep.subr.bf16.mxu0 %v758_v3 }
  0xb2   :  { %693 = vmatpush3.bf16.msra.mxu0 %v745_v23 }
  0xb3   :  { %706 = vmatprep.subr.bf16.mxu0 %v758_v3 }
 0x180   :  { %v130_v16 = vpop.f32.mrb[0].mxu0 }
 0x181   :  { %v131_v17 = vadd.f32 %v618_v15, %v130_v16  ;;  %v680_v18 = vpop.f32.mrb[1].mxu0 }
 0x182   :  { %v133_v19 = vpop.f32.mrb[2].mxu0  ;;  %v646_v18 = vld [vmem:[%s986_s16] ss:$0 sm:$0xff] }
 0x183   :  { %v136_v20 = vmax.f32 %v131_v17, 0.0  ;;  %v681_v21 = vpop.f32.mrb[3].mxu0 }
 0x185   :  { %v142_v22 = vpack.c.bf16 %v136_v20, %v136_v20 }
 0x187   :  { %687 = vmatmul.mubr.msk.bf16.vlgmr.msra.gmra.mrb[0].mxu1 %vm92_vm2, %v142_v22 }
 0x188   :  { %702 = vmatprep.mubr.msk.bf16.mxu1 %vm759_vm1, %v758_v3  ;;  %699 = vmatpush3.bf16.msra.mxu1 %v746_v24 }
 0x189   :  { %700 = vmatprep.subr.bf16.mxu1 %v758_v3 }
 0x18c   :  { %701 = vmatpush3.bf16.msra.mxu1 %v747_v33 }
 0x18d   :  { %714 = vmatprep.subr.bf16.mxu1 %v758_v3 }
 0x25a   :  { %v198_v26 = vpop.f32.mrb[0].mxu1 }
 0x25b   :  { %v199_v27 = vadd.f32 %v622_v25, %v198_v26  ;;  %v688_v28 = vpop.f32.mrb[1].mxu1 }
 0x25c   :  { %v201_v29 = vpop.f32.mrb[2].mxu1 }
 0x25d   :  { %v204_v30 = vmax.f32 %v199_v27, 0.0  ;;  %v689_v31 = vpop.f32.mrb[3].mxu1 }
 0x25f   :  { %v210_v32 = vpack.c.bf16 %v204_v30, %v204_v30 }
 0x261   :  { %695 = vmatmul.mubr.msk.bf16.vlgmr.msra.gmra.mrb[4].mxu0 %vm92_vm2, %v210_v32 }
 0x262   :  { %710 = vmatprep.mubr.msk.bf16.mxu0 %vm759_vm1, %v758_v3  ;;  %707 = vmatpush3.bf16.msra.mxu0 %v748_v34 }
 0x263   :  { %708 = vmatprep.subr.bf16.mxu0 %v758_v3 }
 0x266   :  { %709 = vmatpush3.bf16.msra.mxu0 %v749_v43 }
 0x267   :  { %722 = vmatprep.subr.bf16.mxu0 %v758_v3 }
 0x334   :  { %v266_v36 = vpop.f32.mrb[4].mxu0 }
 0x335   :  { %v267_v37 = vadd.f32 %v626_v35, %v266_v36  ;;  %v696_v38 = vpop.f32.mrb[5].mxu0 }
 0x336   :  { %v269_v39 = vpop.f32.mrb[6].mxu0 }
 0x337   :  { %v272_v40 = vmax.f32 %v267_v37, 0.0  ;;  %v697_v41 = vpop.f32.mrb[7].mxu0 }
 0x339   :  { %v278_v42 = vpack.c.bf16 %v272_v40, %v272_v40 }
 0x33b   :  { %703 = vmatmul.mubr.msk.bf16.vlgmr.msra.gmra.mrb[4].mxu1 %vm92_vm2, %v278_v42 }
 0x33c   :  { %718 = vmatprep.mubr.msk.bf16.mxu1 %vm759_vm1, %v758_v3  ;;  %715 = vmatpush3.bf16.msra.mxu1 %v750_v44 }
 0x33d   :  { %716 = vmatprep.subr.bf16.mxu1 %v758_v3 }
 0x340   :  { %717 = vmatpush3.bf16.msra.mxu1 %v751_v53 }
 0x341   :  { %730 = vmatprep.subr.bf16.mxu1 %v758_v3 }
 0x40e   :  { %v334_v46 = vpop.f32.mrb[4].mxu1 }
 0x40f   :  { %v335_v47 = vadd.f32 %v630_v45, %v334_v46  ;;  %v704_v48 = vpop.f32.mrb[5].mxu1 }
 0x410   :  { %v337_v49 = vpop.f32.mrb[6].mxu1 }
 0x411   :  { %v340_v50 = vmax.f32 %v335_v47, 0.0  ;;  %v705_v51 = vpop.f32.mrb[7].mxu1 }
 0x413   :  { %v346_v52 = vpack.c.bf16 %v340_v50, %v340_v50 }
 0x415   :  { %711 = vmatmul.mubr.msk.bf16.vlgmr.msra.gmra.mrb[8].mxu0 %vm92_vm2, %v346_v52 }
 0x416   :  { %726 = vmatprep.mubr.msk.bf16.mxu0 %vm759_vm1, %v758_v3  ;;  %723 = vmatpush3.bf16.msra.mxu0 %v752_v54 }
 0x417   :  { %724 = vmatprep.subr.bf16.mxu0 %v758_v3 }
 0x41a   :  { %725 = vmatpush3.bf16.msra.mxu0 %v753_v63 }
 0x4e8   :  { %v402_v56 = vpop.f32.mrb[8].mxu0 }
 0x4e9   :  { %v403_v57 = vadd.f32 %v634_v55, %v402_v56  ;;  %v712_v58 = vpop.f32.mrb[9].mxu0 }
 0x4ea   :  { %v405_v59 = vpop.f32.mrb[10].mxu0 }
 0x4eb   :  { %v408_v60 = vmax.f32 %v403_v57, 0.0  ;;  %v713_v61 = vpop.f32.mrb[11].mxu0 }
 0x4ed   :  { %v414_v62 = vpack.c.bf16 %v408_v60, %v408_v60 }
 0x4ef   :  { %719 = vmatmul.mubr.msk.bf16.vlgmr.msra.gmra.mrb[8].mxu1 %vm92_vm2, %v414_v62 }
 0x4f0   :  { %734 = vmatprep.mubr.msk.bf16.mxu1 %vm759_vm1, %v758_v3  ;;  %731 = vmatpush3.bf16.msra.mxu1 %v754_v0 }
 0x4f1   :  { %732 = vmatprep.subr.bf16.mxu1 %v758_v3  ;;  %v642_v3 = vld [vmem:[%s985_s14] ss:$0 sm:$0xff] }
 0x4f4   :  { %733 = vmatpush3.bf16.msra.mxu1 %v755_v10 }
 0x5c2   :  { %v470_v2 = vpop.f32.mrb[8].mxu1 }
 0x5c3   :  { %v471_v4 = vadd.f32 %v638_v1, %v470_v2  ;;  %v720_v5 = vpop.f32.mrb[9].mxu1 }
 0x5c4   :  { %v473_v6 = vpop.f32.mrb[10].mxu1 }
 0x5c5   :  { %v476_v7 = vmax.f32 %v471_v4, 0.0  ;;  %v721_v8 = vpop.f32.mrb[11].mxu1 }
 0x5c7   :  { %v482_v9 = vpack.c.bf16 %v476_v7, %v476_v7 }
 0x5c9   :  { %727 = vmatmul.mubr.msk.bf16.vlgmr.msra.gmra.mrb[12].mxu0 %vm92_vm2, %v482_v9 }
 0x69c   :  { %v538_v11 = vpop.f32.mrb[12].mxu0 }
 0x69d   :  { %v539_v12 = vadd.f32 %v642_v3, %v538_v11  ;;  %v728_v13 = vpop.f32.mrb[13].mxu0 }
 0x69e   :  { %v541_v14 = vpop.f32.mrb[14].mxu0 }
 0x69f   :  { %v544_v15 = vmax.f32 %v539_v12, 0.0  ;;  %v729_v16 = vpop.f32.mrb[15].mxu0 }
 0x6a1   :  { %v550_v17 = vpack.c.bf16 %v544_v15, %v544_v15 }
 0x6a3   :  { %735 = vmatmul.mubr.msk.bf16.vlgmr.msra.gmra.mrb[12].mxu1 %vm92_vm2, %v550_v17 }
 0x776   :  { %v606_v19 = vpop.f32.mrb[12].mxu1 }
 0x777   :  { %v607_v20 = vadd.f32 %v646_v18, %v606_v19  ;;  %v736_v21 = vpop.f32.mrb[13].mxu1 }
 0x778   :  { %v609_v22 = vpop.f32.mrb[14].mxu1 }
 0x779   :  { %v612_v23 = vmax.f32 %v607_v20, 0.0  ;;  %v737_v24 = vpop.f32.mrb[15].mxu1 }
 0x77b   :  { %613 = vst.msk [vmem:[%s987_s17] sm:$0x3] %vm59_vm0, %v612_v23 }

// kernel: generator_forward.24
= control target key start
LH: loop header
LB: loop body
LE: loop exit
PB: predicated region body
PF: predicated region fallthrough
CT: control target
= control target key end

     0   :  { %v163_v0 = vmov 0.0   ;;  %vm164_vm0 = vmmov 0   ;;  %v165_v2 = vmov 0   ;;  %vm19_vm1 = vcmask 261120   ;;  %s212_s1 = inlined_call_operand.vmem [shape: bf16[72,32], index: 1, kind: input, shape index: {}]   ;;  %s213_s2 = inlined_call_operand.vmem [shape: f32[8,1], index: 2, kind: input, shape index: {}]   ;;  %s214_s0 = inlined_call_operand.vmem [shape: bf16[8,72], index: 0, kind: input, shape index: {}]   ;;  %s215_s3 = inlined_call_operand.vmem [shape: bf16[8,32], index: 3, kind: output, shape index: {}]  }
   0x1   :  { %140 = vmatprep.subr.bf16.mxu0 %v163_v0  ;;  %v158_v1 = vld [vmem:[%s212_s1] sm:$0xff]   ;;  %150 = vmatprep.mubr.msk.bf16.mxu0 %vm164_vm0, %v163_v0  ;;  %v159_v3 = vld [vmem:[%s212_s1 + $0x8] sm:$0xff]   ;;  %20 = vst.msk [vmem:[#allocation2] sm:$0xff] %vm19_vm1, %v163_v0  ;;  %v160_v5 = vld [vmem:[%s212_s1 + $0x10] sm:$0xff]   ;;  %vm63_vm2 = vcmask 1043456   ;;  %vm59_vm3 = vcmask 588800  }
   0x2   :  { %157 = vset.pattern.permute.xlu0 %v165_v2  ;;  %141 = vmatpush3.bf16.msra.mxu0 %v158_v1  ;;  %v114_v4 = vld [vmem:[%s213_s2] sm:$0xff]  ;;  %v161_v6 = vld [vmem:[%s212_s1 + $0x18] sm:$0xff]   ;;  %vm122_vm4 = vcmask 257024  }
   0x3   :  { %142 = vmatprep.subr.bf16.mxu0 %v163_v0  ;;  %117 = vperm.xlu0 %157, %v114_v4   ;;  %v162_v7 = vld [vmem:[%s212_s1 + $0x20] ss:$0 sps:$4 sm:$0xff]  }
   0x4   :  { %v65_v8 = vsel %vm63_vm2, %v162_v7, 0  ;;  %v22_v9 = vld [vmem:[%s214_s0] sm:$0xf] }
   0x6   :  { %143 = vmatpush3.bf16.msra.mxu0 %v159_v3 }
   0x7   :  { %144 = vmatprep.subr.bf16.mxu0 %v163_v0 }
   0x8   :  { %v21_v10 = vld [vmem:[#allocation2] sm:$0xff] }
   0xa   :  { %145 = vmatpush3.bf16.msra.mxu0 %v160_v5 }
   0xb   :  { %146 = vmatprep.subr.bf16.mxu0 %v163_v0 }
   0xe   :  { %147 = vmatpush3.bf16.msra.mxu0 %v161_v6 }
   0xf   :  { %148 = vmatprep.subr.bf16.mxu0 %v163_v0 }
  0x12   :  { %149 = vmatpush3.bf16.msra.mxu0 %v65_v8 }
  0x15   :  { %151 = vmatmul.mubr.msk.bf16.vlgmr.msra.gmra.mrb[0].mxu0 %vm59_vm3, %v22_v9 }
  0x82   :  { %v118_v16 = vpop.permute.xlu0 %117 }
  0xe8   :  { %v101_v11 = vpop.f32.mrb[0].mxu0 }
  0xe9   :  { %v107_v12 = vadd.f32 %v101_v11, %v21_v10  ;;  %v152_v13 = vpop.f32.mrb[1].mxu0 }
  0xea   :  { %v104_v14 = vpop.f32.mrb[2].mxu0 }
  0xeb   :  { %109 = vst.msk [vmem:[#allocation2] sm:$0xff] %vm19_vm1, %v107_v12  ;;  %v153_v15 = vpop.f32.mrb[3].mxu0 }
  0xf2   :  { %v113_v17 = vld [vmem:[#allocation2] sm:$0xff] }
  0xf3   :  { %v120_v18 = vadd.f32 %v118_v16, %v113_v17 }
  0xf5   :  { %v121_v19 = vpack.c.bf16 %v120_v18, %v120_v18 }
  0xf7   :  { %123 = vst.msk [vmem:[%s215_s3] sm:$0xf] %vm122_vm4, %v121_v19 }

// kernel: generator_forward.28
= control target key start
LH: loop header
LB: loop body
LE: loop exit
PB: predicated region body
PF: predicated region fallthrough
CT: control target
= control target key end

     0   :  { %s607_s12 = smov 0   ;;  %s609_s13 = smov 0   ;;  %s695_s0 = inlined_call_operand.vmem [shape: bf16[8,2,16], index: 0, kind: input, shape index: {}]   ;;  %s696_s1 = inlined_call_operand.vmem [shape: f32[1,2,16], index: 1, kind: input, shape index: {}]   ;;  %s697_s2 = inlined_call_operand.vmem [shape: f32[3,8,2,1], index: 2, kind: input, shape index: {}]   ;;  %s698_s3 = inlined_call_operand.vmem [shape: bf16[8,2,16], index: 3, kind: output, shape index: {}]  }
   0x1   :  { %s611_s14 = smov 0  }
   0x2 LB: > { %s513_s15 = sadd.s32 4294967295, %s584_s14   ;;  %s624_s16 = sadd.s32 1, %s584_s14   ;;  %s584_s14 = sphi %s611_s14, %s701_s14   ;;  %s580_s13 = sphi %s609_s13, %s700_s13   ;;  %s576_s12 = sphi %s607_s12, %s699_s12  }
   0x3   : > { %s64_s17 = ssub.s32 %s584_s14, %s624_s16  ;;  %s67_s18 = sadd.s32 1, %s580_s13 }
   0x4   : > { %p65_p0 = scmp.eq.s32.totalorder %s64_s17, 0  ;;  %p74_p1 = scmp.ne.s32.totalorder %s580_s13, %s576_s12 }
   0x5   : > { %p75_p2 = scmp.eq.s32.totalorder %s584_s14, 0  ;;  %p516_p4 = scmp.ge.s32.totalorder %s584_s14, 2 }
   0x6   : > { %s633_s19 = scalar_select %p65_p0, %s580_s13, %s67_s18  }
   0x7   : > { %p76_p3 = por %p75_p2, %p74_p1  ;;  %129 = sbr.rel (%p516_p4) target bundleno = 21 (0x15), region = 20 }
   0xe   : > { %140 = sbr.rel (!%p76_p3) target bundleno = 21 (0x15), region = 28  ;;  %s142_s20 = sand.u32 (%p76_p3), 1, %s580_s13  }
   0xf   : > { %s524_s21 = sshll.u32 (%p76_p3), %s584_s14, 3  ;;  %s525_s22 = smul.u32 (%p76_p3), 24, %s142_s20 }
  0x10   : > { %s147_s25 = scalar_lea.vmem (%p76_p3), %s697_s2, %s524_s21 }
  0x11   : > { %v163_v0 = vld [vmem:[%s147_s25] sm:$0xff] (%p76_p3)   ;;  %v171_v1 = vld [vmem:[%s147_s25 + $0x10] sm:$0xff] (%p76_p3)   ;;  %s144_s26 = scalar_lea.vmem (%p76_p3), [#allocation2], %s525_s22 }
  0x12   : > { %v179_v2 = vld [vmem:[%s147_s25 + $0x20] sm:$0xff] (%p76_p3)   ;;  %164 = vst [vmem:[%s144_s26] sm:$0xff] (%p76_p3), %v163_v0   ;;  %172 = vst [vmem:[%s144_s26 + $0x8] sm:$0xff] (%p76_p3), %v171_v1  }
  0x13   : > { %180 = vst [vmem:[%s144_s26 + $0x10] sm:$0xff] (%p76_p3), %v179_v2  }
  0x15 PF: > { %p519_p5 = scmp.ge.s32.totalorder %s584_s14, 1  ;;  %p232_p6 = scmp.lt.s32.totalorder %s584_s14, 3 }
  0x17   : > { %p233_p7 = pnand %p519_p5, %p232_p6 }
  0x18   : > { %s239_s27 = sand.u32 (!%p233_p7), 1, %s576_s12   ;;  %v586_v3 = vmov (!%p233_p7), 0   ;;  %s520_s30 = sshll.u32 (!%p233_p7), %s513_s15, 2  ;;  %v284_v10 = vld [vmem:[%s696_s1] sm:$0x3] (!%p233_p7)  ;;  %vm337_vm0 = vcmask (!%p233_p7), 123904  }
  0x19   : > { %236 = sbr.rel (%p233_p7) target bundleno = 489 (0x1e9), region = 69  ;;  %553 = vset.pattern.permute.xlu1 (!%p233_p7), %v586_v3  ;;  %552 = vset.pattern.permute.xlu0 (!%p233_p7), %v586_v3  ;;  %p266_p8 = scmp.lt.s32.totalorder (!%p233_p7), %s520_s30, 7  ;;  %vm443_vm5 = vcmask (!%p233_p7), 122880  }
  0x1a   : > { %s526_s28 = smul.u32 (!%p233_p7), 24, %s239_s27 }
  0x1c   : > { %s644_s29 = scalar_lea.vmem (!%p233_p7), [#allocation2], %s526_s28 }
  0x1d   : > { %v287_v4 = vld [vmem:[%s644_s29 + $0x4] sm:$0x3] (!%p233_p7)  ;;  %v285_v5 = vld [vmem:[%s644_s29] sm:$0x3] (!%p233_p7)  ;;  %v288_v6 = vld [vmem:[%s644_s29 + $0x6] sm:$0x3] (!%p233_p7) }
  0x1e   : > { %309 = vperm.xlu1 (!%p233_p7), %553, %v287_v4   ;;  %299 = vperm.xlu0 (!%p233_p7), %552, %v285_v5   ;;  %v286_v7 = vld [vmem:[%s644_s29 + $0x2] sm:$0x3] (!%p233_p7)  ;;  %v289_v41 = vld [vmem:[%s644_s29 + $0x8] sm:$0x3] (!%p233_p7)  ;;  %v291_v42 = vld [vmem:[%s644_s29 + $0xc] sm:$0x3] (!%p233_p7) }
  0x1f   : > { %v293_v43 = vld [vmem:[%s644_s29 + $0x10] sm:$0x3] (!%p233_p7)  ;;  %v290_v44 = vld [vmem:[%s644_s29 + $0xa] sm:$0x3] (!%p233_p7)  ;;  %v294_v45 = vld [vmem:[%s644_s29 + $0x12] sm:$0x3] (!%p233_p7) }
  0x20   : > { %s703_s30 = smov (!%p266_p8, %s520_s30), 7  ;;  %v292_v46 = vld [vmem:[%s644_s29 + $0xe] sm:$0x3]  ;;  %v296_v3 = vld [vmem:[%s644_s29 + $0x16] sm:$0x3] }
  0x21   : > { %s268_s6 = scalar_lea.vmem %s695_s0, %s703_s30  ;;  %v295_v4 = vld [vmem:[%s644_s29 + $0x14] sm:$0x3]  ;;  %s274_s11 = scalar_lea.vmem %s698_s3, %s703_s30 }
  0x22   : > { %314 = vperm.xlu1 %553, %v288_v6   ;;  %304 = vperm.xlu0 %552, %v286_v7   ;;  %v278_v8 = vld [vmem:[%s268_s6 + $0x2] sm:$0x1]  ;;  %v276_v9 = vld [vmem:[%s268_s6] sm:$0x1]  ;;  %v279_v15 = vld [vmem:[%s268_s6 + $0x3] sm:$0x1] }
  0x23   : > { %v282_v11 = vunpack.c.l.bf16 %v278_v8  ;;  %v280_v12 = vunpack.c.l.bf16 %v276_v9  ;;  %v277_v16 = vld [vmem:[%s268_s6 + $0x1] sm:$0x1]  ;;  %v283_v21 = vunpack.c.l.bf16 %v279_v15 }
  0x24   : > { %v281_v22 = vunpack.c.l.bf16 %v277_v16 }
  0x9d   : > { %v310_v13 = vpop.permute.xlu1 %309  ;;  %v300_v14 = vpop.permute.xlu0 %299 }
  0x9e   : > { %v319_v17 = vmul.f32 %v310_v13, %v284_v10  ;;  %v317_v18 = vmul.f32 %v300_v14, %v284_v10 }
  0xa0   : > { %v323_v19 = vadd.f32 %v319_v17, %v282_v11  ;;  %v321_v20 = vadd.f32 %v317_v18, %v280_v12 }
  0xa1   : > { %v315_v23 = vpop.permute.xlu1 %314  ;;  %v305_v24 = vpop.permute.xlu0 %304 }
  0xa2   : > { %v320_v25 = vmul.f32 %v315_v23, %v284_v10  ;;  %v318_v26 = vmul.f32 %v305_v24, %v284_v10  ;;  %vm325_vm1 = vcmp.ge.f32.partialorder %v321_v20, 0.0  ;;  %v329_v27 = vmul.f32 0.2, %v321_v20 }
  0xa3   : > { %vm327_vm2 = vcmp.ge.f32.partialorder %v323_v19, 0.0  ;;  %v331_v28 = vmul.f32 0.2, %v323_v19 }
  0xa4   : > { %v324_v29 = vadd.f32 %v320_v25, %v283_v21  ;;  %v322_v30 = vadd.f32 %v318_v26, %v281_v22  ;;  %v333_v31 = vsel %vm325_vm1, %v321_v20, %v329_v27 }
  0xa5   : > { %v338_v32 = vsel %vm337_vm0, %v333_v31, 0.0  ;;  %v335_v33 = vsel %vm327_vm2, %v323_v19, %v331_v28 }
  0xa6   : > { %339 = vadd.xlane.f32.xlu0 %v338_v32  ;;  %vm326_vm3 = vcmp.ge.f32.partialorder %v322_v30, 0.0  ;;  %v330_v34 = vmul.f32 0.2, %v322_v30  ;;  %vm328_vm4 = vcmp.ge.f32.partialorder %v324_v29, 0.0  ;;  %v332_v35 = vmul.f32 0.2, %v324_v29 }
  0xa7   : > { %v344_v37 = vsel %vm337_vm0, %v335_v33, 0.0 }
  0xa8   : > { %v334_v36 = vsel %vm326_vm3, %v322_v30, %v330_v34  ;;  %v336_v39 = vsel %vm328_vm4, %v324_v29, %v332_v35 }
  0xa9   : > { %v341_v38 = vsel %vm337_vm0, %v334_v36, 0.0  ;;  %v347_v40 = vsel %vm337_vm0, %v336_v39, 0.0 }
  0xaa   : > { %345 = vadd.xlane.f32.xlu0 %v344_v37  ;;  %342 = vadd.xlane.f32.xlu1 %v341_v38 }
  0xae   : > { %348 = vadd.xlane.f32.xlu0 %v347_v40 }
  0xbb   : > { %393 = vperm.xlu1 %553, %v289_v41  }
  0xbf   : > { %403 = vperm.xlu1 %553, %v291_v42  }
  0xc3   : > { %417 = vperm.xlu1 %553, %v293_v43  }
  0xc4   : > { %398 = vperm.xlu0 %552, %v290_v44  }
  0xc7   : > { %422 = vperm.xlu1 %553, %v294_v45  }
  0xc8   : > { %408 = vperm.xlu0 %552, %v292_v46  }
 0x133   : > { %v340_v47 = vpop.xlane.xlu0 %339 }
 0x134   : > { %v351_v48 = vmul.f32 0.0625, %v340_v47 }
 0x136   : > { %v355_v49 = vsub.f32 %v333_v31, %v351_v48 }
 0x137   : > { %v343_v50 = vpop.xlane.xlu1 %342  ;;  %v346_v51 = vpop.xlane.xlu0 %345 }
 0x138   : > { %v352_v52 = vmul.f32 0.0625, %v343_v50  ;;  %v353_v53 = vmul.f32 0.0625, %v346_v51  ;;  %v359_v54 = vmul.f32 %v355_v49, %v355_v49 }
 0x13a   : > { %v356_v55 = vsub.f32 %v334_v36, %v352_v52  ;;  %v357_v56 = vsub.f32 %v335_v33, %v353_v53  ;;  %v363_v57 = vsel %vm337_vm0, %v359_v54, 0.0 }
 0x13b   : > { %364 = vadd.xlane.f32.xlu1 %v363_v57  ;;  %v349_v58 = vpop.xlane.xlu0 %348  ;;  %v394_v5 = vpop.permute.xlu1 %393 }
 0x13c   : > { %v354_v59 = vmul.f32 0.0625, %v349_v58  ;;  %v360_v60 = vmul.f32 %v356_v55, %v356_v55  ;;  %v361_v61 = vmul.f32 %v357_v56, %v357_v56 }
 0x13e   : > { %v358_v62 = vsub.f32 %v336_v39, %v354_v59  ;;  %v366_v63 = vsel %vm337_vm0, %v360_v60, 0.0  ;;  %v369_v0 = vsel %vm337_vm0, %v361_v61, 0.0 }
 0x13f   : > { %367 = vadd.xlane.f32.xlu0 %v366_v63  ;;  %370 = vadd.xlane.f32.xlu1 %v369_v0  ;;  %v404_v6 = vpop.permute.xlu1 %403 }
 0x140   : > { %v362_v1 = vmul.f32 %v358_v62, %v358_v62 }
 0x142   : > { %v372_v2 = vsel %vm337_vm0, %v362_v1, 0.0 }
 0x143   : > { %373 = vadd.xlane.f32.xlu0 %v372_v2  ;;  %v418_v7 = vpop.permute.xlu1 %417  ;;  %v399_v8 = vpop.permute.xlu0 %398 }
 0x147   : > { %v423_v9 = vpop.permute.xlu1 %422  ;;  %v409_v10 = vpop.permute.xlu0 %408 }
 0x150   : > { %432 = vperm.xlu1 %553, %v296_v3  }
 0x159   : > { %427 = vperm.xlu0 %552, %v295_v4  }
 0x1c8   : > { %v365_v11 = vpop.xlane.xlu1 %364 }
 0x1c9   : > { %v375_v12 = vmul.f32 0.0625, %v365_v11 }
 0x1cb   : > { %v379_v13 = vadd.f32 1e-05, %v375_v12 }
 0x1cc   : > { %v371_v14 = vpop.xlane.xlu1 %370  ;;  %v368_v15 = vpop.xlane.xlu0 %367 }
 0x1cd   : > { %554 = vrsqrt.f32 %v379_v13  ;;  %v377_v16 = vmul.f32 0.0625, %v371_v14  ;;  %v376_v17 = vmul.f32 0.0625, %v368_v15 }
 0x1cf   : > { %v381_v18 = vadd.f32 1e-05, %v377_v16  ;;  %v380_v19 = vadd.f32 1e-05, %v376_v17 }
 0x1d0   : > { %v374_v20 = vpop.xlane.xlu0 %373  ;;  %v433_v42 = vpop.permute.xlu1 %432 }
 0x1d1   : > { %556 = vrsqrt.f32 %v381_v18  ;;  %v378_v21 = vmul.f32 0.0625, %v374_v20 }
 0x1d2   : > { %558 = vrsqrt.f32 %v380_v19 }
 0x1d3   : > { %v382_v22 = vadd.f32 1e-05, %v378_v21 }
 0x1d5   : > { %560 = vrsqrt.f32 %v382_v22 }
 0x1d7   : > { %v555_v23 = vpop.eup %554 }
 0x1d8   : > { %v387_v24 = vmul.f32 %v555_v23, %v355_v49  ;;  %v428_v35 = vpop.permute.xlu0 %427 }
 0x1da   : > { %v411_v25 = vmul.f32 %v394_v5, %v387_v24 }
 0x1db   : > { %v557_v26 = vpop.eup %556 }
 0x1dc   : > { %v559_v27 = vpop.eup %558  ;;  %v435_v28 = vadd.f32 %v418_v7, %v411_v25  ;;  %v389_v29 = vmul.f32 %v557_v26, %v357_v56 }
 0x1dd   : > { %v388_v30 = vmul.f32 %v559_v27, %v356_v55 }
 0x1de   : > { %v439_v31 = vpack.c.bf16 %v435_v28, %v435_v28  ;;  %v413_v32 = vmul.f32 %v404_v6, %v389_v29 }
 0x1df   : > { %v561_v33 = vpop.eup %560  ;;  %v412_v34 = vmul.f32 %v399_v8, %v388_v30 }
 0x1e0   : > { %v390_v36 = vmul.f32 %v561_v33, %v358_v62  ;;  %444 = vst.msk [vmem:[%s274_s11] sm:$0x1] %vm443_vm5, %v439_v31  ;;  %v437_v37 = vadd.f32 %v428_v35, %v413_v32 }
 0x1e1   : > { %v436_v38 = vadd.f32 %v423_v9, %v412_v34 }
 0x1e2   : > { %v414_v39 = vmul.f32 %v409_v10, %v390_v36  ;;  %v441_v40 = vpack.c.bf16 %v437_v37, %v437_v37 }
 0x1e3   : > { %v440_v41 = vpack.c.bf16 %v436_v38, %v436_v38 }
 0x1e4   : > { %v438_v43 = vadd.f32 %v433_v42, %v414_v39  ;;  %446 = vst.msk [vmem:[%s274_s11 + $0x2] sm:$0x1] %vm443_vm5, %v441_v40 }
 0x1e5   : > { %445 = vst.msk [vmem:[%s274_s11 + $0x1] sm:$0x1] %vm443_vm5, %v440_v41 }
 0x1e6   : > { %v442_v44 = vpack.c.bf16 %v438_v43, %v438_v43 }
 0x1e8   : > { %447 = vst.msk [vmem:[%s274_s11 + $0x3] sm:$0x1] %vm443_vm5, %v442_v44 }
 0x1e9 PF: > { %p10_p9 = scmp.ge.s32.totalorder %s624_s16, 4   ;;  %s699_s12 = smov %s580_s13 }
 0x1ea   : > { %s700_s13 = smov %s633_s19  ;;  %s701_s14 = smov %s624_s16 }
 0x1eb   :  { %12 = sbr.rel (!%p10_p9) target bundleno = 2 (0x2), region = 111 }

// kernel: generator_forward.29
= control target key start
LH: loop header
LB: loop body
LE: loop exit
PB: predicated region body
PF: predicated region fallthrough
CT: control target
= control target key end

     0   :  { %v160_v0 = vmov 0.0   ;;  %vm161_vm0 = vmmov 0   ;;  %v162_v2 = vmov 0   ;;  %vm62_vm1 = vcmask 1043456   ;;  %s207_s1 = inlined_call_operand.vmem [shape: bf16[72,128], index: 1, kind: input, shape index: {}]   ;;  %s208_s2 = inlined_call_operand.vmem [shape: f32[8,1], index: 2, kind: input, shape index: {}]   ;;  %s209_s0 = inlined_call_operand.vmem [shape: bf16[8,72], index: 0, kind: input, shape index: {}]   ;;  %s210_s3 = inlined_call_operand.vmem [shape: bf16[8,128], index: 3, kind: output, shape index: {}]  }
   0x1   :  { %137 = vmatprep.subr.bf16.mxu0 %v160_v0  ;;  %v155_v1 = vld [vmem:[%s207_s1] sm:$0xff]   ;;  %147 = vmatprep.mubr.msk.bf16.mxu0 %vm161_vm0, %v160_v0  ;;  %v156_v3 = vld [vmem:[%s207_s1 + $0x8] sm:$0xff]   ;;  %v157_v5 = vld [vmem:[%s207_s1 + $0x10] sm:$0xff]   ;;  %vm58_vm2 = vcmask 588800  }
   0x2   :  { %154 = vset.pattern.permute.xlu0 %v162_v2  ;;  %138 = vmatpush3.bf16.msra.mxu0 %v155_v1  ;;  %v112_v4 = vld [vmem:[%s208_s2] sm:$0xff]  ;;  %v158_v6 = vld [vmem:[%s207_s1 + $0x18] sm:$0xff]  }
   0x3   :  { %139 = vmatprep.subr.bf16.mxu0 %v160_v0  ;;  %115 = vperm.xlu0 %154, %v112_v4   ;;  %v159_v7 = vld [vmem:[%s207_s1 + $0x20] ss:$0 sps:$4 sm:$0xff]  }
   0x4   :  { %v64_v8 = vsel %vm62_vm1, %v159_v7, 0  ;;  %v21_v9 = vld [vmem:[%s209_s0] sm:$0xf] }
   0x6   :  { %140 = vmatpush3.bf16.msra.mxu0 %v156_v3 }
   0x7   :  { %141 = vmatprep.subr.bf16.mxu0 %v160_v0 }
   0xa   :  { %142 = vmatpush3.bf16.msra.mxu0 %v157_v5 }
   0xb   :  { %143 = vmatprep.subr.bf16.mxu0 %v160_v0 }
   0xe   :  { %144 = vmatpush3.bf16.msra.mxu0 %v158_v6 }
   0xf   :  { %145 = vmatprep.subr.bf16.mxu0 %v160_v0 }
  0x12   :  { %146 = vmatpush3.bf16.msra.mxu0 %v64_v8 }
  0x15   :  { %148 = vmatmul.mubr.msk.bf16.vlgmr.msra.gmra.mrb[0].mxu0 %vm58_vm2, %v21_v9 }
  0x82   :  { %v116_v10 = vpop.permute.xlu0 %115 }
  0xe8   :  { %v100_v11 = vpop.f32.mrb[0].mxu0 }
  0xe9   :  { %v118_v12 = vadd.f32 %v116_v10, %v100_v11  ;;  %v149_v13 = vpop.f32.mrb[1].mxu0 }
  0xea   :  { %v103_v14 = vpop.f32.mrb[2].mxu0 }
  0xeb   :  { %v119_v15 = vpack.c.bf16 %v118_v12, %v118_v12  ;;  %v150_v16 = vpop.f32.mrb[3].mxu0 }
  0xed   :  { %120 = vst [vmem:[%s210_s3] sm:$0xf] %v119_v15 }

// kernel: generator_forward.31
= control target key start
LH: loop header
LB: loop body
LE: loop exit
PB: predicated region body
PF: predicated region fallthrough
CT: control target
= control target key end

     0   :  { %s607_s12 = smov 0   ;;  %s609_s13 = smov 0   ;;  %s695_s0 = inlined_call_operand.vmem [shape: bf16[8,2,64], index: 0, kind: input, shape index: {}]   ;;  %s696_s1 = inlined_call_operand.vmem [shape: f32[1,2,64], index: 1, kind: input, shape index: {}]   ;;  %s697_s2 = inlined_call_operand.vmem [shape: f32[3,8,2,1], index: 2, kind: input, shape index: {}]   ;;  %s698_s3 = inlined_call_operand.vmem [shape: bf16[8,2,64], index: 3, kind: output, shape index: {}]  }
   0x1   :  { %s611_s14 = smov 0  }
   0x2 LB: > { %s513_s15 = sadd.s32 4294967295, %s584_s14   ;;  %s624_s16 = sadd.s32 1, %s584_s14   ;;  %s584_s14 = sphi %s611_s14, %s701_s14   ;;  %s580_s13 = sphi %s609_s13, %s700_s13   ;;  %s576_s12 = sphi %s607_s12, %s699_s12  }
   0x3   : > { %s64_s17 = ssub.s32 %s584_s14, %s624_s16  ;;  %s67_s18 = sadd.s32 1, %s580_s13 }
   0x4   : > { %p65_p0 = scmp.eq.s32.totalorder %s64_s17, 0  ;;  %p74_p1 = scmp.ne.s32.totalorder %s580_s13, %s576_s12 }
   0x5   : > { %p75_p2 = scmp.eq.s32.totalorder %s584_s14, 0  ;;  %p516_p4 = scmp.ge.s32.totalorder %s584_s14, 2 }
   0x6   : > { %s633_s19 = scalar_select %p65_p0, %s580_s13, %s67_s18  }
   0x7   : > { %p76_p3 = por %p75_p2, %p74_p1  ;;  %129 = sbr.rel (%p516_p4) target bundleno = 21 (0x15), region = 20 }
   0xe   : > { %140 = sbr.rel (!%p76_p3) target bundleno = 21 (0x15), region = 28  ;;  %s142_s20 = sand.u32 (%p76_p3), 1, %s580_s13  }
   0xf   : > { %s524_s21 = sshll.u32 (%p76_p3), %s584_s14, 3  ;;  %s525_s22 = smul.u32 (%p76_p3), 24, %s142_s20 }
  0x10   : > { %s147_s25 = scalar_lea.vmem (%p76_p3), %s697_s2, %s524_s21 }
  0x11   : > { %v163_v0 = vld [vmem:[%s147_s25] sm:$0xff] (%p76_p3)   ;;  %v171_v1 = vld [vmem:[%s147_s25 + $0x10] sm:$0xff] (%p76_p3)   ;;  %s144_s26 = scalar_lea.vmem (%p76_p3), [#allocation2], %s525_s22 }
  0x12   : > { %v179_v2 = vld [vmem:[%s147_s25 + $0x20] sm:$0xff] (%p76_p3)   ;;  %164 = vst [vmem:[%s144_s26] sm:$0xff] (%p76_p3), %v163_v0   ;;  %172 = vst [vmem:[%s144_s26 + $0x8] sm:$0xff] (%p76_p3), %v171_v1  }
  0x13   : > { %180 = vst [vmem:[%s144_s26 + $0x10] sm:$0xff] (%p76_p3), %v179_v2  }
  0x15 PF: > { %p519_p5 = scmp.ge.s32.totalorder %s584_s14, 1  ;;  %p232_p6 = scmp.lt.s32.totalorder %s584_s14, 3 }
  0x17   : > { %p233_p7 = pnand %p519_p5, %p232_p6 }
  0x18   : > { %s239_s27 = sand.u32 (!%p233_p7), 1, %s576_s12   ;;  %v586_v3 = vmov (!%p233_p7), 0   ;;  %s520_s30 = sshll.u32 (!%p233_p7), %s513_s15, 2  ;;  %v284_v10 = vld [vmem:[%s696_s1] sm:$0x3] (!%p233_p7)  ;;  %vm337_vm0 = vcmask (!%p233_p7), 517120  }
  0x19   : > { %236 = sbr.rel (%p233_p7) target bundleno = 489 (0x1e9), region = 69  ;;  %553 = vset.pattern.permute.xlu1 (!%p233_p7), %v586_v3  ;;  %552 = vset.pattern.permute.xlu0 (!%p233_p7), %v586_v3  ;;  %p266_p8 = scmp.lt.s32.totalorder (!%p233_p7), %s520_s30, 7  ;;  %vm443_vm5 = vcmask (!%p233_p7), 516096  }
  0x1a   : > { %s526_s28 = smul.u32 (!%p233_p7), 24, %s239_s27 }
  0x1c   : > { %s644_s29 = scalar_lea.vmem (!%p233_p7), [#allocation2], %s526_s28 }
  0x1d   : > { %v287_v4 = vld [vmem:[%s644_s29 + $0x4] sm:$0x3] (!%p233_p7)  ;;  %v285_v5 = vld [vmem:[%s644_s29] sm:$0x3] (!%p233_p7)  ;;  %v288_v6 = vld [vmem:[%s644_s29 + $0x6] sm:$0x3] (!%p233_p7) }
  0x1e   : > { %309 = vperm.xlu1 (!%p233_p7), %553, %v287_v4   ;;  %299 = vperm.xlu0 (!%p233_p7), %552, %v285_v5   ;;  %v286_v7 = vld [vmem:[%s644_s29 + $0x2] sm:$0x3] (!%p233_p7)  ;;  %v289_v41 = vld [vmem:[%s644_s29 + $0x8] sm:$0x3] (!%p233_p7)  ;;  %v291_v42 = vld [vmem:[%s644_s29 + $0xc] sm:$0x3] (!%p233_p7) }
  0x1f   : > { %v293_v43 = vld [vmem:[%s644_s29 + $0x10] sm:$0x3] (!%p233_p7)  ;;  %v290_v44 = vld [vmem:[%s644_s29 + $0xa] sm:$0x3] (!%p233_p7)  ;;  %v294_v45 = vld [vmem:[%s644_s29 + $0x12] sm:$0x3] (!%p233_p7) }
  0x20   : > { %s703_s30 = smov (!%p266_p8, %s520_s30), 7  ;;  %v292_v46 = vld [vmem:[%s644_s29 + $0xe] sm:$0x3]  ;;  %v296_v3 = vld [vmem:[%s644_s29 + $0x16] sm:$0x3] }
  0x21   : > { %s268_s6 = scalar_lea.vmem %s695_s0, %s703_s30  ;;  %v295_v4 = vld [vmem:[%s644_s29 + $0x14] sm:$0x3]  ;;  %s274_s11 = scalar_lea.vmem %s698_s3, %s703_s30 }
  0x22   : > { %314 = vperm.xlu1 %553, %v288_v6   ;;  %304 = vperm.xlu0 %552, %v286_v7   ;;  %v278_v8 = vld [vmem:[%s268_s6 + $0x2] sm:$0x1]  ;;  %v276_v9 = vld [vmem:[%s268_s6] sm:$0x1]  ;;  %v279_v15 = vld [vmem:[%s268_s6 + $0x3] sm:$0x1] }
  0x23   : > { %v282_v11 = vunpack.c.l.bf16 %v278_v8  ;;  %v280_v12 = vunpack.c.l.bf16 %v276_v9  ;;  %v277_v16 = vld [vmem:[%s268_s6 + $0x1] sm:$0x1]  ;;  %v283_v21 = vunpack.c.l.bf16 %v279_v15 }
  0x24   : > { %v281_v22 = vunpack.c.l.bf16 %v277_v16 }
  0x9d   : > { %v310_v13 = vpop.permute.xlu1 %309  ;;  %v300_v14 = vpop.permute.xlu0 %299 }
  0x9e   : > { %v319_v17 = vmul.f32 %v310_v13, %v284_v10  ;;  %v317_v18 = vmul.f32 %v300_v14, %v284_v10 }
  0xa0   : > { %v323_v19 = vadd.f32 %v319_v17, %v282_v11  ;;  %v321_v20 = vadd.f32 %v317_v18, %v280_v12 }
  0xa1   : > { %v315_v23 = vpop.permute.xlu1 %314  ;;  %v305_v24 = vpop.permute.xlu0 %304 }
  0xa2   : > { %v320_v25 = vmul.f32 %v315_v23, %v284_v10  ;;  %v318_v26 = vmul.f32 %v305_v24, %v284_v10  ;;  %vm325_vm1 = vcmp.ge.f32.partialorder %v321_v20, 0.0  ;;  %v329_v27 = vmul.f32 0.2, %v321_v20 }
  0xa3   : > { %vm327_vm2 = vcmp.ge.f32.partialorder %v323_v19, 0.0  ;;  %v331_v28 = vmul.f32 0.2, %v323_v19 }
  0xa4   : > { %v324_v29 = vadd.f32 %v320_v25, %v283_v21  ;;  %v322_v30 = vadd.f32 %v318_v26, %v281_v22  ;;  %v333_v31 = vsel %vm325_vm1, %v321_v20, %v329_v27 }
  0xa5   : > { %v338_v32 = vsel %vm337_vm0, %v333_v31, 0.0  ;;  %v335_v33 = vsel %vm327_vm2, %v323_v19, %v331_v28 }
  0xa6   : > { %339 = vadd.xlane.f32.xlu0 %v338_v32  ;;  %vm326_vm3 = vcmp.ge.f32.partialorder %v322_v30, 0.0  ;;  %v330_v34 = vmul.f32 0.2, %v322_v30  ;;  %vm328_vm4 = vcmp.ge.f32.partialorder %v324_v29, 0.0  ;;  %v332_v35 = vmul.f32 0.2, %v324_v29 }
  0xa7   : > { %v344_v37 = vsel %vm337_vm0, %v335_v33, 0.0 }
  0xa8   : > { %v334_v36 = vsel %vm326_vm3, %v322_v30, %v330_v34  ;;  %v336_v39 = vsel %vm328_vm4, %v324_v29, %v332_v35 }
  0xa9   : > { %v341_v38 = vsel %vm337_vm0, %v334_v36, 0.0  ;;  %v347_v40 = vsel %vm337_vm0, %v336_v39, 0.0 }
  0xaa   : > { %345 = vadd.xlane.f32.xlu0 %v344_v37  ;;  %342 = vadd.xlane.f32.xlu1 %v341_v38 }
  0xae   : > { %348 = vadd.xlane.f32.xlu0 %v347_v40 }
  0xbb   : > { %393 = vperm.xlu1 %553, %v289_v41  }
  0xbf   : > { %403 = vperm.xlu1 %553, %v291_v42  }
  0xc3   : > { %417 = vperm.xlu1 %553, %v293_v43  }
  0xc4   : > { %398 = vperm.xlu0 %552, %v290_v44  }
  0xc7   : > { %422 = vperm.xlu1 %553, %v294_v45  }
  0xc8   : > { %408 = vperm.xlu0 %552, %v292_v46  }
 0x133   : > { %v340_v47 = vpop.xlane.xlu0 %339 }
 0x134   : > { %v351_v48 = vmul.f32 0.015625, %v340_v47 }
 0x136   : > { %v355_v49 = vsub.f32 %v333_v31, %v351_v48 }
 0x137   : > { %v343_v50 = vpop.xlane.xlu1 %342  ;;  %v346_v51 = vpop.xlane.xlu0 %345 }
 0x138   : > { %v352_v52 = vmul.f32 0.015625, %v343_v50  ;;  %v353_v53 = vmul.f32 0.015625, %v346_v51  ;;  %v359_v54 = vmul.f32 %v355_v49, %v355_v49 }
 0x13a   : > { %v356_v55 = vsub.f32 %v334_v36, %v352_v52  ;;  %v357_v56 = vsub.f32 %v335_v33, %v353_v53  ;;  %v363_v57 = vsel %vm337_vm0, %v359_v54, 0.0 }
 0x13b   : > { %364 = vadd.xlane.f32.xlu1 %v363_v57  ;;  %v349_v58 = vpop.xlane.xlu0 %348  ;;  %v394_v5 = vpop.permute.xlu1 %393 }
 0x13c   : > { %v354_v59 = vmul.f32 0.015625, %v349_v58  ;;  %v360_v60 = vmul.f32 %v356_v55, %v356_v55  ;;  %v361_v61 = vmul.f32 %v357_v56, %v357_v56 }
 0x13e   : > { %v358_v62 = vsub.f32 %v336_v39, %v354_v59  ;;  %v366_v63 = vsel %vm337_vm0, %v360_v60, 0.0  ;;  %v369_v0 = vsel %vm337_vm0, %v361_v61, 0.0 }
 0x13f   : > { %367 = vadd.xlane.f32.xlu0 %v366_v63  ;;  %370 = vadd.xlane.f32.xlu1 %v369_v0  ;;  %v404_v6 = vpop.permute.xlu1 %403 }
 0x140   : > { %v362_v1 = vmul.f32 %v358_v62, %v358_v62 }
 0x142   : > { %v372_v2 = vsel %vm337_vm0, %v362_v1, 0.0 }
 0x143   : > { %373 = vadd.xlane.f32.xlu0 %v372_v2  ;;  %v418_v7 = vpop.permute.xlu1 %417  ;;  %v399_v8 = vpop.permute.xlu0 %398 }
 0x147   : > { %v423_v9 = vpop.permute.xlu1 %422  ;;  %v409_v10 = vpop.permute.xlu0 %408 }
 0x150   : > { %432 = vperm.xlu1 %553, %v296_v3  }
 0x159   : > { %427 = vperm.xlu0 %552, %v295_v4  }
 0x1c8   : > { %v365_v11 = vpop.xlane.xlu1 %364 }
 0x1c9   : > { %v375_v12 = vmul.f32 0.015625, %v365_v11 }
 0x1cb   : > { %v379_v13 = vadd.f32 1e-05, %v375_v12 }
 0x1cc   : > { %v371_v14 = vpop.xlane.xlu1 %370  ;;  %v368_v15 = vpop.xlane.xlu0 %367 }
 0x1cd   : > { %554 = vrsqrt.f32 %v379_v13  ;;  %v377_v16 = vmul.f32 0.015625, %v371_v14  ;;  %v376_v17 = vmul.f32 0.015625, %v368_v15 }
 0x1cf   : > { %v381_v18 = vadd.f32 1e-05, %v377_v16  ;;  %v380_v19 = vadd.f32 1e-05, %v376_v17 }
 0x1d0   : > { %v374_v20 = vpop.xlane.xlu0 %373  ;;  %v433_v42 = vpop.permute.xlu1 %432 }
 0x1d1   : > { %556 = vrsqrt.f32 %v381_v18  ;;  %v378_v21 = vmul.f32 0.015625, %v374_v20 }
 0x1d2   : > { %558 = vrsqrt.f32 %v380_v19 }
 0x1d3   : > { %v382_v22 = vadd.f32 1e-05, %v378_v21 }
 0x1d5   : > { %560 = vrsqrt.f32 %v382_v22 }
 0x1d7   : > { %v555_v23 = vpop.eup %554 }
 0x1d8   : > { %v387_v24 = vmul.f32 %v555_v23, %v355_v49  ;;  %v428_v35 = vpop.permute.xlu0 %427 }
 0x1da   : > { %v411_v25 = vmul.f32 %v394_v5, %v387_v24 }
 0x1db   : > { %v557_v26 = vpop.eup %556 }
 0x1dc   : > { %v559_v27 = vpop.eup %558  ;;  %v435_v28 = vadd.f32 %v418_v7, %v411_v25  ;;  %v389_v29 = vmul.f32 %v557_v26, %v357_v56 }
 0x1dd   : > { %v388_v30 = vmul.f32 %v559_v27, %v356_v55 }
 0x1de   : > { %v439_v31 = vpack.c.bf16 %v435_v28, %v435_v28  ;;  %v413_v32 = vmul.f32 %v404_v6, %v389_v29 }
 0x1df   : > { %v561_v33 = vpop.eup %560  ;;  %v412_v34 = vmul.f32 %v399_v8, %v388_v30 }
 0x1e0   : > { %v390_v36 = vmul.f32 %v561_v33, %v358_v62  ;;  %444 = vst.msk [vmem:[%s274_s11] sm:$0x1] %vm443_vm5, %v439_v31  ;;  %v437_v37 = vadd.f32 %v428_v35, %v413_v32 }
 0x1e1   : > { %v436_v38 = vadd.f32 %v423_v9, %v412_v34 }
 0x1e2   : > { %v414_v39 = vmul.f32 %v409_v10, %v390_v36  ;;  %v441_v40 = vpack.c.bf16 %v437_v37, %v437_v37 }
 0x1e3   : > { %v440_v41 = vpack.c.bf16 %v436_v38, %v436_v38 }
 0x1e4   : > { %v438_v43 = vadd.f32 %v433_v42, %v414_v39  ;;  %446 = vst.msk [vmem:[%s274_s11 + $0x2] sm:$0x1] %vm443_vm5, %v441_v40 }
 0x1e5   : > { %445 = vst.msk [vmem:[%s274_s11 + $0x1] sm:$0x1] %vm443_vm5, %v440_v41 }
 0x1e6   : > { %v442_v44 = vpack.c.bf16 %v438_v43, %v438_v43 }
 0x1e8   : > { %447 = vst.msk [vmem:[%s274_s11 + $0x3] sm:$0x1] %vm443_vm5, %v442_v44 }
 0x1e9 PF: > { %p10_p9 = scmp.ge.s32.totalorder %s624_s16, 4   ;;  %s699_s12 = smov %s580_s13 }
 0x1ea   : > { %s700_s13 = smov %s633_s19  ;;  %s701_s14 = smov %s624_s16 }
 0x1eb   :  { %12 = sbr.rel (!%p10_p9) target bundleno = 2 (0x2), region = 111 }

// kernel: generator_forward.35
= control target key start
LH: loop header
LB: loop body
LE: loop exit
PB: predicated region body
PF: predicated region fallthrough
CT: control target
= control target key end

     0   :  { %v358_v1 = vmov 0   ;;  %vm136_vm0 = vcmask 1043456   ;;  %vm132_vm1 = vcmask 588800   ;;  %v359_v27 = vmov 839922192   ;;  %s444_s1 = inlined_call_operand.vmem [shape: bf16[72,512], index: 1, kind: input, shape index: {}]   ;;  %s445_s2 = inlined_call_operand.vmem [shape: f32[4,1], index: 2, kind: input, shape index: {}]   ;;  %s446_s0 = inlined_call_operand.vmem [shape: bf16[4,72], index: 0, kind: input, shape index: {}]   ;;  %s447_s3 = inlined_call_operand.vmem [shape: bf16[4,512], index: 3, kind: output, shape index: {}]  }
   0x1   :  { %v330_v0 = vld [vmem:[%s444_s1 + $0x4] ss:$16 sps:$4 sm:$0xff]   ;;  %181 = vmatprep.mubr.bf16.mxu0 %v358_v1  ;;  %222 = vmatprep.mubr.bf16.mxu1 %v358_v1  ;;  %v332_v2 = vld [vmem:[%s444_s1 + $0xc] ss:$16 sps:$4 sm:$0xff]   ;;  %v334_v3 = vld [vmem:[%s444_s1] ss:$16 sps:$4 sm:$0xff]   ;;  %v254_v28 = vunpack.c.l.s4 %v359_v27  ;;  %v256_v29 = vlaneseq }
   0x2   :  { %329 = vset.pattern.permute.xlu0 %v358_v1  ;;  %149 = vmatprep.subr.bf16.mxu0 %v330_v0  ;;  %v335_v4 = vld [vmem:[%s444_s1 + $0x8] ss:$16 sps:$4 sm:$0xff]   ;;  %v336_v5 = vld [vmem:[%s444_s1 + $0x24] ss:$16 sps:$4 sm:$0xff]   ;;  %v338_v6 = vld [vmem:[%s444_s1 + $0x2c] ss:$16 sps:$4 sm:$0xff]  }
   0x3   :  { %190 = vmatprep.subr.bf16.mxu1 %v332_v2  ;;  %150 = vmatpush1.bf16.msra.mxu0 %v334_v3  ;;  %v340_v7 = vld [vmem:[%s444_s1 + $0x20] ss:$16 sps:$4 sm:$0xff]   ;;  %v341_v8 = vld [vmem:[%s444_s1 + $0x28] ss:$16 sps:$4 sm:$0xff]   ;;  %v342_v9 = vld [vmem:[%s444_s1 + $0x44] ss:$16 sps:$4 sm:$0xff]   ;;  %v255_v30 = vunpack.c.0.s8 %v254_v28 }
   0x4   :  { %191 = vmatpush1.bf16.msra.mxu1 %v335_v4  ;;  %151 = vmatprep.subr.bf16.mxu0 %v336_v5  ;;  %v344_v10 = vld [vmem:[%s444_s1 + $0x4c] ss:$16 sps:$4 sm:$0xff]   ;;  %v346_v11 = vld [vmem:[%s444_s1 + $0x40] ss:$16 sps:$4 sm:$0xff]   ;;  %v347_v12 = vld [vmem:[%s444_s1 + $0x48] ss:$16 sps:$4 sm:$0xff]  }
   0x5   :  { %192 = vmatprep.subr.bf16.mxu1 %v338_v6  ;;  %v348_v13 = vld [vmem:[%s444_s1 + $0x64] ss:$16 sps:$4 sm:$0xff]   ;;  %v350_v14 = vld [vmem:[%s444_s1 + $0x6c] ss:$16 sps:$4 sm:$0xff]   ;;  %v248_v17 = vld [vmem:[%s445_s2] sm:$0xf] }
   0x6   :  { %v40_v15 = vld [vmem:[%s444_s1 + $0x80] sm:$0xff]  ;;  %v41_v16 = vld [vmem:[%s444_s1 + $0x88] sm:$0xff]  ;;  %251 = vperm.xlu0 %329, %v248_v17   ;;  %v257_v31 = vshrl.u32 %v256_v29, 7  ;;  %v360_v34 = vmov 1983009808  }
   0x7   :  { %152 = vmatpush1.bf16.msra.mxu0 %v340_v7  ;;  %v352_v18 = vld [vmem:[%s444_s1 + $0x60] ss:$16 sps:$4 sm:$0xff]   ;;  %v353_v19 = vld [vmem:[%s444_s1 + $0x68] ss:$16 sps:$4 sm:$0xff]   ;;  %v317_v20 = vcombine.high %v40_v15, %v40_v15  ;;  %v319_v21 = vcombine.high %v41_v16, %v41_v16  ;;  %v316_v22 = vcombine.low %v40_v15, %v40_v15  ;;  %v318_v23 = vcombine.low %v41_v16, %v41_v16 }
   0x8   :  { %193 = vmatpush1.bf16.msra.mxu1 %v341_v8  ;;  %153 = vmatprep.subr.bf16.mxu0 %v342_v9  ;;  %v23_v26 = vld [vmem:[%s446_s0] sm:$0x3]  ;;  %v258_v32 = vsub.s32 %v255_v30, %v257_v31  ;;  %v280_v35 = vunpack.c.l.s4 %v360_v34 }
   0x9   :  { %194 = vmatprep.subr.bf16.mxu1 %v344_v10  ;;  %v138_v24 = vsel %vm136_vm0, %v316_v22, 0  ;;  %v144_v25 = vsel %vm136_vm0, %v318_v23, 0 }
   0xa   :  { %v281_v41 = vunpack.c.0.s8 %v280_v35 }
   0xb   :  { %154 = vmatpush1.bf16.msra.mxu0 %v346_v11 }
   0xc   :  { %195 = vmatpush1.bf16.msra.mxu1 %v347_v12  ;;  %155 = vmatprep.subr.bf16.mxu0 %v348_v13  ;;  %v284_v50 = vsub.s32 %v281_v41, %v257_v31 }
   0xd   :  { %196 = vmatprep.subr.bf16.mxu1 %v350_v14 }
   0xf   :  { %156 = vmatpush1.bf16.msra.mxu0 %v352_v18 }
  0x10   :  { %197 = vmatpush1.bf16.msra.mxu1 %v353_v19  ;;  %320 = vmatprep.subr.msk.bf16.mxu0 %vm136_vm0, %v317_v20 }
  0x11   :  { %322 = vmatprep.subr.msk.bf16.mxu1 %vm136_vm0, %v319_v21 }
  0x13   :  { %158 = vmatpush1.bf16.msra.mxu0 %v138_v24 }
  0x14   :  { %199 = vmatpush1.bf16.msra.mxu1 %v144_v25 }
  0x16   :  { %321 = vmatmul.mubr.msk.bf16.vlgmr.msra.gmra.mrb[0].mxu0 %vm132_vm1, %v23_v26 }
  0x17   :  { %323 = vmatmul.mubr.msk.bf16.vlgmr.msra.gmra.mrb[0].mxu1 %vm132_vm1, %v23_v26 }
  0x85   :  { %v252_v33 = vpop.permute.xlu0 %251 }
  0x86   :  { %v259_v38 = vrot.slane %v252_v33, %v258_v32 }
  0xe9   :  { %v183_v36 = vpop.f32.mrb[0].mxu0 }
  0xea   :  { %v224_v37 = vpop.f32.mrb[0].mxu1  ;;  %v185_v39 = vpop.f32.mrb[1].mxu0 }
  0xeb   :  { %v226_v40 = vpop.f32.mrb[1].mxu1  ;;  %v235_v42 = vcombine.low %v183_v36, %v185_v39  ;;  %v187_v44 = vpop.f32.mrb[2].mxu0 }
  0xec   :  { %v236_v43 = vcombine.low %v224_v37, %v226_v40  ;;  %v228_v45 = vpop.f32.mrb[2].mxu1  ;;  %v188_v46 = vpop.f32.mrb[3].mxu0 }
  0xed   :  { %v229_v47 = vpop.f32.mrb[3].mxu1  ;;  %v261_v48 = vadd.f32 %v259_v38, %v235_v42 }
  0xee   :  { %v262_v49 = vadd.f32 %v259_v38, %v236_v43 }
  0xef   :  { %v265_v51 = vcombine.high %v261_v48, %v261_v48 }
  0xf0   :  { %v266_v52 = vcombine.high %v262_v49, %v262_v49 }
  0xf1   :  { %v324_v53 = vpack.c.bf16 %v265_v51, %v261_v48 }
  0xf2   :  { %v325_v54 = vpack.c.bf16 %v266_v52, %v262_v49 }
  0xf3   :  { %v285_v55 = vrot.slane %v324_v53, %v284_v50 }
  0xf4   :  { %v292_v56 = vrot.slane %v325_v54, %v284_v50 }
  0xf6   :  { %v293_v57 = vcombine.low %v285_v55, %v292_v56 }
  0xf8   :  { %295 = vst [vmem:[%s447_s3] sm:$0xff] %v293_v57 }

// kernel: generator_forward.36
= control target key start
LH: loop header
LB: loop body
LE: loop exit
PB: predicated region body
PF: predicated region fallthrough
CT: control target
= control target key end

     0   :  { %vm19_vm0 = vcmask 58368   ;;  %v122_v0 = vmov 0.0   ;;  %vm123_vm1 = vmmov 0   ;;  %vm39_vm2 = vcmask 261120   ;;  %s162_s1 = inlined_call_operand.vmem [shape: bf16[32,8], index: 1, kind: input, shape index: {}]   ;;  %s163_s0 = inlined_call_operand.vmem [shape: bf16[2,32], index: 0, kind: input, shape index: {}]   ;;  %s164_s2 = inlined_call_operand.vmem [shape: f32[1,8], index: 2, kind: input, shape index: {}]   ;;  %s165_s3 = inlined_call_operand.vmem [shape: f32[2,8], index: 3, kind: output, shape index: {}]  }
   0x1   :  { %20 = vst.msk [vmem:[#allocation2] sm:$0x3] %vm19_vm0, %v122_v0  ;;  %110 = vmatprep.subr.bf16.mxu0 %v122_v0  ;;  %v120_v1 = vld [vmem:[%s162_s1] sm:$0xff]   ;;  %114 = vmatprep.mubr.msk.bf16.mxu0 %vm123_vm1, %v122_v0  ;;  %v121_v2 = vld [vmem:[%s162_s1 + $0x8] sm:$0xff]  }
   0x2   :  { %111 = vmatpush3.bf16.msra.mxu0 %v120_v1  ;;  %v22_v3 = vld [vmem:[%s163_s0] sm:$0x1] }
   0x3   :  { %112 = vmatprep.subr.bf16.mxu0 %v122_v0  ;;  %v106_v10 = vld [vmem:[%s164_s2] ss:$0 sm:$0xff] }
   0x6   :  { %113 = vmatpush3.bf16.msra.mxu0 %v121_v2 }
   0x8   :  { %v21_v4 = vld [vmem:[#allocation2] sm:$0x3] }
   0x9   :  { %115 = vmatmul.mubr.msk.bf16.vlgmr.msra.gmra.mrb[0].mxu0 %vm39_vm2, %v22_v3 }
  0xdc   :  { %v77_v5 = vpop.f32.mrb[0].mxu0 }
  0xdd   :  { %v83_v6 = vadd.f32 %v77_v5, %v21_v4  ;;  %v116_v7 = vpop.f32.mrb[1].mxu0 }
  0xde   :  { %v80_v8 = vpop.f32.mrb[2].mxu0 }
  0xdf   :  { %85 = vst.msk [vmem:[#allocation2] sm:$0x3] %vm19_vm0, %v83_v6  ;;  %v117_v9 = vpop.f32.mrb[3].mxu0 }
  0xe6   :  { %v89_v11 = vld [vmem:[#allocation2] sm:$0x3] }
  0xe7   :  { %v97_v12 = vadd.f32 %v106_v10, %v89_v11 }
  0xe9   :  { %98 = vst.msk [vmem:[%s165_s3] sm:$0x3] %vm19_vm0, %v97_v12 }

// kernel: generator_forward.37
= control target key start
LH: loop header
LB: loop body
LE: loop exit
PB: predicated region body
PF: predicated region fallthrough
CT: control target
= control target key end

     0   :  { %s708_s12 = smov 0   ;;  %s710_s13 = smov 0   ;;  %s804_s0 = inlined_call_operand.vmem [shape: bf16[4,2,256], index: 0, kind: input, shape index: {}]   ;;  %s805_s1 = inlined_call_operand.vmem [shape: f32[1,2,256], index: 1, kind: input, shape index: {}]   ;;  %s806_s2 = inlined_call_operand.vmem [shape: f32[3,4,2,1], index: 2, kind: input, shape index: {}]   ;;  %s807_s3 = inlined_call_operand.vmem [shape: bf16[4,2,256], index: 3, kind: output, shape index: {}]  }
   0x1   :  { %s712_s14 = smov 0  }
   0x2 LB: > { %s605_s15 = sadd.s32 4294967295, %s682_s14   ;;  %s725_s16 = sadd.s32 1, %s682_s14   ;;  %s682_s14 = sphi %s712_s14, %s810_s14   ;;  %s678_s13 = sphi %s710_s13, %s809_s13   ;;  %s674_s12 = sphi %s708_s12, %s808_s12  }
   0x3   : > { %s64_s17 = ssub.s32 %s682_s14, %s725_s16  ;;  %s67_s18 = sadd.s32 1, %s678_s13 }
   0x4   : > { %p65_p0 = scmp.eq.s32.totalorder %s64_s17, 0  ;;  %p74_p1 = scmp.ne.s32.totalorder %s678_s13, %s674_s12 }
   0x5   : > { %p75_p2 = scmp.eq.s32.totalorder %s682_s14, 0  ;;  %p608_p4 = scmp.ge.s32.totalorder %s682_s14, 2 }
   0x6   : > { %s734_s19 = scalar_select %p65_p0, %s678_s13, %s67_s18  }
   0x7   : > { %p76_p3 = por %p75_p2, %p74_p1  ;;  %129 = sbr.rel (%p608_p4) target bundleno = 21 (0x15), region = 20 }
   0xe   : > { %141 = sbr.rel (!%p76_p3) target bundleno = 21 (0x15), region = 28  ;;  %s143_s20 = sand.u32 (%p76_p3), 1, %s678_s13  }
   0xf   : > { %s623_s21 = sshll.u32 (%p76_p3), %s682_s14, 2  ;;  %s624_s22 = smul.u32 (%p76_p3), 12, %s143_s20 }
  0x10   : > { %s148_s25 = scalar_lea.vmem (%p76_p3), %s806_s2, %s623_s21 }
  0x11   : > { %v164_v0 = vld [vmem:[%s148_s25] sm:$0xf] (%p76_p3)   ;;  %v168_v1 = vld [vmem:[%s148_s25 + $0x8] sm:$0xf] (%p76_p3)   ;;  %v172_v2 = vld [vmem:[%s148_s25 + $0x10] sm:$0xf] (%p76_p3)  }
  0x12   : > { %s145_s26 = scalar_lea.vmem (%p76_p3), [#allocation2], %s624_s22 }
  0x13   : > { %165 = vst [vmem:[%s145_s26] sm:$0xf] (%p76_p3), %v164_v0   ;;  %169 = vst [vmem:[%s145_s26 + $0x4] sm:$0xf] (%p76_p3), %v168_v1  }
  0x14   : > { %173 = vst [vmem:[%s145_s26 + $0x8] sm:$0xf] (%p76_p3), %v172_v2  }
  0x15 PF: > { %p611_p5 = scmp.ge.s32.totalorder %s682_s14, 1  ;;  %p209_p6 = scmp.lt.s32.totalorder %s682_s14, 3 }
  0x17   : > { %p210_p7 = pnand %p611_p5, %p209_p6 }
  0x18   : > { %s216_s27 = sand.u32 (!%p210_p7), 1, %s674_s12   ;;  %v684_v3 = vmov (!%p210_p7), 0   ;;  %s612_s30 = sshll.u32 (!%p210_p7), %s605_s15, 1  ;;  %v685_v6 = vmov (!%p210_p7), 1983009808   ;;  %v301_v8 = vlaneseq (!%p210_p7)  ;;  %vm345_vm1 = vcmask (!%p210_p7), 1041408  }
  0x19   : > { %213 = sbr.rel (%p210_p7) target bundleno = 511 (0x1ff), region = 69  ;;  %654 = vset.pattern.permute.xlu0 (!%p210_p7), %v684_v3  ;;  %655 = vset.pattern.permute.xlu1 (!%p210_p7), %v684_v3  ;;  %p245_p8 = scmp.lt.s32.totalorder (!%p210_p7), %s612_s30, 3  ;;  %v299_v7 = vunpack.c.l.s4 (!%p210_p7), %v685_v6  ;;  %v616_v9 = vld.sshfl [vmem:[%s805_s1] sm:$0x33 pattern:$0x76325410] (!%p210_p7) }
  0x1a   : > { %s625_s28 = smul.u32 (!%p210_p7), 12, %s216_s27  ;;  %v286_v10 = vcombine.high (!%p210_p7), %v616_v9, %v616_v9  ;;  %v762_v12 = vshrl.u32 (!%p210_p7), %v301_v8, 7  ;;  %v686_v47 = vmov (!%p210_p7), 269488144  }
  0x1b   : > { %v300_v11 = vunpack.c.0.s8 (!%p210_p7), %v299_v7  ;;  %v362_v48 = vunpack.c.l.s4 (!%p210_p7), %v686_v47 }
  0x1c   : > { %s745_s29 = scalar_lea.vmem (!%p210_p7), [#allocation2], %s625_s28 }
  0x1d   : > { %v262_v4 = vld [vmem:[%s745_s29] sm:$0x3] (!%p210_p7)  ;;  %v263_v5 = vld [vmem:[%s745_s29 + $0x2] sm:$0x3] (!%p210_p7)  ;;  %v765_v15 = vsub.s32 (!%p210_p7), %v300_v11, %v762_v12  ;;  %v264_v44 = vld [vmem:[%s745_s29 + $0x4] sm:$0x3] (!%p210_p7)  ;;  %v363_v49 = vunpack.c.0.s8 (!%p210_p7), %v362_v48 }
  0x1e   : > { %270 = vperm.xlu0 (!%p210_p7), %654, %v262_v4   ;;  %v265_v45 = vld [vmem:[%s745_s29 + $0x6] sm:$0x3] (!%p210_p7)  ;;  %v266_v46 = vld [vmem:[%s745_s29 + $0x8] sm:$0x3] (!%p210_p7)  ;;  %v267_v7 = vld [vmem:[%s745_s29 + $0xa] sm:$0x3] (!%p210_p7) }
  0x1f   : > { %v366_v50 = vsub.s32 (!%p210_p7), %v363_v49, %v762_v12 }
  0x20   : > { %s812_s30 = smov (!%p245_p8, %s612_s30), 3 }
  0x21   : > { %s613_s4 = sshll.u32 %s812_s30, 1 }
  0x22   : > { %275 = vperm.xlu0 %654, %v263_v5   ;;  %s248_s9 = scalar_lea.vmem %s804_s0, %s613_s4  ;;  %s255_s12 = scalar_lea.vmem %s807_s3, %s613_s4 }
  0x23   : > { %v257_v13 = vld [vmem:[%s248_s9] sm:$0x3]  ;;  %v258_v20 = vld [vmem:[%s248_s9 + $0x2] sm:$0x3] }
  0x24   : > { %v259_v18 = vunpack.c.l.bf16 %v257_v13  ;;  %v260_v26 = vunpack.c.l.bf16 %v258_v20 }
  0x9d   : > { %v271_v14 = vpop.permute.xlu0 %270 }
  0x9e   : > { %v289_v16 = vmul.f32 %v616_v9, %v271_v14  ;;  %v290_v17 = vmul.f32 %v286_v10, %v271_v14 }
  0xa0   : > { %v297_v19 = vcombine.low %v289_v16, %v290_v17 }
  0xa1   : > { %v276_v21 = vpop.permute.xlu0 %275 }
  0xa2   : > { %v304_v22 = vrot.slane %v297_v19, %v765_v15  ;;  %v291_v23 = vmul.f32 %v616_v9, %v276_v21  ;;  %v292_v24 = vmul.f32 %v286_v10, %v276_v21  ;;  %v687_v21 = vmov 1966171168  }
  0xa4   : > { %v315_v25 = vadd.f32 %v304_v22, %v259_v18  ;;  %v305_v27 = vcombine.low %v291_v23, %v292_v24  ;;  %v499_v22 = vunpack.c.l.s4 %v687_v21 }
  0xa6   : > { %v312_v28 = vrot.slane %v305_v27, %v765_v15  ;;  %vm317_vm0 = vcmp.ge.f32.partialorder %v315_v25, 0.0  ;;  %v319_v29 = vmul.f32 0.2, %v315_v25  ;;  %v500_v27 = vunpack.c.0.s8 %v499_v22 }
  0xa8   : > { %v316_v30 = vadd.f32 %v312_v28, %v260_v26  ;;  %v321_v31 = vsel %vm317_vm0, %v315_v25, %v319_v29 }
  0xa9   : > { %v331_v32 = vrot.slane %v321_v31, %v765_v15 }
  0xaa   : > { %vm318_vm2 = vcmp.ge.f32.partialorder %v316_v30, 0.0  ;;  %v320_v33 = vmul.f32 0.2, %v316_v30 }
  0xab   : > { %v332_v34 = vcombine.high %v331_v32, %v331_v32  ;;  %v346_v36 = vsel %vm345_vm1, %v331_v32, 0.0 }
  0xac   : > { %v322_v35 = vsel %vm318_vm2, %v316_v30, %v320_v33  ;;  %v503_v33 = vsub.s32 %v500_v27, %v762_v12 }
  0xad   : > { %v347_v37 = vsel %vm345_vm1, %v332_v34, 0.0  ;;  %v339_v38 = vrot.slane %v322_v35, %v765_v15 }
  0xae   : > { %v348_v39 = vadd.f32 %v347_v37, %v346_v36 }
  0xaf   : > { %v340_v40 = vcombine.high %v339_v38, %v339_v38  ;;  %v351_v41 = vsel %vm345_vm1, %v339_v38, 0.0 }
  0xb0   : > { %349 = vadd.xlane.f32.xlu1 %v348_v39 }
  0xb1   : > { %v352_v42 = vsel %vm345_vm1, %v340_v40, 0.0 }
  0xb2   : > { %v353_v43 = vadd.f32 %v352_v42, %v351_v41 }
  0xb4   : > { %354 = vadd.xlane.f32.xlu1 %v353_v43 }
  0xc5   : > { %441 = vperm.xlu1 %655, %v264_v44  }
  0xc9   : > { %446 = vperm.xlu1 %655, %v265_v45  }
  0xcd   : > { %477 = vperm.xlu1 %655, %v266_v46  }
 0x13d   : > { %v350_v51 = vpop.xlane.xlu1 %349 }
 0x13e   : > { %v357_v52 = vmul.f32 0.00390625, %v350_v51 }
 0x140   : > { %v367_v53 = vrot.slane %v357_v52, %v366_v50 }
 0x141   : > { %v355_v54 = vpop.xlane.xlu1 %354 }
 0x142   : > { %v377_v55 = vsub.f32 %v321_v31, %v367_v53  ;;  %v358_v56 = vmul.f32 0.00390625, %v355_v54 }
 0x144   : > { %v374_v57 = vrot.slane %v358_v56, %v366_v50  ;;  %v379_v58 = vmul.f32 %v377_v55, %v377_v55 }
 0x145   : > { %v442_v8 = vpop.permute.xlu1 %441 }
 0x146   : > { %v378_v59 = vsub.f32 %v322_v35, %v374_v57  ;;  %v389_v60 = vrot.slane %v379_v58, %v765_v15 }
 0x148   : > { %v390_v61 = vcombine.high %v389_v60, %v389_v60  ;;  %v380_v62 = vmul.f32 %v378_v59, %v378_v59  ;;  %v403_v63 = vsel %vm345_vm1, %v389_v60, 0.0 }
 0x149   : > { %v447_v9 = vpop.permute.xlu1 %446 }
 0x14a   : > { %v404_v0 = vsel %vm345_vm1, %v390_v61, 0.0  ;;  %v397_v1 = vrot.slane %v380_v62, %v765_v15 }
 0x14b   : > { %v405_v2 = vadd.f32 %v404_v0, %v403_v63 }
 0x14c   : > { %v398_v3 = vcombine.high %v397_v1, %v397_v1  ;;  %v408_v4 = vsel %vm345_vm1, %v397_v1, 0.0 }
 0x14d   : > { %406 = vadd.xlane.f32.xlu0 %v405_v2  ;;  %v478_v10 = vpop.permute.xlu1 %477 }
 0x14e   : > { %v409_v5 = vsel %vm345_vm1, %v398_v3, 0.0 }
 0x14f   : > { %v410_v6 = vadd.f32 %v409_v5, %v408_v4 }
 0x151   : > { %411 = vadd.xlane.f32.xlu1 %v410_v6 }
 0x162   : > { %482 = vperm.xlu1 %655, %v267_v7  }
 0x1da   : > { %v407_v11 = vpop.xlane.xlu0 %406 }
 0x1db   : > { %v413_v13 = vmul.f32 0.00390625, %v407_v11 }
 0x1dd   : > { %v415_v14 = vadd.f32 1e-05, %v413_v13 }
 0x1de   : > { %v412_v16 = vpop.xlane.xlu1 %411 }
 0x1df   : > { %656 = vrsqrt.f32 %v415_v14  ;;  %v414_v17 = vmul.f32 0.00390625, %v412_v16 }
 0x1e1   : > { %v416_v18 = vadd.f32 1e-05, %v414_v17 }
 0x1e2   : > { %v483_v40 = vpop.permute.xlu1 %482 }
 0x1e3   : > { %658 = vrsqrt.f32 %v416_v18 }
 0x1e9   : > { %v657_v19 = vpop.eup %656 }
 0x1ea   : > { %v427_v20 = vrot.slane %v657_v19, %v366_v50 }
 0x1ec   : > { %v437_v23 = vmul.f32 %v427_v20, %v377_v55 }
 0x1ed   : > { %v659_v24 = vpop.eup %658 }
 0x1ee   : > { %v457_v25 = vrot.slane %v437_v23, %v765_v15  ;;  %v434_v26 = vrot.slane %v659_v24, %v366_v50 }
 0x1f0   : > { %v438_v28 = vmul.f32 %v434_v26, %v378_v59  ;;  %v458_v29 = vcombine.high %v457_v25, %v457_v25  ;;  %v471_v30 = vmul.f32 %v457_v25, %v442_v8 }
 0x1f2   : > { %v465_v31 = vrot.slane %v438_v28, %v765_v15  ;;  %v472_v32 = vmul.f32 %v458_v29, %v442_v8  ;;  %v485_v36 = vadd.f32 %v478_v10, %v471_v30 }
 0x1f4   : > { %v466_v34 = vcombine.high %v465_v31, %v465_v31  ;;  %v473_v35 = vmul.f32 %v465_v31, %v447_v9  ;;  %v486_v37 = vadd.f32 %v478_v10, %v472_v32 }
 0x1f6   : > { %v474_v38 = vmul.f32 %v466_v34, %v447_v9  ;;  %v617_v39 = vpack.c.bf16 %v486_v37, %v485_v36  ;;  %v487_v41 = vadd.f32 %v483_v40, %v473_v35 }
 0x1f8   : > { %v488_v42 = vadd.f32 %v483_v40, %v474_v38  ;;  %v504_v43 = vrot.slane %v617_v39, %v503_v33 }
 0x1fa   : > { %v618_v44 = vpack.c.bf16 %v488_v42, %v487_v41  ;;  %619 = vst.sshfl [vmem:[%s255_s12] sm:$0x5 pattern:$0x73625140] %v504_v43 }
 0x1fc   : > { %v519_v15 = vrot.slane %v618_v44, %v503_v33 }
 0x1fe   : > { %620 = vst.sshfl [vmem:[%s255_s12 + $0x2] sm:$0x5 pattern:$0x73625140] %v519_v15 }
 0x1ff PF: > { %p10_p9 = scmp.ge.s32.totalorder %s725_s16, 4   ;;  %s808_s12 = smov %s678_s13 }
 0x200   : > { %s809_s13 = smov %s734_s19  ;;  %s810_s14 = smov %s725_s16 }
 0x201   :  { %12 = sbr.rel (!%p10_p9) target bundleno = 2 (0x2), region = 111 }

// kernel: generator_forward.38
= control target key start
LH: loop header
LB: loop body
LE: loop exit
PB: predicated region body
PF: predicated region fallthrough
CT: control target
= control target key end

     0   :  { %v290_v1 = vmov 0   ;;  %vm88_vm0 = vcmask 1041408   ;;  %vm84_vm1 = vcmask 293888   ;;  %v291_v19 = vmov 839922192   ;;  %s356_s1 = inlined_call_operand.vmem [shape: bf16[36,512], index: 1, kind: input, shape index: {}]   ;;  %s357_s2 = inlined_call_operand.vmem [shape: f32[4,1], index: 2, kind: input, shape index: {}]   ;;  %s358_s0 = inlined_call_operand.vmem [shape: bf16[4,36], index: 0, kind: input, shape index: {}]   ;;  %s359_s3 = inlined_call_operand.vmem [shape: bf16[4,512], index: 3, kind: output, shape index: {}]  }
   0x1   :  { %v274_v0 = vld [vmem:[%s356_s1 + $0x4] ss:$16 sps:$4 sm:$0xff]   ;;  %133 = vmatprep.mubr.bf16.mxu0 %v290_v1  ;;  %174 = vmatprep.mubr.bf16.mxu1 %v290_v1  ;;  %v276_v2 = vld [vmem:[%s356_s1 + $0xc] ss:$16 sps:$4 sm:$0xff]   ;;  %v278_v3 = vld [vmem:[%s356_s1] ss:$16 sps:$4 sm:$0xff]   ;;  %v206_v20 = vunpack.c.l.s4 %v291_v19  ;;  %v208_v21 = vlaneseq }
   0x2   :  { %273 = vset.pattern.permute.xlu0 %v290_v1  ;;  %101 = vmatprep.subr.bf16.mxu0 %v274_v0  ;;  %v279_v4 = vld [vmem:[%s356_s1 + $0x8] ss:$16 sps:$4 sm:$0xff]   ;;  %v280_v5 = vld [vmem:[%s356_s1 + $0x24] ss:$16 sps:$4 sm:$0xff]   ;;  %v282_v6 = vld [vmem:[%s356_s1 + $0x2c] ss:$16 sps:$4 sm:$0xff]  }
   0x3   :  { %142 = vmatprep.subr.bf16.mxu1 %v276_v2  ;;  %102 = vmatpush1.bf16.msra.mxu0 %v278_v3  ;;  %v284_v7 = vld [vmem:[%s356_s1 + $0x20] ss:$16 sps:$4 sm:$0xff]   ;;  %v285_v8 = vld [vmem:[%s356_s1 + $0x28] ss:$16 sps:$4 sm:$0xff]   ;;  %v207_v22 = vunpack.c.0.s8 %v206_v20  ;;  %v209_v23 = vshrl.u32 %v208_v21, 7 }
   0x4   :  { %143 = vmatpush1.bf16.msra.mxu1 %v279_v4  ;;  %103 = vmatprep.subr.bf16.mxu0 %v280_v5  ;;  %v32_v9 = vld [vmem:[%s356_s1 + $0x40] sm:$0x33]  ;;  %v33_v10 = vld [vmem:[%s356_s1 + $0x48] sm:$0x33]  ;;  %v292_v26 = vmov 1983009808  }
   0x5   :  { %144 = vmatprep.subr.bf16.mxu1 %v282_v6  ;;  %v261_v11 = vcombine.high %v32_v9, %v32_v9  ;;  %v263_v12 = vcombine.high %v33_v10, %v33_v10  ;;  %v260_v13 = vcombine.low %v32_v9, %v32_v9  ;;  %v262_v14 = vcombine.low %v33_v10, %v33_v10  ;;  %v200_v15 = vld [vmem:[%s357_s2] sm:$0xf] }
   0x6   :  { %203 = vperm.xlu0 %273, %v200_v15   ;;  %v23_v18 = vld [vmem:[%s358_s0] sm:$0x3]  ;;  %v210_v24 = vsub.s32 %v207_v22, %v209_v23  ;;  %v232_v27 = vunpack.c.l.s4 %v292_v26 }
   0x7   :  { %104 = vmatpush1.bf16.msra.mxu0 %v284_v7  ;;  %v90_v16 = vsel %vm88_vm0, %v260_v13, 0  ;;  %v96_v17 = vsel %vm88_vm0, %v262_v14, 0 }
   0x8   :  { %145 = vmatpush1.bf16.msra.mxu1 %v285_v8  ;;  %264 = vmatprep.subr.msk.bf16.mxu0 %vm88_vm0, %v261_v11  ;;  %v233_v33 = vunpack.c.0.s8 %v232_v27 }
   0x9   :  { %266 = vmatprep.subr.msk.bf16.mxu1 %vm88_vm0, %v263_v12 }
   0xa   :  { %v236_v42 = vsub.s32 %v233_v33, %v209_v23 }
   0xb   :  { %106 = vmatpush1.bf16.msra.mxu0 %v90_v16 }
   0xc   :  { %147 = vmatpush1.bf16.msra.mxu1 %v96_v17 }
   0xe   :  { %265 = vmatmul.mubr.msk.bf16.vlgmr.msra.gmra.mrb[0].mxu0 %vm84_vm1, %v23_v18 }
   0xf   :  { %267 = vmatmul.mubr.msk.bf16.vlgmr.msra.gmra.mrb[0].mxu1 %vm84_vm1, %v23_v18 }
  0x85   :  { %v204_v25 = vpop.permute.xlu0 %203 }
  0x86   :  { %v211_v30 = vrot.slane %v204_v25, %v210_v24 }
  0xe1   :  { %v135_v28 = vpop.f32.mrb[0].mxu0 }
  0xe2   :  { %v176_v29 = vpop.f32.mrb[0].mxu1  ;;  %v137_v31 = vpop.f32.mrb[1].mxu0 }
  0xe3   :  { %v178_v32 = vpop.f32.mrb[1].mxu1  ;;  %v187_v34 = vcombine.low %v135_v28, %v137_v31  ;;  %v139_v36 = vpop.f32.mrb[2].mxu0 }
  0xe4   :  { %v188_v35 = vcombine.low %v176_v29, %v178_v32  ;;  %v180_v37 = vpop.f32.mrb[2].mxu1  ;;  %v140_v38 = vpop.f32.mrb[3].mxu0 }
  0xe5   :  { %v181_v39 = vpop.f32.mrb[3].mxu1  ;;  %v213_v40 = vadd.f32 %v211_v30, %v187_v34 }
  0xe6   :  { %v214_v41 = vadd.f32 %v211_v30, %v188_v35 }
  0xe7   :  { %v217_v43 = vcombine.high %v213_v40, %v213_v40 }
  0xe8   :  { %v218_v44 = vcombine.high %v214_v41, %v214_v41 }
  0xe9   :  { %v268_v45 = vpack.c.bf16 %v217_v43, %v213_v40 }
  0xea   :  { %v269_v46 = vpack.c.bf16 %v218_v44, %v214_v41 }
  0xeb   :  { %v237_v47 = vrot.slane %v268_v45, %v236_v42 }
  0xec   :  { %v244_v48 = vrot.slane %v269_v46, %v236_v42 }
  0xee   :  { %v245_v49 = vcombine.low %v237_v47, %v244_v48 }
  0xf0   :  { %247 = vst [vmem:[%s359_s3] sm:$0xff] %v245_v49 }

// kernel: generator_forward.41
= control target key start
LH: loop header
LB: loop body
LE: loop exit
PB: predicated region body
PF: predicated region fallthrough
CT: control target
= control target key end

     0   :  { %vm53_vm0 = vcmask 1043456   ;;  %v351_v2 = vmov 0   ;;  %v352_v3 = vmov 1983009808   ;;  %v161_v5 = vlaneseq  ;;  %s427_s1 = inlined_call_operand.vmem [shape: bf16[8,512], index: 1, kind: input, shape index: {}]   ;;  %s428_s2 = inlined_call_operand.vmem [shape: bf16[4,512], index: 2, kind: input, shape index: {}]   ;;  %s429_s4 = inlined_call_operand.vmem [shape: f32[3,1], index: 4, kind: input, shape index: {}]   ;;  %s430_s0 = inlined_call_operand.<no memory space> [shape: f32[1,1], index: 0, kind: input, shape index: {}]   ;;  %s431_s6 = inlined_call_operand.vmem [shape: f32[3,1], index: 6, kind: input, shape index: {}]   ;;  %s432_s3 = inlined_call_operand.vmem [shape: bf16[3,8], index: 3, kind: input, shape index: {}]   ;;  %s433_s5 = inlined_call_operand.vmem [shape: bf16[3,4], index: 5, kind: input, shape index: {}]   ;;  %s434_s7 = inlined_call_operand.vmem [shape: f32[3,512], index: 7, kind: output, shape index: {}]  }
   0x1   :  { %v31_v0 = vld [vmem:[%s427_s1] sm:$0xff]  ;;  %v32_v1 = vld [vmem:[%s427_s1 + $0x8] sm:$0xff]  ;;  %98 = vmatprep.mubr.bf16.mxu0 %v351_v2  ;;  %139 = vmatprep.mubr.bf16.mxu1 %v351_v2  ;;  %v159_v4 = vunpack.c.l.s4 %v352_v3  ;;  %v12_v15 = vstv %s430_s0  ;;  %vm49_vm1 = vcmask 64512   ;;  %vm178_vm2 = vcmask 1041408  }
   0x2   :  { %v323_v6 = vcombine.high %v31_v0, %v31_v0  ;;  %v325_v7 = vcombine.high %v32_v1, %v32_v1  ;;  %v322_v8 = vcombine.low %v31_v0, %v31_v0  ;;  %v324_v9 = vcombine.low %v32_v1, %v32_v1  ;;  %v149_v10 = vld [vmem:[%s428_s2] sm:$0xff]  ;;  %336 = vset.pattern.permute.xlu0 %v351_v2 }
   0x3   :  { %v33_v11 = vld [vmem:[%s429_s4] sm:$0x7]  ;;  %v160_v12 = vunpack.c.0.s8 %v159_v4  ;;  %v162_v13 = vshrl.u32 %v161_v5, 7  ;;  %v157_v14 = vcombine.high %v149_v10, %v149_v10  ;;  %337 = vset.pattern.permute.xlu1 %v351_v2  ;;  %13 = vst [vmem:[#allocation2] sm:$0x1] %v12_v15  ;;  %vm174_vm3 = vcmask 31744  }
   0x4   :  { %36 = vperm.xlu0 %336, %v33_v11   ;;  %326 = vmatprep.subr.msk.bf16.mxu0 %vm53_vm0, %v323_v6  ;;  %v55_v16 = vsel %vm53_vm0, %v322_v8, 0  ;;  %v61_v17 = vsel %vm53_vm0, %v324_v9, 0  ;;  %v150_v18 = vld [vmem:[%s431_s6] sm:$0x7] }
   0x5   :  { %328 = vmatprep.subr.msk.bf16.mxu1 %vm53_vm0, %v325_v7  ;;  %67 = vmatpush1.bf16.msra.mxu0 %v55_v16  ;;  %v30_v19 = vld [vmem:[%s432_s3] sm:$0x3]  ;;  %v163_v20 = vsub.s32 %v160_v12, %v162_v13  ;;  %v276_v23 = vsub.s32 0, %v162_v13 }
   0x6   :  { %108 = vmatpush1.bf16.msra.mxu1 %v61_v17  ;;  %v148_v31 = vld [vmem:[%s433_s5] sm:$0x3] }
   0x7   :  { %v164_v21 = vrot.slane %v149_v10, %v163_v20  ;;  %v171_v22 = vrot.slane %v157_v14, %v163_v20 }
   0x8   :  { %153 = vperm.xlu0 %336, %v150_v18   ;;  %327 = vmatmul.mubr.msk.bf16.vlgmr.msra.gmra.mrb[0].mxu0 %vm49_vm1, %v30_v19 }
   0x9   :  { %329 = vmatmul.mubr.msk.bf16.vlgmr.msra.gmra.mrb[0].mxu1 %vm49_vm1, %v30_v19  ;;  %v172_v24 = vcombine.high %v164_v21, %v164_v21  ;;  %v173_v25 = vcombine.high %v171_v22, %v171_v22  ;;  %v180_v26 = vsel %vm178_vm2, %v164_v21, 0  ;;  %v186_v27 = vsel %vm178_vm2, %v171_v22, 0  ;;  %223 = vmatprep.mubr.bf16.mxu0 %v351_v2 }
   0xa   :  { %264 = vmatprep.mubr.bf16.mxu1 %v351_v2  ;;  %v29_v28 = vld [vmem:[#allocation2] sm:$0x1] }
   0xb   :  { %330 = vmatprep.subr.msk.bf16.mxu0 %vm178_vm2, %v172_v24  ;;  %332 = vmatprep.subr.msk.bf16.mxu1 %vm178_vm2, %v173_v25  ;;  %v277_v29 = vrot.slane %v29_v28, %v276_v23  ;;  %v286_v30 = vsub.f32 1.0, %v29_v28 }
   0xc   :  { %192 = vmatpush1.bf16.msra.mxu0 %v180_v26  ;;  %233 = vmatpush1.bf16.msra.mxu1 %v186_v27 }
   0xd   :  { %279 = vperm.xlu1 %337, %v277_v29   ;;  %v291_v32 = vrot.slane %v286_v30, %v276_v23 }
  0x10   :  { %331 = vmatmul.mubr.msk.bf16.vlgmr.msra.gmra.mrb[4].mxu0 %vm174_vm3, %v148_v31 }
  0x11   :  { %333 = vmatmul.mubr.msk.bf16.vlgmr.msra.gmra.mrb[4].mxu1 %vm174_vm3, %v148_v31  ;;  %293 = vperm.xlu1 %337, %v291_v32  }
  0x83   :  { %v37_v33 = vpop.permute.xlu0 %36 }
  0x87   :  { %v154_v45 = vpop.permute.xlu0 %153 }
  0x8c   :  { %v280_v34 = vpop.permute.xlu1 %279 }
  0x90   :  { %v294_v46 = vpop.permute.xlu1 %293 }
  0xdb   :  { %v100_v35 = vpop.f32.mrb[0].mxu0 }
  0xdc   :  { %v141_v36 = vpop.f32.mrb[0].mxu1  ;;  %v102_v37 = vpop.f32.mrb[1].mxu0  ;;  %v101_v43 = vadd.f32 %v100_v35, %v37_v33 }
  0xdd   :  { %v143_v38 = vpop.f32.mrb[1].mxu1  ;;  %v104_v39 = vpop.f32.mrb[2].mxu0  ;;  %v142_v44 = vadd.f32 %v141_v36, %v37_v33  ;;  %v103_v47 = vadd.f32 %v102_v37, %v37_v33 }
  0xde   :  { %v145_v40 = vpop.f32.mrb[2].mxu1  ;;  %v105_v41 = vpop.f32.mrb[3].mxu0  ;;  %v144_v48 = vadd.f32 %v143_v38, %v37_v33  ;;  %v282_v59 = vmul.f32 %v280_v34, %v101_v43 }
  0xdf   :  { %v146_v42 = vpop.f32.mrb[3].mxu1  ;;  %v284_v60 = vmul.f32 %v280_v34, %v142_v44  ;;  %v283_v1 = vmul.f32 %v280_v34, %v103_v47 }
  0xe0   :  { %v285_v2 = vmul.f32 %v280_v34, %v144_v48 }
  0xe3   :  { %v225_v49 = vpop.f32.mrb[4].mxu0 }
  0xe4   :  { %v266_v50 = vpop.f32.mrb[4].mxu1  ;;  %v226_v51 = vadd.f32 %v225_v49, %v154_v45  ;;  %v227_v53 = vpop.f32.mrb[5].mxu0 }
  0xe5   :  { %v267_v52 = vadd.f32 %v266_v50, %v154_v45  ;;  %v268_v54 = vpop.f32.mrb[5].mxu1  ;;  %v228_v55 = vadd.f32 %v227_v53, %v154_v45  ;;  %v229_v57 = vpop.f32.mrb[6].mxu0 }
  0xe6   :  { %v269_v56 = vadd.f32 %v268_v54, %v154_v45  ;;  %v270_v58 = vpop.f32.mrb[6].mxu1  ;;  %v296_v61 = vmul.f32 %v294_v46, %v226_v51  ;;  %v230_v63 = vpop.f32.mrb[7].mxu0 }
  0xe7   :  { %v298_v62 = vmul.f32 %v294_v46, %v267_v52  ;;  %v271_v0 = vpop.f32.mrb[7].mxu1  ;;  %v297_v3 = vmul.f32 %v294_v46, %v228_v55 }
  0xe8   :  { %v299_v4 = vmul.f32 %v294_v46, %v269_v56  ;;  %v300_v5 = vadd.f32 %v296_v61, %v282_v59 }
  0xe9   :  { %v302_v6 = vadd.f32 %v298_v62, %v284_v60  ;;  %v301_v7 = vadd.f32 %v297_v3, %v283_v1 }
  0xea   :  { %v303_v8 = vadd.f32 %v299_v4, %v285_v2  ;;  %343 = vtanh.f32 %v300_v5 }
  0xeb   :  { %345 = vtanh.f32 %v301_v7 }
  0xec   :  { %347 = vtanh.f32 %v302_v6 }
  0xed   :  { %349 = vtanh.f32 %v303_v8 }
  0xf4   :  { %v344_v9 = vpop.eup %343 }
  0xf5   :  { %v346_v10 = vpop.eup %345 }
  0xf6   :  { %v348_v11 = vpop.eup %347  ;;  %v312_v12 = vcombine.low %v344_v9, %v346_v10 }
  0xf7   :  { %v350_v13 = vpop.eup %349 }
  0xf8   :  { %v313_v14 = vcombine.low %v348_v11, %v350_v13  ;;  %316 = vst [vmem:[%s434_s7] sm:$0x77] %v312_v12 }
  0xfa   :  { %317 = vst [vmem:[%s434_s7 + $0x8] sm:$0x77] %v313_v14 }

</bundles_post_ra>
